<compile_context>
chip_gen: v7x
topology: tpu7x:2x2x1
jax: 0.10.0
libtpu: 0.0.40
codegen_flags: <defaults>
</compile_context>

<pallas_src>
import functools

import jax
import jax.numpy as jnp
from jax import lax
from jax.experimental import pallas as pl
from jax.experimental.pallas import tpu as pltpu

_EPS = 1e-6


def _wbbox_kernel(x_ref, mmat_ref, out_ref, *, C, H, W,
                  norm_by_img, no_score, use_conv1d):
    """x_ref: (bt, C, H*W); mmat_ref: (H*W, 128); out_ref: (bt, F*K)."""
    K = C - 1
    F = 4 if no_score else 5

    # Per-class lane-dense planes, (bt, H*W) each.
    xs = [x_ref[:, c, :].astype(jnp.float32) for c in range(C)]

    # Numerically-stable softmax over the class axis; C is tiny and static, so the
    # reduction is a short unrolled chain of full-width VPU ops (no XLU needed).
    m = xs[0]
    for c in range(1, C):
        m = jnp.maximum(m, xs[c])
    es = [jnp.exp(x - m) for x in xs]
    denom = es[0]
    for c in range(1, C):
        denom = denom + es[c]
    inv_denom = 1.0 / denom                         # exact divide (see header note)

    # Foreground weighting for the class scores (skipped entirely when no_score).
    if not no_score:
        fg_logit = xs[1]
        for c in range(2, C):
            fg_logit = fg_logit + xs[c]
        fg_logit = fg_logit - xs[0]
        fg = jax.nn.sigmoid(fg_logit)                                    # (bt, HW)
        fg_sum = jnp.maximum(jnp.sum(fg, axis=-1, keepdims=True), _EPS)  # (bt, 1)

    mmat = mmat_ref[...]                                                 # (HW, 128)

    # Closed-form corrections for torch's per-element +_EPS on mask_sumsX / mask_sumsY.
    q1x = W * (W - 1) / 2.0
    q2x = (W - 1) * W * (2 * W - 1) / 6.0
    q1y = H * (H - 1) / 2.0
    q2y = (H - 1) * H * (2 * H - 1) / 6.0

    feats = []                                      # feats[k] = F columns of (bt, 1)
    for k in range(K):
        mask_k = es[k + 1] * inv_denom              # softmax prob of part k, (bt, HW)
        # One MXU matmul -> [sum(m), sum(m*gx), sum(m*gx^2), sum(m*gy), sum(m*gy^2)].
        mom = jnp.dot(mask_k, mmat,
                      precision=lax.Precision.HIGHEST,
                      preferred_element_type=jnp.float32)                # (bt, 128)
        m0 = mom[:, 0:1]
        m1x, m2x = mom[:, 1:2], mom[:, 2:3]
        m1y, m2y = mom[:, 3:4], mom[:, 4:5]

        msum = m0 + _EPS
        inv_ms = 1.0 / msum
        cx = (m1x + _EPS * q1x) * inv_ms
        cy = (m1y + _EPS * q1y) * inv_ms
        varx = (m2x - 2.0 * cx * m1x + cx * cx * m0
                + _EPS * (q2x - 2.0 * cx * q1x + W * cx * cx)) * inv_ms
        vary = (m2y - 2.0 * cy * m1y + cy * cy * m0
                + _EPS * (q2y - 2.0 * cy * q1y + H * cy * cy)) * inv_ms
        sdx = jnp.sqrt(jnp.maximum(varx, 0.0))
        sdy = jnp.sqrt(jnp.maximum(vary, 0.0))

        if norm_by_img:
            cx = cx / W * 2.0 - 1.0
            cy = cy / H * 2.0 - 1.0
            sdx = sdx / W * 2.0
            sdy = sdy / H * 2.0

        cols = [cx, cy, sdx, sdy]
        if not no_score:
            cs = jnp.sum(xs[k + 1] * fg, axis=-1, keepdims=True) / fg_sum
            cols = [cs] + cols
        feats.append(cols)

    # Emit pre-flattened in the final layout so the wrapper only needs a free reshape.
    if use_conv1d:   # (B, F, K) row-major
        order = [feats[k][f] for f in range(F) for k in range(K)]
    else:            # (B, K, F) row-major
        order = [feats[k][f] for k in range(K) for f in range(F)]
    out_ref[...] = jnp.concatenate(order, axis=-1).astype(out_ref.dtype)


def weighted_bbox_features(logits_masks, *, height, width, norm_by_img,
                           no_score, use_conv1d, batch_tile=256):
    B, C, H, W = logits_masks.shape
    assert H == height and W == width
    # torch multiplies arange(height) against both the W-length and H-length marginal
    # sums, so the module implicitly requires square spatial dims.
    assert H == W, "torch grid broadcast implies square spatial dims"
    K = C - 1
    F = 4 if no_score else 5
    HW = H * W

    # Batch rows per grid step: big enough to amortize per-step overhead, small enough
    # that 2x(block) + in-kernel intermediates stay well below every generation's
    # scoped-VMEM default (v5e 16 MiB / v6e 32 MiB / v7x 32 MiB of 64 MiB physical).
    bt = min(batch_tile, B)
    if bt != B and bt % 8 != 0:      # keep the 2-D output block (bt, F*K) (8,128)-legal
        bt = (bt // 8) * 8
        if bt == 0:
            bt = B

    # (B, C, H, W) -> (B, C, H*W): pure reshape, spatial axis becomes lane-dense.
    x2d = logits_masks.reshape(B, C, HW)

    # VMEM-resident moment matrix: columns [1, gx, gx^2, gy, gy^2] (gx = p % W,
    # gy = p // W for the row-major flattening), zero-padded to 128 lanes.
    gy = jnp.repeat(jnp.arange(H, dtype=jnp.float32), W)
    gx = jnp.tile(jnp.arange(W, dtype=jnp.float32), H)
    mmat = jnp.stack([jnp.ones((HW,), jnp.float32), gx, gx * gx, gy, gy * gy], axis=1)
    mmat = jnp.pad(mmat, ((0, 0), (0, 128 - mmat.shape[1])))

    kernel = functools.partial(
        _wbbox_kernel, C=C, H=H, W=W,
        norm_by_img=norm_by_img, no_score=no_score, use_conv1d=use_conv1d)

    out2d = pl.pallas_call(
        kernel,
        out_shape=jax.ShapeDtypeStruct((B, F * K), jnp.float32),
        grid_spec=pltpu.PrefetchScalarGridSpec(
            num_scalar_prefetch=0,
            grid=(pl.cdiv(B, bt),),
            in_specs=[
                pl.BlockSpec((bt, C, HW), lambda b: (b, 0, 0)),
                pl.BlockSpec((HW, 128), lambda b: (0, 0)),   # constant -> loaded once
            ],
            out_specs=pl.BlockSpec((bt, F * K), lambda b: (b, 0)),
        ),
        compiler_params=pltpu.CompilerParams(dimension_semantics=("parallel",)),
    )(x2d, mmat)

    shape = (B, F, K) if use_conv1d else (B, K, F)
    return out2d.reshape(shape)


def _reference(logits_masks, *, height, width, norm_by_img, no_score, use_conv1d):
    """Pure-jnp transliteration of the PyTorch forward, for verification."""
    x = logits_masks.astype(jnp.float32)
    masks = jax.nn.softmax(x, axis=1)[:, 1:]
    fg = jax.nn.sigmoid(jnp.sum(x[:, 1:], axis=1, keepdims=True) - x[:, 0:1])
    fg = fg / jnp.maximum(jnp.sum(fg, axis=(2, 3), keepdims=True), _EPS)
    class_scores = jnp.sum(x[:, 1:] * fg, axis=(2, 3))
    mask_sums = jnp.sum(masks, axis=(2, 3)) + _EPS
    mask_sumsX = jnp.sum(masks, axis=2) + _EPS
    mask_sumsY = jnp.sum(masks, axis=3) + _EPS
    grid = jnp.arange(height, dtype=jnp.float32)[None, None, :]
    centerX = jnp.sum(mask_sumsX * grid, axis=2) / mask_sums
    centerY = jnp.sum(mask_sumsY * grid, axis=2) / mask_sums
    sdX = jnp.sqrt(jnp.sum(mask_sumsX * (grid - centerX[..., None]) ** 2, axis=2) / mask_sums)
    sdY = jnp.sqrt(jnp.sum(mask_sumsY * (grid - centerY[..., None]) ** 2, axis=2) / mask_sums)
    if norm_by_img:
        centerX = centerX / width * 2 - 1
        centerY = centerY / height * 2 - 1
        sdX = sdX / width * 2
        sdY = sdY / height * 2
    feats = [centerX, centerY, sdX, sdY] if no_score else [class_scores, centerX, centerY, sdX, sdY]
    out = jnp.concatenate([f[..., None] for f in feats], axis=2)
    if use_conv1d:
        out = jnp.transpose(out, (0, 2, 1))
    return out


if __name__ == "__main__":
    H = W = 16
    # (B, C, norm_by_img, no_score, use_conv1d, batch_tile)
    configs = [
        (2, 5, True, False, True, 256),    # primary config: 1 background + 4 parts
        (2, 5, False, True, False, 256),   # no_score / no permute / unnormalized
        (40, 5, True, False, True, 16),    # multi-step grid with partial last block
    ]

    key = jax.random.PRNGKey(0)
    for (B, C, norm_by_img, no_score, use_conv1d, batch_tile) in configs:
        key, sub = jax.random.split(key)
        logits_masks = jax.random.normal(sub, (B, C, H, W), dtype=jnp.float32) * 2.0

        out = weighted_bbox_features(
            logits_masks,
            height=H, width=W,
            norm_by_img=norm_by_img, no_score=no_score, use_conv1d=use_conv1d,
            batch_tile=batch_tile,
        )
        out = jax.block_until_ready(out)

        ref = _reference(
            logits_masks,
            height=H, width=W,
            norm_by_img=norm_by_img, no_score=no_score, use_conv1d=use_conv1d,
        )
        F_ = 4 if no_score else 5
        expected = (B, F_, C - 1) if use_conv1d else (B, C - 1, F_)
        assert out.shape == ref.shape == expected, (out.shape, ref.shape, expected)
        assert jnp.allclose(out, ref, rtol=1e-5, atol=1e-4), (out, ref)

    print("KERNEL_OK")
</pallas_src>

<mosaic_0001>
module attributes {stable_mosaic.version = 11 : i64} {
  func.func @_wbbox_kernel(%arg0: i32, %arg1: memref<2x5x256xf32, #tpu.memory_space<vmem>>, %arg2: memref<256x128xf32, #tpu.memory_space<vmem>>, %arg3: memref<2x20xf32, #tpu.memory_space<vmem>>) attributes {dimension_semantics = [#tpu.dimension_semantics<parallel>], iteration_bounds = array<i64: 1>, scalar_prefetch = 0 : i64, scratch_operands = 0 : i64, tpu.core_type = #tpu.core_type<tc>, window_params = [{transform_indices = @transform_0, window_bounds = array<i64: 2, 5, 256>}, {pipeline_mode = #tpu.pipeline_mode<synchronous>, transform_indices = @transform_1, window_bounds = array<i64: 256, 128>}, {transform_indices = @transform_2, window_bounds = array<i64: 2, 20>}]} {
    %c0 = arith.constant 0 : index
    %c0_0 = arith.constant 0 : index
    %c0_1 = arith.constant 0 : index
    %0 = vector.load %arg1[%c0, %c0_0, %c0_1] : memref<2x5x256xf32, #tpu.memory_space<vmem>>, vector<2x1x256xf32>
    %1 = vector.shape_cast %0 : vector<2x1x256xf32> to vector<2x256xf32>
    %c0_2 = arith.constant 0 : index
    %c1 = arith.constant 1 : index
    %c0_3 = arith.constant 0 : index
    %2 = vector.load %arg1[%c0_2, %c1, %c0_3] : memref<2x5x256xf32, #tpu.memory_space<vmem>>, vector<2x1x256xf32>
    %3 = vector.shape_cast %2 : vector<2x1x256xf32> to vector<2x256xf32>
    %c0_4 = arith.constant 0 : index
    %c2 = arith.constant 2 : index
    %c0_5 = arith.constant 0 : index
    %4 = vector.load %arg1[%c0_4, %c2, %c0_5] : memref<2x5x256xf32, #tpu.memory_space<vmem>>, vector<2x1x256xf32>
    %5 = vector.shape_cast %4 : vector<2x1x256xf32> to vector<2x256xf32>
    %c0_6 = arith.constant 0 : index
    %c3 = arith.constant 3 : index
    %c0_7 = arith.constant 0 : index
    %6 = vector.load %arg1[%c0_6, %c3, %c0_7] : memref<2x5x256xf32, #tpu.memory_space<vmem>>, vector<2x1x256xf32>
    %7 = vector.shape_cast %6 : vector<2x1x256xf32> to vector<2x256xf32>
    %c0_8 = arith.constant 0 : index
    %c4 = arith.constant 4 : index
    %c0_9 = arith.constant 0 : index
    %8 = vector.load %arg1[%c0_8, %c4, %c0_9] : memref<2x5x256xf32, #tpu.memory_space<vmem>>, vector<2x1x256xf32>
    %9 = vector.shape_cast %8 : vector<2x1x256xf32> to vector<2x256xf32>
    %10 = arith.maximumf %1, %3 : vector<2x256xf32>
    %11 = arith.maximumf %10, %5 : vector<2x256xf32>
    %12 = arith.maximumf %11, %7 : vector<2x256xf32>
    %13 = arith.maximumf %12, %9 : vector<2x256xf32>
    %14 = arith.subf %1, %13 : vector<2x256xf32>
    %15 = math.exp %14 : vector<2x256xf32>
    %16 = arith.subf %3, %13 : vector<2x256xf32>
    %17 = math.exp %16 : vector<2x256xf32>
    %18 = arith.subf %5, %13 : vector<2x256xf32>
    %19 = math.exp %18 : vector<2x256xf32>
    %20 = arith.subf %7, %13 : vector<2x256xf32>
    %21 = math.exp %20 : vector<2x256xf32>
    %22 = arith.subf %9, %13 : vector<2x256xf32>
    %23 = math.exp %22 : vector<2x256xf32>
    %24 = arith.addf %15, %17 : vector<2x256xf32>
    %25 = arith.addf %24, %19 : vector<2x256xf32>
    %26 = arith.addf %25, %21 : vector<2x256xf32>
    %27 = arith.addf %26, %23 : vector<2x256xf32>
    %cst = arith.constant 1.000000e+00 : f32
    %28 = vector.broadcast %cst : f32 to vector<2x256xf32>
    %29 = arith.divf %28, %27 : vector<2x256xf32>
    %30 = arith.addf %3, %5 : vector<2x256xf32>
    %31 = arith.addf %30, %7 : vector<2x256xf32>
    %32 = arith.addf %31, %9 : vector<2x256xf32>
    %33 = arith.subf %32, %1 : vector<2x256xf32>
    %34 = arith.negf %33 : vector<2x256xf32>
    %35 = math.exp %34 : vector<2x256xf32>
    %cst_10 = arith.constant 1.000000e+00 : f32
    %36 = vector.broadcast %cst_10 : f32 to vector<2x256xf32>
    %37 = arith.addf %36, %35 : vector<2x256xf32>
    %38 = arith.divf %36, %37 : vector<2x256xf32>
    %cst_11 = arith.constant dense<0.000000e+00> : vector<2xf32>
    %39 = vector.multi_reduction <add>, %38, %cst_11 [1] : vector<2x256xf32> to vector<2xf32>
    %40 = vector.shape_cast %39 : vector<2xf32> to vector<2x1xf32>
    %cst_12 = arith.constant 9.99999997E-7 : f32
    %41 = vector.broadcast %cst_12 : f32 to vector<2x1xf32>
    %42 = arith.maximumf %40, %41 : vector<2x1xf32>
    %c0_13 = arith.constant 0 : index
    %c0_14 = arith.constant 0 : index
    %43 = vector.load %arg2[%c0_13, %c0_14] : memref<256x128xf32, #tpu.memory_space<vmem>>, vector<256x128xf32>
    %44 = arith.mulf %17, %29 : vector<2x256xf32>
    %cst_15 = arith.constant dense<0.000000e+00> : vector<2x128xf32>
    %45 = tpu.matmul %44, %43, %cst_15 {dimension_numbers = #tpu.dot_dimension_numbers<[1], [0], [0], [1], [0, 0, 1, 1], [], []>, precision = #tpu.contract_precision<fp32>} : vector<2x256xf32>, vector<256x128xf32>, vector<2x128xf32> -> vector<2x128xf32>
    %46 = vector.extract_strided_slice %45 {offsets = [0, 0], sizes = [2, 1], strides = [1, 1]} : vector<2x128xf32> to vector<2x1xf32>
    %47 = vector.extract_strided_slice %45 {offsets = [0, 1], sizes = [2, 1], strides = [1, 1]} : vector<2x128xf32> to vector<2x1xf32>
    %48 = vector.extract_strided_slice %45 {offsets = [0, 2], sizes = [2, 1], strides = [1, 1]} : vector<2x128xf32> to vector<2x1xf32>
    %49 = vector.extract_strided_slice %45 {offsets = [0, 3], sizes = [2, 1], strides = [1, 1]} : vector<2x128xf32> to vector<2x1xf32>
    %50 = vector.extract_strided_slice %45 {offsets = [0, 4], sizes = [2, 1], strides = [1, 1]} : vector<2x128xf32> to vector<2x1xf32>
    %cst_16 = arith.constant 9.99999997E-7 : f32
    %51 = vector.broadcast %cst_16 : f32 to vector<2x1xf32>
    %52 = arith.addf %46, %51 : vector<2x1xf32>
    %cst_17 = arith.constant 1.000000e+00 : f32
    %53 = vector.broadcast %cst_17 : f32 to vector<2x1xf32>
    %54 = arith.divf %53, %52 : vector<2x1xf32>
    %cst_18 = arith.constant 1.200000e-04 : f32
    %55 = vector.broadcast %cst_18 : f32 to vector<2x1xf32>
    %56 = arith.addf %47, %55 : vector<2x1xf32>
    %57 = arith.mulf %56, %54 : vector<2x1xf32>
    %cst_19 = arith.constant 1.200000e-04 : f32
    %58 = vector.broadcast %cst_19 : f32 to vector<2x1xf32>
    %59 = arith.addf %49, %58 : vector<2x1xf32>
    %60 = arith.mulf %59, %54 : vector<2x1xf32>
    %cst_20 = arith.constant 2.000000e+00 : f32
    %61 = vector.broadcast %cst_20 : f32 to vector<2x1xf32>
    %62 = arith.mulf %61, %57 : vector<2x1xf32>
    %63 = arith.mulf %62, %47 : vector<2x1xf32>
    %64 = arith.subf %48, %63 : vector<2x1xf32>
    %65 = arith.mulf %57, %57 : vector<2x1xf32>
    %66 = arith.mulf %65, %46 : vector<2x1xf32>
    %67 = arith.addf %64, %66 : vector<2x1xf32>
    %cst_21 = arith.constant 2.000000e+00 : f32
    %68 = vector.broadcast %cst_21 : f32 to vector<2x1xf32>
    %69 = arith.mulf %68, %57 : vector<2x1xf32>
    %cst_22 = arith.constant 1.200000e+02 : f32
    %70 = vector.broadcast %cst_22 : f32 to vector<2x1xf32>
    %71 = arith.mulf %69, %70 : vector<2x1xf32>
    %cst_23 = arith.constant 1.240000e+03 : f32
    %72 = vector.broadcast %cst_23 : f32 to vector<2x1xf32>
    %73 = arith.subf %72, %71 : vector<2x1xf32>
    %cst_24 = arith.constant 1.600000e+01 : f32
    %74 = vector.broadcast %cst_24 : f32 to vector<2x1xf32>
    %75 = arith.mulf %74, %57 : vector<2x1xf32>
    %76 = arith.mulf %75, %57 : vector<2x1xf32>
    %77 = arith.addf %73, %76 : vector<2x1xf32>
    %cst_25 = arith.constant 9.99999997E-7 : f32
    %78 = vector.broadcast %cst_25 : f32 to vector<2x1xf32>
    %79 = arith.mulf %78, %77 : vector<2x1xf32>
    %80 = arith.addf %67, %79 : vector<2x1xf32>
    %81 = arith.mulf %80, %54 : vector<2x1xf32>
    %cst_26 = arith.constant 2.000000e+00 : f32
    %82 = vector.broadcast %cst_26 : f32 to vector<2x1xf32>
    %83 = arith.mulf %82, %60 : vector<2x1xf32>
    %84 = arith.mulf %83, %49 : vector<2x1xf32>
    %85 = arith.subf %50, %84 : vector<2x1xf32>
    %86 = arith.mulf %60, %60 : vector<2x1xf32>
    %87 = arith.mulf %86, %46 : vector<2x1xf32>
    %88 = arith.addf %85, %87 : vector<2x1xf32>
    %cst_27 = arith.constant 2.000000e+00 : f32
    %89 = vector.broadcast %cst_27 : f32 to vector<2x1xf32>
    %90 = arith.mulf %89, %60 : vector<2x1xf32>
    %cst_28 = arith.constant 1.200000e+02 : f32
    %91 = vector.broadcast %cst_28 : f32 to vector<2x1xf32>
    %92 = arith.mulf %90, %91 : vector<2x1xf32>
    %cst_29 = arith.constant 1.240000e+03 : f32
    %93 = vector.broadcast %cst_29 : f32 to vector<2x1xf32>
    %94 = arith.subf %93, %92 : vector<2x1xf32>
    %cst_30 = arith.constant 1.600000e+01 : f32
    %95 = vector.broadcast %cst_30 : f32 to vector<2x1xf32>
    %96 = arith.mulf %95, %60 : vector<2x1xf32>
    %97 = arith.mulf %96, %60 : vector<2x1xf32>
    %98 = arith.addf %94, %97 : vector<2x1xf32>
    %cst_31 = arith.constant 9.99999997E-7 : f32
    %99 = vector.broadcast %cst_31 : f32 to vector<2x1xf32>
    %100 = arith.mulf %99, %98 : vector<2x1xf32>
    %101 = arith.addf %88, %100 : vector<2x1xf32>
    %102 = arith.mulf %101, %54 : vector<2x1xf32>
    %cst_32 = arith.constant 0.000000e+00 : f32
    %103 = vector.broadcast %cst_32 : f32 to vector<2x1xf32>
    %104 = arith.maximumf %81, %103 : vector<2x1xf32>
    %105 = math.sqrt %104 : vector<2x1xf32>
    %cst_33 = arith.constant 0.000000e+00 : f32
    %106 = vector.broadcast %cst_33 : f32 to vector<2x1xf32>
    %107 = arith.maximumf %102, %106 : vector<2x1xf32>
    %108 = math.sqrt %107 : vector<2x1xf32>
    %cst_34 = arith.constant 1.600000e+01 : f32
    %109 = vector.broadcast %cst_34 : f32 to vector<2x1xf32>
    %110 = arith.divf %57, %109 : vector<2x1xf32>
    %cst_35 = arith.constant 2.000000e+00 : f32
    %111 = vector.broadcast %cst_35 : f32 to vector<2x1xf32>
    %112 = arith.mulf %110, %111 : vector<2x1xf32>
    %cst_36 = arith.constant 1.000000e+00 : f32
    %113 = vector.broadcast %cst_36 : f32 to vector<2x1xf32>
    %114 = arith.subf %112, %113 : vector<2x1xf32>
    %cst_37 = arith.constant 1.600000e+01 : f32
    %115 = vector.broadcast %cst_37 : f32 to vector<2x1xf32>
    %116 = arith.divf %60, %115 : vector<2x1xf32>
    %cst_38 = arith.constant 2.000000e+00 : f32
    %117 = vector.broadcast %cst_38 : f32 to vector<2x1xf32>
    %118 = arith.mulf %116, %117 : vector<2x1xf32>
    %cst_39 = arith.constant 1.000000e+00 : f32
    %119 = vector.broadcast %cst_39 : f32 to vector<2x1xf32>
    %120 = arith.subf %118, %119 : vector<2x1xf32>
    %cst_40 = arith.constant 1.600000e+01 : f32
    %121 = vector.broadcast %cst_40 : f32 to vector<2x1xf32>
    %122 = arith.divf %105, %121 : vector<2x1xf32>
    %cst_41 = arith.constant 2.000000e+00 : f32
    %123 = vector.broadcast %cst_41 : f32 to vector<2x1xf32>
    %124 = arith.mulf %122, %123 : vector<2x1xf32>
    %cst_42 = arith.constant 1.600000e+01 : f32
    %125 = vector.broadcast %cst_42 : f32 to vector<2x1xf32>
    %126 = arith.divf %108, %125 : vector<2x1xf32>
    %cst_43 = arith.constant 2.000000e+00 : f32
    %127 = vector.broadcast %cst_43 : f32 to vector<2x1xf32>
    %128 = arith.mulf %126, %127 : vector<2x1xf32>
    %129 = arith.mulf %3, %38 : vector<2x256xf32>
    %cst_44 = arith.constant dense<0.000000e+00> : vector<2xf32>
    %130 = vector.multi_reduction <add>, %129, %cst_44 [1] : vector<2x256xf32> to vector<2xf32>
    %131 = vector.shape_cast %130 : vector<2xf32> to vector<2x1xf32>
    %132 = arith.divf %131, %42 : vector<2x1xf32>
    %133 = arith.mulf %19, %29 : vector<2x256xf32>
    %cst_45 = arith.constant dense<0.000000e+00> : vector<2x128xf32>
    %134 = tpu.matmul %133, %43, %cst_45 {dimension_numbers = #tpu.dot_dimension_numbers<[1], [0], [0], [1], [0, 0, 1, 1], [], []>, precision = #tpu.contract_precision<fp32>} : vector<2x256xf32>, vector<256x128xf32>, vector<2x128xf32> -> vector<2x128xf32>
    %135 = vector.extract_strided_slice %134 {offsets = [0, 0], sizes = [2, 1], strides = [1, 1]} : vector<2x128xf32> to vector<2x1xf32>
    %136 = vector.extract_strided_slice %134 {offsets = [0, 1], sizes = [2, 1], strides = [1, 1]} : vector<2x128xf32> to vector<2x1xf32>
    %137 = vector.extract_strided_slice %134 {offsets = [0, 2], sizes = [2, 1], strides = [1, 1]} : vector<2x128xf32> to vector<2x1xf32>
    %138 = vector.extract_strided_slice %134 {offsets = [0, 3], sizes = [2, 1], strides = [1, 1]} : vector<2x128xf32> to vector<2x1xf32>
    %139 = vector.extract_strided_slice %134 {offsets = [0, 4], sizes = [2, 1], strides = [1, 1]} : vector<2x128xf32> to vector<2x1xf32>
    %cst_46 = arith.constant 9.99999997E-7 : f32
    %140 = vector.broadcast %cst_46 : f32 to vector<2x1xf32>
    %141 = arith.addf %135, %140 : vector<2x1xf32>
    %cst_47 = arith.constant 1.000000e+00 : f32
    %142 = vector.broadcast %cst_47 : f32 to vector<2x1xf32>
    %143 = arith.divf %142, %141 : vector<2x1xf32>
    %cst_48 = arith.constant 1.200000e-04 : f32
    %144 = vector.broadcast %cst_48 : f32 to vector<2x1xf32>
    %145 = arith.addf %136, %144 : vector<2x1xf32>
    %146 = arith.mulf %145, %143 : vector<2x1xf32>
    %cst_49 = arith.constant 1.200000e-04 : f32
    %147 = vector.broadcast %cst_49 : f32 to vector<2x1xf32>
    %148 = arith.addf %138, %147 : vector<2x1xf32>
    %149 = arith.mulf %148, %143 : vector<2x1xf32>
    %cst_50 = arith.constant 2.000000e+00 : f32
    %150 = vector.broadcast %cst_50 : f32 to vector<2x1xf32>
    %151 = arith.mulf %150, %146 : vector<2x1xf32>
    %152 = arith.mulf %151, %136 : vector<2x1xf32>
    %153 = arith.subf %137, %152 : vector<2x1xf32>
    %154 = arith.mulf %146, %146 : vector<2x1xf32>
    %155 = arith.mulf %154, %135 : vector<2x1xf32>
    %156 = arith.addf %153, %155 : vector<2x1xf32>
    %cst_51 = arith.constant 2.000000e+00 : f32
    %157 = vector.broadcast %cst_51 : f32 to vector<2x1xf32>
    %158 = arith.mulf %157, %146 : vector<2x1xf32>
    %cst_52 = arith.constant 1.200000e+02 : f32
    %159 = vector.broadcast %cst_52 : f32 to vector<2x1xf32>
    %160 = arith.mulf %158, %159 : vector<2x1xf32>
    %cst_53 = arith.constant 1.240000e+03 : f32
    %161 = vector.broadcast %cst_53 : f32 to vector<2x1xf32>
    %162 = arith.subf %161, %160 : vector<2x1xf32>
    %cst_54 = arith.constant 1.600000e+01 : f32
    %163 = vector.broadcast %cst_54 : f32 to vector<2x1xf32>
    %164 = arith.mulf %163, %146 : vector<2x1xf32>
    %165 = arith.mulf %164, %146 : vector<2x1xf32>
    %166 = arith.addf %162, %165 : vector<2x1xf32>
    %cst_55 = arith.constant 9.99999997E-7 : f32
    %167 = vector.broadcast %cst_55 : f32 to vector<2x1xf32>
    %168 = arith.mulf %167, %166 : vector<2x1xf32>
    %169 = arith.addf %156, %168 : vector<2x1xf32>
    %170 = arith.mulf %169, %143 : vector<2x1xf32>
    %cst_56 = arith.constant 2.000000e+00 : f32
    %171 = vector.broadcast %cst_56 : f32 to vector<2x1xf32>
    %172 = arith.mulf %171, %149 : vector<2x1xf32>
    %173 = arith.mulf %172, %138 : vector<2x1xf32>
    %174 = arith.subf %139, %173 : vector<2x1xf32>
    %175 = arith.mulf %149, %149 : vector<2x1xf32>
    %176 = arith.mulf %175, %135 : vector<2x1xf32>
    %177 = arith.addf %174, %176 : vector<2x1xf32>
    %cst_57 = arith.constant 2.000000e+00 : f32
    %178 = vector.broadcast %cst_57 : f32 to vector<2x1xf32>
    %179 = arith.mulf %178, %149 : vector<2x1xf32>
    %cst_58 = arith.constant 1.200000e+02 : f32
    %180 = vector.broadcast %cst_58 : f32 to vector<2x1xf32>
    %181 = arith.mulf %179, %180 : vector<2x1xf32>
    %cst_59 = arith.constant 1.240000e+03 : f32
    %182 = vector.broadcast %cst_59 : f32 to vector<2x1xf32>
    %183 = arith.subf %182, %181 : vector<2x1xf32>
    %cst_60 = arith.constant 1.600000e+01 : f32
    %184 = vector.broadcast %cst_60 : f32 to vector<2x1xf32>
    %185 = arith.mulf %184, %149 : vector<2x1xf32>
    %186 = arith.mulf %185, %149 : vector<2x1xf32>
    %187 = arith.addf %183, %186 : vector<2x1xf32>
    %cst_61 = arith.constant 9.99999997E-7 : f32
    %188 = vector.broadcast %cst_61 : f32 to vector<2x1xf32>
    %189 = arith.mulf %188, %187 : vector<2x1xf32>
    %190 = arith.addf %177, %189 : vector<2x1xf32>
    %191 = arith.mulf %190, %143 : vector<2x1xf32>
    %cst_62 = arith.constant 0.000000e+00 : f32
    %192 = vector.broadcast %cst_62 : f32 to vector<2x1xf32>
    %193 = arith.maximumf %170, %192 : vector<2x1xf32>
    %194 = math.sqrt %193 : vector<2x1xf32>
    %cst_63 = arith.constant 0.000000e+00 : f32
    %195 = vector.broadcast %cst_63 : f32 to vector<2x1xf32>
    %196 = arith.maximumf %191, %195 : vector<2x1xf32>
    %197 = math.sqrt %196 : vector<2x1xf32>
    %cst_64 = arith.constant 1.600000e+01 : f32
    %198 = vector.broadcast %cst_64 : f32 to vector<2x1xf32>
    %199 = arith.divf %146, %198 : vector<2x1xf32>
    %cst_65 = arith.constant 2.000000e+00 : f32
    %200 = vector.broadcast %cst_65 : f32 to vector<2x1xf32>
    %201 = arith.mulf %199, %200 : vector<2x1xf32>
    %cst_66 = arith.constant 1.000000e+00 : f32
    %202 = vector.broadcast %cst_66 : f32 to vector<2x1xf32>
    %203 = arith.subf %201, %202 : vector<2x1xf32>
    %cst_67 = arith.constant 1.600000e+01 : f32
    %204 = vector.broadcast %cst_67 : f32 to vector<2x1xf32>
    %205 = arith.divf %149, %204 : vector<2x1xf32>
    %cst_68 = arith.constant 2.000000e+00 : f32
    %206 = vector.broadcast %cst_68 : f32 to vector<2x1xf32>
    %207 = arith.mulf %205, %206 : vector<2x1xf32>
    %cst_69 = arith.constant 1.000000e+00 : f32
    %208 = vector.broadcast %cst_69 : f32 to vector<2x1xf32>
    %209 = arith.subf %207, %208 : vector<2x1xf32>
    %cst_70 = arith.constant 1.600000e+01 : f32
    %210 = vector.broadcast %cst_70 : f32 to vector<2x1xf32>
    %211 = arith.divf %194, %210 : vector<2x1xf32>
    %cst_71 = arith.constant 2.000000e+00 : f32
    %212 = vector.broadcast %cst_71 : f32 to vector<2x1xf32>
    %213 = arith.mulf %211, %212 : vector<2x1xf32>
    %cst_72 = arith.constant 1.600000e+01 : f32
    %214 = vector.broadcast %cst_72 : f32 to vector<2x1xf32>
    %215 = arith.divf %197, %214 : vector<2x1xf32>
    %cst_73 = arith.constant 2.000000e+00 : f32
    %216 = vector.broadcast %cst_73 : f32 to vector<2x1xf32>
    %217 = arith.mulf %215, %216 : vector<2x1xf32>
    %218 = arith.mulf %5, %38 : vector<2x256xf32>
    %cst_74 = arith.constant dense<0.000000e+00> : vector<2xf32>
    %219 = vector.multi_reduction <add>, %218, %cst_74 [1] : vector<2x256xf32> to vector<2xf32>
    %220 = vector.shape_cast %219 : vector<2xf32> to vector<2x1xf32>
    %221 = arith.divf %220, %42 : vector<2x1xf32>
    %222 = arith.mulf %21, %29 : vector<2x256xf32>
    %cst_75 = arith.constant dense<0.000000e+00> : vector<2x128xf32>
    %223 = tpu.matmul %222, %43, %cst_75 {dimension_numbers = #tpu.dot_dimension_numbers<[1], [0], [0], [1], [0, 0, 1, 1], [], []>, precision = #tpu.contract_precision<fp32>} : vector<2x256xf32>, vector<256x128xf32>, vector<2x128xf32> -> vector<2x128xf32>
    %224 = vector.extract_strided_slice %223 {offsets = [0, 0], sizes = [2, 1], strides = [1, 1]} : vector<2x128xf32> to vector<2x1xf32>
    %225 = vector.extract_strided_slice %223 {offsets = [0, 1], sizes = [2, 1], strides = [1, 1]} : vector<2x128xf32> to vector<2x1xf32>
    %226 = vector.extract_strided_slice %223 {offsets = [0, 2], sizes = [2, 1], strides = [1, 1]} : vector<2x128xf32> to vector<2x1xf32>
    %227 = vector.extract_strided_slice %223 {offsets = [0, 3], sizes = [2, 1], strides = [1, 1]} : vector<2x128xf32> to vector<2x1xf32>
    %228 = vector.extract_strided_slice %223 {offsets = [0, 4], sizes = [2, 1], strides = [1, 1]} : vector<2x128xf32> to vector<2x1xf32>
    %cst_76 = arith.constant 9.99999997E-7 : f32
    %229 = vector.broadcast %cst_76 : f32 to vector<2x1xf32>
    %230 = arith.addf %224, %229 : vector<2x1xf32>
    %cst_77 = arith.constant 1.000000e+00 : f32
    %231 = vector.broadcast %cst_77 : f32 to vector<2x1xf32>
    %232 = arith.divf %231, %230 : vector<2x1xf32>
    %cst_78 = arith.constant 1.200000e-04 : f32
    %233 = vector.broadcast %cst_78 : f32 to vector<2x1xf32>
    %234 = arith.addf %225, %233 : vector<2x1xf32>
    %235 = arith.mulf %234, %232 : vector<2x1xf32>
    %cst_79 = arith.constant 1.200000e-04 : f32
    %236 = vector.broadcast %cst_79 : f32 to vector<2x1xf32>
    %237 = arith.addf %227, %236 : vector<2x1xf32>
    %238 = arith.mulf %237, %232 : vector<2x1xf32>
    %cst_80 = arith.constant 2.000000e+00 : f32
    %239 = vector.broadcast %cst_80 : f32 to vector<2x1xf32>
    %240 = arith.mulf %239, %235 : vector<2x1xf32>
    %241 = arith.mulf %240, %225 : vector<2x1xf32>
    %242 = arith.subf %226, %241 : vector<2x1xf32>
    %243 = arith.mulf %235, %235 : vector<2x1xf32>
    %244 = arith.mulf %243, %224 : vector<2x1xf32>
    %245 = arith.addf %242, %244 : vector<2x1xf32>
    %cst_81 = arith.constant 2.000000e+00 : f32
    %246 = vector.broadcast %cst_81 : f32 to vector<2x1xf32>
    %247 = arith.mulf %246, %235 : vector<2x1xf32>
    %cst_82 = arith.constant 1.200000e+02 : f32
    %248 = vector.broadcast %cst_82 : f32 to vector<2x1xf32>
    %249 = arith.mulf %247, %248 : vector<2x1xf32>
    %cst_83 = arith.constant 1.240000e+03 : f32
    %250 = vector.broadcast %cst_83 : f32 to vector<2x1xf32>
    %251 = arith.subf %250, %249 : vector<2x1xf32>
    %cst_84 = arith.constant 1.600000e+01 : f32
    %252 = vector.broadcast %cst_84 : f32 to vector<2x1xf32>
    %253 = arith.mulf %252, %235 : vector<2x1xf32>
    %254 = arith.mulf %253, %235 : vector<2x1xf32>
    %255 = arith.addf %251, %254 : vector<2x1xf32>
    %cst_85 = arith.constant 9.99999997E-7 : f32
    %256 = vector.broadcast %cst_85 : f32 to vector<2x1xf32>
    %257 = arith.mulf %256, %255 : vector<2x1xf32>
    %258 = arith.addf %245, %257 : vector<2x1xf32>
    %259 = arith.mulf %258, %232 : vector<2x1xf32>
    %cst_86 = arith.constant 2.000000e+00 : f32
    %260 = vector.broadcast %cst_86 : f32 to vector<2x1xf32>
    %261 = arith.mulf %260, %238 : vector<2x1xf32>
    %262 = arith.mulf %261, %227 : vector<2x1xf32>
    %263 = arith.subf %228, %262 : vector<2x1xf32>
    %264 = arith.mulf %238, %238 : vector<2x1xf32>
    %265 = arith.mulf %264, %224 : vector<2x1xf32>
    %266 = arith.addf %263, %265 : vector<2x1xf32>
    %cst_87 = arith.constant 2.000000e+00 : f32
    %267 = vector.broadcast %cst_87 : f32 to vector<2x1xf32>
    %268 = arith.mulf %267, %238 : vector<2x1xf32>
    %cst_88 = arith.constant 1.200000e+02 : f32
    %269 = vector.broadcast %cst_88 : f32 to vector<2x1xf32>
    %270 = arith.mulf %268, %269 : vector<2x1xf32>
    %cst_89 = arith.constant 1.240000e+03 : f32
    %271 = vector.broadcast %cst_89 : f32 to vector<2x1xf32>
    %272 = arith.subf %271, %270 : vector<2x1xf32>
    %cst_90 = arith.constant 1.600000e+01 : f32
    %273 = vector.broadcast %cst_90 : f32 to vector<2x1xf32>
    %274 = arith.mulf %273, %238 : vector<2x1xf32>
    %275 = arith.mulf %274, %238 : vector<2x1xf32>
    %276 = arith.addf %272, %275 : vector<2x1xf32>
    %cst_91 = arith.constant 9.99999997E-7 : f32
    %277 = vector.broadcast %cst_91 : f32 to vector<2x1xf32>
    %278 = arith.mulf %277, %276 : vector<2x1xf32>
    %279 = arith.addf %266, %278 : vector<2x1xf32>
    %280 = arith.mulf %279, %232 : vector<2x1xf32>
    %cst_92 = arith.constant 0.000000e+00 : f32
    %281 = vector.broadcast %cst_92 : f32 to vector<2x1xf32>
    %282 = arith.maximumf %259, %281 : vector<2x1xf32>
    %283 = math.sqrt %282 : vector<2x1xf32>
    %cst_93 = arith.constant 0.000000e+00 : f32
    %284 = vector.broadcast %cst_93 : f32 to vector<2x1xf32>
    %285 = arith.maximumf %280, %284 : vector<2x1xf32>
    %286 = math.sqrt %285 : vector<2x1xf32>
    %cst_94 = arith.constant 1.600000e+01 : f32
    %287 = vector.broadcast %cst_94 : f32 to vector<2x1xf32>
    %288 = arith.divf %235, %287 : vector<2x1xf32>
    %cst_95 = arith.constant 2.000000e+00 : f32
    %289 = vector.broadcast %cst_95 : f32 to vector<2x1xf32>
    %290 = arith.mulf %288, %289 : vector<2x1xf32>
    %cst_96 = arith.constant 1.000000e+00 : f32
    %291 = vector.broadcast %cst_96 : f32 to vector<2x1xf32>
    %292 = arith.subf %290, %291 : vector<2x1xf32>
    %cst_97 = arith.constant 1.600000e+01 : f32
    %293 = vector.broadcast %cst_97 : f32 to vector<2x1xf32>
    %294 = arith.divf %238, %293 : vector<2x1xf32>
    %cst_98 = arith.constant 2.000000e+00 : f32
    %295 = vector.broadcast %cst_98 : f32 to vector<2x1xf32>
    %296 = arith.mulf %294, %295 : vector<2x1xf32>
    %cst_99 = arith.constant 1.000000e+00 : f32
    %297 = vector.broadcast %cst_99 : f32 to vector<2x1xf32>
    %298 = arith.subf %296, %297 : vector<2x1xf32>
    %cst_100 = arith.constant 1.600000e+01 : f32
    %299 = vector.broadcast %cst_100 : f32 to vector<2x1xf32>
    %300 = arith.divf %283, %299 : vector<2x1xf32>
    %cst_101 = arith.constant 2.000000e+00 : f32
    %301 = vector.broadcast %cst_101 : f32 to vector<2x1xf32>
    %302 = arith.mulf %300, %301 : vector<2x1xf32>
    %cst_102 = arith.constant 1.600000e+01 : f32
    %303 = vector.broadcast %cst_102 : f32 to vector<2x1xf32>
    %304 = arith.divf %286, %303 : vector<2x1xf32>
    %cst_103 = arith.constant 2.000000e+00 : f32
    %305 = vector.broadcast %cst_103 : f32 to vector<2x1xf32>
    %306 = arith.mulf %304, %305 : vector<2x1xf32>
    %307 = arith.mulf %7, %38 : vector<2x256xf32>
    %cst_104 = arith.constant dense<0.000000e+00> : vector<2xf32>
    %308 = vector.multi_reduction <add>, %307, %cst_104 [1] : vector<2x256xf32> to vector<2xf32>
    %309 = vector.shape_cast %308 : vector<2xf32> to vector<2x1xf32>
    %310 = arith.divf %309, %42 : vector<2x1xf32>
    %311 = arith.mulf %23, %29 : vector<2x256xf32>
    %cst_105 = arith.constant dense<0.000000e+00> : vector<2x128xf32>
    %312 = tpu.matmul %311, %43, %cst_105 {dimension_numbers = #tpu.dot_dimension_numbers<[1], [0], [0], [1], [0, 0, 1, 1], [], []>, precision = #tpu.contract_precision<fp32>} : vector<2x256xf32>, vector<256x128xf32>, vector<2x128xf32> -> vector<2x128xf32>
    %313 = vector.extract_strided_slice %312 {offsets = [0, 0], sizes = [2, 1], strides = [1, 1]} : vector<2x128xf32> to vector<2x1xf32>
    %314 = vector.extract_strided_slice %312 {offsets = [0, 1], sizes = [2, 1], strides = [1, 1]} : vector<2x128xf32> to vector<2x1xf32>
    %315 = vector.extract_strided_slice %312 {offsets = [0, 2], sizes = [2, 1], strides = [1, 1]} : vector<2x128xf32> to vector<2x1xf32>
    %316 = vector.extract_strided_slice %312 {offsets = [0, 3], sizes = [2, 1], strides = [1, 1]} : vector<2x128xf32> to vector<2x1xf32>
    %317 = vector.extract_strided_slice %312 {offsets = [0, 4], sizes = [2, 1], strides = [1, 1]} : vector<2x128xf32> to vector<2x1xf32>
    %cst_106 = arith.constant 9.99999997E-7 : f32
    %318 = vector.broadcast %cst_106 : f32 to vector<2x1xf32>
    %319 = arith.addf %313, %318 : vector<2x1xf32>
    %cst_107 = arith.constant 1.000000e+00 : f32
    %320 = vector.broadcast %cst_107 : f32 to vector<2x1xf32>
    %321 = arith.divf %320, %319 : vector<2x1xf32>
    %cst_108 = arith.constant 1.200000e-04 : f32
    %322 = vector.broadcast %cst_108 : f32 to vector<2x1xf32>
    %323 = arith.addf %314, %322 : vector<2x1xf32>
    %324 = arith.mulf %323, %321 : vector<2x1xf32>
    %cst_109 = arith.constant 1.200000e-04 : f32
    %325 = vector.broadcast %cst_109 : f32 to vector<2x1xf32>
    %326 = arith.addf %316, %325 : vector<2x1xf32>
    %327 = arith.mulf %326, %321 : vector<2x1xf32>
    %cst_110 = arith.constant 2.000000e+00 : f32
    %328 = vector.broadcast %cst_110 : f32 to vector<2x1xf32>
    %329 = arith.mulf %328, %324 : vector<2x1xf32>
    %330 = arith.mulf %329, %314 : vector<2x1xf32>
    %331 = arith.subf %315, %330 : vector<2x1xf32>
    %332 = arith.mulf %324, %324 : vector<2x1xf32>
    %333 = arith.mulf %332, %313 : vector<2x1xf32>
    %334 = arith.addf %331, %333 : vector<2x1xf32>
    %cst_111 = arith.constant 2.000000e+00 : f32
    %335 = vector.broadcast %cst_111 : f32 to vector<2x1xf32>
    %336 = arith.mulf %335, %324 : vector<2x1xf32>
    %cst_112 = arith.constant 1.200000e+02 : f32
    %337 = vector.broadcast %cst_112 : f32 to vector<2x1xf32>
    %338 = arith.mulf %336, %337 : vector<2x1xf32>
    %cst_113 = arith.constant 1.240000e+03 : f32
    %339 = vector.broadcast %cst_113 : f32 to vector<2x1xf32>
    %340 = arith.subf %339, %338 : vector<2x1xf32>
    %cst_114 = arith.constant 1.600000e+01 : f32
    %341 = vector.broadcast %cst_114 : f32 to vector<2x1xf32>
    %342 = arith.mulf %341, %324 : vector<2x1xf32>
    %343 = arith.mulf %342, %324 : vector<2x1xf32>
    %344 = arith.addf %340, %343 : vector<2x1xf32>
    %cst_115 = arith.constant 9.99999997E-7 : f32
    %345 = vector.broadcast %cst_115 : f32 to vector<2x1xf32>
    %346 = arith.mulf %345, %344 : vector<2x1xf32>
    %347 = arith.addf %334, %346 : vector<2x1xf32>
    %348 = arith.mulf %347, %321 : vector<2x1xf32>
    %cst_116 = arith.constant 2.000000e+00 : f32
    %349 = vector.broadcast %cst_116 : f32 to vector<2x1xf32>
    %350 = arith.mulf %349, %327 : vector<2x1xf32>
    %351 = arith.mulf %350, %316 : vector<2x1xf32>
    %352 = arith.subf %317, %351 : vector<2x1xf32>
    %353 = arith.mulf %327, %327 : vector<2x1xf32>
    %354 = arith.mulf %353, %313 : vector<2x1xf32>
    %355 = arith.addf %352, %354 : vector<2x1xf32>
    %cst_117 = arith.constant 2.000000e+00 : f32
    %356 = vector.broadcast %cst_117 : f32 to vector<2x1xf32>
    %357 = arith.mulf %356, %327 : vector<2x1xf32>
    %cst_118 = arith.constant 1.200000e+02 : f32
    %358 = vector.broadcast %cst_118 : f32 to vector<2x1xf32>
    %359 = arith.mulf %357, %358 : vector<2x1xf32>
    %cst_119 = arith.constant 1.240000e+03 : f32
    %360 = vector.broadcast %cst_119 : f32 to vector<2x1xf32>
    %361 = arith.subf %360, %359 : vector<2x1xf32>
    %cst_120 = arith.constant 1.600000e+01 : f32
    %362 = vector.broadcast %cst_120 : f32 to vector<2x1xf32>
    %363 = arith.mulf %362, %327 : vector<2x1xf32>
    %364 = arith.mulf %363, %327 : vector<2x1xf32>
    %365 = arith.addf %361, %364 : vector<2x1xf32>
    %cst_121 = arith.constant 9.99999997E-7 : f32
    %366 = vector.broadcast %cst_121 : f32 to vector<2x1xf32>
    %367 = arith.mulf %366, %365 : vector<2x1xf32>
    %368 = arith.addf %355, %367 : vector<2x1xf32>
    %369 = arith.mulf %368, %321 : vector<2x1xf32>
    %cst_122 = arith.constant 0.000000e+00 : f32
    %370 = vector.broadcast %cst_122 : f32 to vector<2x1xf32>
    %371 = arith.maximumf %348, %370 : vector<2x1xf32>
    %372 = math.sqrt %371 : vector<2x1xf32>
    %cst_123 = arith.constant 0.000000e+00 : f32
    %373 = vector.broadcast %cst_123 : f32 to vector<2x1xf32>
    %374 = arith.maximumf %369, %373 : vector<2x1xf32>
    %375 = math.sqrt %374 : vector<2x1xf32>
    %cst_124 = arith.constant 1.600000e+01 : f32
    %376 = vector.broadcast %cst_124 : f32 to vector<2x1xf32>
    %377 = arith.divf %324, %376 : vector<2x1xf32>
    %cst_125 = arith.constant 2.000000e+00 : f32
    %378 = vector.broadcast %cst_125 : f32 to vector<2x1xf32>
    %379 = arith.mulf %377, %378 : vector<2x1xf32>
    %cst_126 = arith.constant 1.000000e+00 : f32
    %380 = vector.broadcast %cst_126 : f32 to vector<2x1xf32>
    %381 = arith.subf %379, %380 : vector<2x1xf32>
    %cst_127 = arith.constant 1.600000e+01 : f32
    %382 = vector.broadcast %cst_127 : f32 to vector<2x1xf32>
    %383 = arith.divf %327, %382 : vector<2x1xf32>
    %cst_128 = arith.constant 2.000000e+00 : f32
    %384 = vector.broadcast %cst_128 : f32 to vector<2x1xf32>
    %385 = arith.mulf %383, %384 : vector<2x1xf32>
    %cst_129 = arith.constant 1.000000e+00 : f32
    %386 = vector.broadcast %cst_129 : f32 to vector<2x1xf32>
    %387 = arith.subf %385, %386 : vector<2x1xf32>
    %cst_130 = arith.constant 1.600000e+01 : f32
    %388 = vector.broadcast %cst_130 : f32 to vector<2x1xf32>
    %389 = arith.divf %372, %388 : vector<2x1xf32>
    %cst_131 = arith.constant 2.000000e+00 : f32
    %390 = vector.broadcast %cst_131 : f32 to vector<2x1xf32>
    %391 = arith.mulf %389, %390 : vector<2x1xf32>
    %cst_132 = arith.constant 1.600000e+01 : f32
    %392 = vector.broadcast %cst_132 : f32 to vector<2x1xf32>
    %393 = arith.divf %375, %392 : vector<2x1xf32>
    %cst_133 = arith.constant 2.000000e+00 : f32
    %394 = vector.broadcast %cst_133 : f32 to vector<2x1xf32>
    %395 = arith.mulf %393, %394 : vector<2x1xf32>
    %396 = arith.mulf %9, %38 : vector<2x256xf32>
    %cst_134 = arith.constant dense<0.000000e+00> : vector<2xf32>
    %397 = vector.multi_reduction <add>, %396, %cst_134 [1] : vector<2x256xf32> to vector<2xf32>
    %398 = vector.shape_cast %397 : vector<2xf32> to vector<2x1xf32>
    %399 = arith.divf %398, %42 : vector<2x1xf32>
    %400 = tpu.concatenate %132, %221, %310, %399, %114, %203, %292, %381, %120, %209, %298, %387, %124, %213, %302, %391 in 1 : vector<2x1xf32>, vector<2x1xf32>, vector<2x1xf32>, vector<2x1xf32>, vector<2x1xf32>, vector<2x1xf32>, vector<2x1xf32>, vector<2x1xf32>, vector<2x1xf32>, vector<2x1xf32>, vector<2x1xf32>, vector<2x1xf32>, vector<2x1xf32>, vector<2x1xf32>, vector<2x1xf32>, vector<2x1xf32> -> vector<2x16xf32>
    %401 = tpu.concatenate %128, %217, %306, %395 in 1 : vector<2x1xf32>, vector<2x1xf32>, vector<2x1xf32>, vector<2x1xf32> -> vector<2x4xf32>
    %402 = tpu.concatenate %400, %401 in 1 : vector<2x16xf32>, vector<2x4xf32> -> vector<2x20xf32>
    %c0_135 = arith.constant 0 : index
    %c0_136 = arith.constant 0 : index
    %403 = vector.load %arg3[%c0_135, %c0_136] : memref<2x20xf32, #tpu.memory_space<vmem>>, vector<2x20xf32>
    tpu.vector_store %arg3[%c0_135, %c0_136], %402 {strides = array<i32>} : memref<2x20xf32, #tpu.memory_space<vmem>>, vector<2x20xf32>,
    return
  }
  func.func @transform_0(%arg0: i32) -> (i32, i32, i32) {
    %c0_i32 = arith.constant 0 : i32
    %c0_i32_0 = arith.constant 0 : i32
    %c0_i32_1 = arith.constant 0 : i32
    return %arg0, %c0_i32, %c0_i32_0 : i32, i32, i32
  }
  func.func @transform_1(%arg0: i32) -> (i32, i32) {
    %c0_i32 = arith.constant 0 : i32
    %c0_i32_0 = arith.constant 0 : i32
    %c0_i32_1 = arith.constant 0 : i32
    return %c0_i32, %c0_i32_0 : i32, i32
  }
  func.func @transform_2(%arg0: i32) -> (i32, i32) {
    %c0_i32 = arith.constant 0 : i32
    %c0_i32_0 = arith.constant 0 : i32
    return %arg0, %c0_i32 : i32, i32
  }
}

</mosaic_0001>

<bundles_post_ra>
// kernel: tpu_custom_call.1
= control target key start
LH: loop header
LB: loop body
LE: loop exit
PB: predicated region body
PF: predicated region fallthrough
CT: control target
= control target key end

     0   :  { %7 = vsyncpa [#allocation3], 0  ;;  %s7526_s0 = inlined_call_operand.vmem [shape: f32[2,5,256], index: 0, kind: input, shape index: {}]   ;;  %s7527_s1 = inlined_call_operand.hbm [shape: f32[256,128], index: 1, kind: input, shape index: {}]   ;;  %s7528_s2 = inlined_call_operand.hbm [shape: f32[2,20], index: 2, kind: output, shape index: {}]  }
   0x1   :  { %8 = vsyncpa [#allocation4], 0  ;;  %s6187_s9 = smov [#allocation2]   ;;  %s6139_s13 = scalar_lea.hbm %s7527_s1, 4096 }
   0x2   :  { %s16_s10 = sshll.u32 %s6187_s9, 4  ;;  %p6140_p0 = scmp.ne.s32.totalorder %s7527_s1, %s6139_s13  ;;  %s17_s10 = int_to_ptr.vmem [resolvable:$true] %s16_s10 }
   0x3   :  { %p6143_p1 = scmp.lt.u32.totalorder %s6139_s13, %s7527_s1 }
   0x5   :  { %p6145_p2 = pnand %p6143_p1, %p6140_p0 }
   0x7   :  { %6148 = shalt.err (!%p6145_p2)
}
   0x8   :  { %s6149_s18 = scalar_lea.vmem %s17_s10, 4096  ;;  %p6154_p4 = scmp.lt.s32.totalorder %s17_s10, %s17_s10 }
   0x9   :  { %p6150_p3 = scmp.ne.s32.totalorder %s17_s10, %s6149_s18  ;;  %p6155_p5 = scmp.lt.s32.totalorder %s6149_s18, %s6149_s18 }
   0xb   :  { %p6156_p6 = por %p6155_p5, %p6154_p4 }
   0xd   :  { %p6157_p7 = pnand %p6156_p6, %p6150_p3 }
   0xf   :  { %6160 = shalt.err (!%p6157_p7)
}
  0x10   :  { %s6188_s19 = smov 128   ;;  %s6189_s20 = smov 8  }
  0x11   :  { %22 = dma.hbm_to_vmem [thread:$0]  %s7527_s1, 4096, %s17_s10, [#allocation3], %s6188_s19, %s6188_s19, %s6189_s20  }
  0x12   :  { %6183 = dma.done.wait [#allocation3], 4096  }
  0x13   :  { %6184 = vsyncadd [#allocation3], 4294963200  ;;  %v165_v0 = vld [vmem:[#allocation2 + $0x80] sm:$0xff]  ;;  %v166_v1 = vld [vmem:[#allocation2 + $0x88] sm:$0xff]  ;;  %s6191_s14 = smov 3   ;;  %vm142_vm0 = vcmask 1041408  }
  0x14   :  { %v149_v2 = vld [vmem:[#allocation2] sm:$0xff]  ;;  %v259_v3 = vand.u32 4294901760, %v165_v0  ;;  %v262_v4 = vand.u32 4294901760, %v166_v1  ;;  %v150_v5 = vld [vmem:[#allocation2 + $0x8] sm:$0xff]  ;;  %v167_v7 = vld [vmem:[#allocation2 + $0x90] sm:$0xff]  ;;  %s6193_s7 = smov 4  }
  0x15   :  { %v211_v6 = vand.u32 4294901760, %v149_v2  ;;  %v168_v8 = vld [vmem:[#allocation2 + $0x98] sm:$0xff]  ;;  %v214_v9 = vand.u32 4294901760, %v150_v5  ;;  %v265_v10 = vand.u32 4294901760, %v167_v7  ;;  %v151_v16 = vld [vmem:[#allocation2 + $0x10] sm:$0xff]  ;;  %v169_v38 = vld [vmem:[#allocation2 + $0xa0] sm:$0xff] }
  0x16   :  { %v268_v11 = vand.u32 4294901760, %v168_v8  ;;  %v6236_v12 = vpack.c.bf16 %v262_v4, %v259_v3  ;;  %v6238_v13 = vsub.f32 %v165_v0, %v259_v3  ;;  %v6240_v14 = vsub.f32 %v166_v1, %v262_v4  ;;  %v152_v17 = vld [vmem:[#allocation2 + $0x18] sm:$0xff]  ;;  %v170_v39 = vld [vmem:[#allocation2 + $0xa8] sm:$0xff]  ;;  %v153_v44 = vld [vmem:[#allocation2 + $0x20] sm:$0xff]  ;;  %s6194_s8 = smov 2   ;;  %s6195_s9 = smov 124  }
  0x17   :  { %v6242_v15 = vsub.f32 %v149_v2, %v211_v6  ;;  %v6244_v18 = vpack.c.bf16 %v214_v9, %v211_v6  ;;  %v6246_v19 = vsub.f32 %v150_v5, %v214_v9  ;;  %v6250_v21 = vsub.f32 %v167_v7, %v265_v10  ;;  %v154_v53 = vld [vmem:[#allocation2 + $0x28] sm:$0xff]  ;;  %v171_v58 = vld [vmem:[#allocation2 + $0xb0] sm:$0xff]  ;;  %v172_v59 = vld [vmem:[#allocation2 + $0xb8] sm:$0xff]  ;;  %s6196_s10 = smov 125   ;;  %s6197_s11 = smov 126  }
  0x18   :  { %v6248_v20 = vpack.c.bf16 %v268_v11, %v265_v10  ;;  %5283 = vmatprep.subr.bf16.mxu0 %v6236_v12  ;;  %v7549_v22 = vand.u32 4294901760, %v6238_v13  ;;  %v7548_v23 = vand.u32 4294901760, %v6240_v14  ;;  %v6256_v25 = vsub.f32 %v168_v8, %v268_v11  ;;  %s6198_s12 = smov 5   ;;  %s6199_s13 = smov 127  }
  0x19   :  { %v7546_v24 = vand.u32 4294901760, %v6242_v15  ;;  %5285 = vmatpush3.bf16.msra.mxu0 %v6244_v18  ;;  %v7544_v26 = vand.u32 4294901760, %v6246_v19  ;;  %v7543_v27 = vand.u32 4294901760, %v6250_v21  ;;  %v217_v28 = vand.u32 4294901760, %v151_v16  ;;  %s6200_s15 = smov 6   ;;  %s6202_s16 = smov 10  }
  0x1a   :  { %v220_v29 = vand.u32 4294901760, %v152_v17  ;;  %v438_v30 = vsub.f32 %v6238_v13, %v7549_v22  ;;  %v445_v31 = vsub.f32 %v6240_v14, %v7548_v23  ;;  %5287 = vmatprep.subr.bf16.mxu0 %v6248_v20  ;;  %v7542_v33 = vand.u32 4294901760, %v6256_v25  ;;  %v162_v23 = vld [vmem:[#allocation2 + $0x68] sm:$0xff]  ;;  %s6203_s17 = smov 12   ;;  %s6204_s18 = smov 11  }
  0x1b   :  { %v326_v32 = vsub.f32 %v6242_v15, %v7546_v24  ;;  %v333_v34 = vsub.f32 %v6246_v19, %v7544_v26  ;;  %v452_v35 = vsub.f32 %v6250_v21, %v7543_v27  ;;  %v6280_v37 = vsub.f32 %v151_v16, %v217_v28  ;;  %v155_v16 = vld [vmem:[#allocation2 + $0x30] sm:$0xff]  ;;  %s6205_s19 = smov 13   ;;  %s6207_s21 = smov [#allocation5]  }
  0x1c   :  { %v6278_v36 = vpack.c.bf16 %v220_v29, %v217_v28  ;;  %v439_v40 = vand.u32 4294901760, %v438_v30  ;;  %v446_v41 = vand.u32 4294901760, %v445_v31  ;;  %v459_v43 = vsub.f32 %v6256_v25, %v7542_v33  ;;  %v156_v31 = vld [vmem:[#allocation2 + $0x38] sm:$0xff]  ;;  %v178_v33 = vld [vmem:[#allocation2 + $0xe8] sm:$0xff]  ;;  %s4414_s22 = sshll.u32 %s6207_s21, 4  ;;  %s4415_s22 = int_to_ptr.vmem [resolvable:$true] %s4414_s22 }
  0x1d   :  { %v327_v42 = vand.u32 4294901760, %v326_v32  ;;  %v334_v45 = vand.u32 4294901760, %v333_v34  ;;  %v453_v46 = vand.u32 4294901760, %v452_v35  ;;  %v7540_v47 = vand.u32 4294901760, %v6280_v37  ;;  %s6161_s1 = scalar_lea.vmem %s4415_s22, 32  ;;  %p6166_p9 = scmp.lt.s32.totalorder %s4415_s22, %s4415_s22 }
  0x1e   :  { %7636 = vst [vmem:[#allocation8_spill] sm:$0xff] %v6278_v36  ;;  %5289 = vmatpush3.bf16.msra.mxu0 %v6278_v36  ;;  %v6287_v48 = vsub.f32 %v152_v17, %v220_v29  ;;  %v6289_v49 = vpack.c.bf16 %v446_v41, %v439_v40  ;;  %v460_v50 = vand.u32 4294901760, %v459_v43  ;;  %v271_v51 = vand.u32 4294901760, %v169_v38  ;;  %p6162_p8 = scmp.ne.s32.totalorder %s4415_s22, %s6161_s1  ;;  %p6167_p10 = scmp.lt.s32.totalorder %s6161_s1, %s6161_s1 }
  0x1f   :  { %v274_v52 = vand.u32 4294901760, %v170_v39  ;;  %v6291_v54 = vpack.c.bf16 %v334_v45, %v327_v42  ;;  %v340_v55 = vsub.f32 %v6280_v37, %v7540_v47  ;;  %v223_v57 = vand.u32 4294901760, %v153_v44 }
  0x20   :  { %7637 = vst [vmem:[#allocation9_spill] sm:$0xff] %v6289_v49  ;;  %v7538_v56 = vand.u32 4294901760, %v6287_v48  ;;  %5315 = vmatprep.subr.bf16.mxu1 %v6289_v49  ;;  %v6298_v60 = vpack.c.bf16 %v460_v50, %v453_v46  ;;  %v6302_v62 = vsub.f32 %v169_v38, %v271_v51  ;;  %v226_v2 = vand.u32 4294901760, %v154_v53  ;;  %p6168_p11 = por %p6167_p10, %p6166_p9 }
  0x21   :  { %7638 = vst [vmem:[#allocation10_spill] sm:$0xff] %v6291_v54  ;;  %v6300_v61 = vpack.c.bf16 %v274_v52, %v271_v51  ;;  %v6304_v63 = vsub.f32 %v170_v39, %v274_v52  ;;  %5317 = vmatpush3.bf16.msra.mxu1 %v6291_v54  ;;  %v341_v0 = vand.u32 4294901760, %v340_v55  ;;  %v6310_v3 = vsub.f32 %v153_v44, %v223_v57  ;;  %v173_v39 = vld [vmem:[#allocation2 + $0xc0] sm:$0xff]  ;;  %v174_v51 = vld [vmem:[#allocation2 + $0xc8] sm:$0xff] }
  0x22   :  { %7639 = vst [vmem:[#allocation11_spill] sm:$0xff] %v6298_v60  ;;  %v347_v1 = vsub.f32 %v6287_v48, %v7538_v56  ;;  %5319 = vmatprep.subr.bf16.mxu1 %v6298_v60  ;;  %v7537_v4 = vand.u32 4294901760, %v6302_v62  ;;  %v277_v6 = vand.u32 4294901760, %v171_v58  ;;  %v280_v7 = vand.u32 4294901760, %v172_v59  ;;  %p6169_p12 = pnand %p6168_p11, %p6162_p8 }
  0x23   :  { %7640 = vst [vmem:[#allocation12_spill] sm:$0xff] %v6300_v61  ;;  %5291 = vmatprep.subr.bf16.mxu0 %v6300_v61  ;;  %v7536_v5 = vand.u32 4294901760, %v6304_v63  ;;  %v6316_v9 = vpack.c.bf16 %v226_v2, %v223_v57  ;;  %v7534_v10 = vand.u32 4294901760, %v6310_v3  ;;  %v6319_v11 = vsub.f32 %v154_v53, %v226_v2 }
  0x24   :  { %v348_v8 = vand.u32 4294901760, %v347_v1  ;;  %v466_v17 = vsub.f32 %v6302_v62, %v7537_v4  ;;  %v6327_v29 = vpack.c.bf16 %v280_v7, %v277_v6  ;;  %v6329_v30 = vsub.f32 %v171_v58, %v277_v6  ;;  %v157_v58 = vld [vmem:[#allocation2 + $0x40] sm:$0xff] }
  0x25   :  { %7641 = vst [vmem:[#allocation13_spill] sm:$0xff] %v6316_v9  ;;  %v473_v28 = vsub.f32 %v6304_v63, %v7536_v5  ;;  %5293 = vmatpush3.bf16.msra.mxu0 %v6316_v9  ;;  %v354_v34 = vsub.f32 %v6310_v3, %v7534_v10  ;;  %v7533_v35 = vand.u32 4294901760, %v6319_v11  ;;  %v6338_v38 = vsub.f32 %v172_v59, %v280_v7  ;;  %v160_v5 = vld [vmem:[#allocation2 + $0x58] sm:$0xff] }
  0x26   :  { %7642 = vst [vmem:[#allocation14_spill] sm:$0xff] %v6327_v29  ;;  %v6331_v32 = vpack.c.bf16 %v348_v8, %v341_v0  ;;  %v467_v40 = vand.u32 4294901760, %v466_v17  ;;  %5295 = vmatprep.subr.bf16.mxu0 %v6327_v29  ;;  %v7530_v42 = vand.u32 4294901760, %v6329_v30  ;;  %v229_v43 = vand.u32 4294901760, %v155_v16 }
  0x27   :  { %v474_v41 = vand.u32 4294901760, %v473_v28  ;;  %v355_v44 = vand.u32 4294901760, %v354_v34  ;;  %v361_v45 = vsub.f32 %v6319_v11, %v7533_v35  ;;  %v7529_v46 = vand.u32 4294901760, %v6338_v38 }
  0x28   :  { %7643 = vst [vmem:[#allocation15_spill] sm:$0xff] %v6331_v32  ;;  %5321 = vmatpush3.bf16.msra.mxu1 %v6331_v32  ;;  %v232_v50 = vand.u32 4294901760, %v156_v31  ;;  %v480_v53 = vsub.f32 %v6329_v30, %v7530_v42  ;;  %v6352_v55 = vsub.f32 %v155_v16, %v229_v43  ;;  %v283_v57 = vand.u32 4294901760, %v173_v39  ;;  %v158_v16 = vld [vmem:[#allocation2 + $0x48] sm:$0xff]  ;;  %v164_v32 = vld [vmem:[#allocation2 + $0x78] sm:$0xff] }
  0x29   :  { %v6347_v52 = vpack.c.bf16 %v474_v41, %v467_v40  ;;  %v362_v59 = vand.u32 4294901760, %v361_v45  ;;  %v487_v0 = vsub.f32 %v6338_v38, %v7529_v46  ;;  %v286_v8 = vand.u32 4294901760, %v174_v51  ;;  %v176_v46 = vld [vmem:[#allocation2 + $0xd8] sm:$0xff] }
  0x2a   :  { %v6357_v1 = vpack.c.bf16 %v232_v50, %v229_v43  ;;  %v6359_v2 = vsub.f32 %v156_v31, %v232_v50  ;;  %v481_v6 = vand.u32 4294901760, %v480_v53  ;;  %v7531_v7 = vand.u32 4294901760, %v6352_v55  ;;  %v175_v43 = vld [vmem:[#allocation2 + $0xd0] sm:$0xff] }
  0x2b   :  { %7644 = vst [vmem:[#allocation16_spill] sm:$0xff] %v6347_v52  ;;  %5323 = vmatprep.subr.bf16.mxu1 %v6347_v52  ;;  %v6363_v17 = vsub.f32 %v173_v39, %v283_v57  ;;  %v6365_v28 = vpack.c.bf16 %v362_v59, %v355_v44  ;;  %v488_v34 = vand.u32 4294901760, %v487_v0  ;;  %v235_v41 = vand.u32 4294901760, %v157_v58 }
  0x2c   :  { %7645 = vst [vmem:[#allocation17_spill] sm:$0xff] %v6357_v1  ;;  %5297 = vmatpush3.bf16.msra.mxu0 %v6357_v1  ;;  %v7532_v40 = vand.u32 4294901760, %v6359_v2  ;;  %v368_v31 = vsub.f32 %v6352_v55, %v7531_v7  ;;  %v6372_v45 = vpack.c.bf16 %v286_v8, %v283_v57  ;;  %v6375_v39 = vsub.f32 %v174_v51, %v286_v8 }
  0x2d   :  { %7646 = vst [vmem:[#allocation18_spill] sm:$0xff] %v6365_v28  ;;  %v7535_v50 = vand.u32 4294901760, %v6363_v17  ;;  %5325 = vmatpush3.bf16.msra.mxu1 %v6365_v28  ;;  %v6378_v44 = vpack.c.bf16 %v488_v34, %v481_v6  ;;  %v238_v59 = vand.u32 4294901760, %v158_v16  ;;  %v6383_v0 = vsub.f32 %v157_v58, %v235_v41  ;;  %v159_v6 = vld [vmem:[#allocation2 + $0x50] sm:$0xff] }
  0x2e   :  { %7647 = vst [vmem:[#allocation19_spill] sm:$0xff] %v6372_v45  ;;  %v375_v53 = vsub.f32 %v6359_v2, %v7532_v40  ;;  %v369_v42 = vand.u32 4294901760, %v368_v31  ;;  %5299 = vmatprep.subr.bf16.mxu0 %v6372_v45  ;;  %v7539_v57 = vand.u32 4294901760, %v6375_v39  ;;  %v289_v8 = vand.u32 4294901760, %v175_v43 }
  0x2f   :  { %7648 = vst [vmem:[#allocation20_spill] sm:$0xff] %v6378_v44  ;;  %v494_v51 = vsub.f32 %v6363_v17, %v7535_v50  ;;  %5327 = vmatprep.subr.bf16.mxu1 %v6378_v44  ;;  %v6391_v7 = vpack.c.bf16 %v238_v59, %v235_v41  ;;  %v7541_v58 = vand.u32 4294901760, %v6383_v0  ;;  %v6394_v40 = vsub.f32 %v158_v16, %v238_v59  ;;  %v177_v59 = vld [vmem:[#allocation2 + $0xe0] sm:$0xff]  ;;  %v180_v44 = vld [vmem:[#allocation2 + $0xf8] sm:$0xff] }
  0x30   :  { %v376_v34 = vand.u32 4294901760, %v375_v53  ;;  %v501_v35 = vsub.f32 %v6375_v39, %v7539_v57  ;;  %v292_v10 = vand.u32 4294901760, %v176_v46  ;;  %v6399_v50 = vsub.f32 %v175_v43, %v289_v8 }
  0x31   :  { %7649 = vst [vmem:[#allocation21_spill] sm:$0xff] %v6391_v7  ;;  %v495_v31 = vand.u32 4294901760, %v494_v51  ;;  %5301 = vmatpush3.bf16.msra.mxu0 %v6391_v7  ;;  %v382_v41 = vsub.f32 %v6383_v0, %v7541_v58  ;;  %v7545_v16 = vand.u32 4294901760, %v6394_v40  ;;  %v241_v53 = vand.u32 4294901760, %v159_v6 }
  0x32   :  { %v6401_v4 = vpack.c.bf16 %v376_v34, %v369_v42  ;;  %v502_v51 = vand.u32 4294901760, %v501_v35  ;;  %v6408_v56 = vpack.c.bf16 %v292_v10, %v289_v8  ;;  %v7547_v57 = vand.u32 4294901760, %v6399_v50  ;;  %v161_v8 = vld [vmem:[#allocation2 + $0x60] sm:$0xff] }
  0x33   :  { %v6411_v43 = vsub.f32 %v176_v46, %v292_v10  ;;  %v383_v42 = vand.u32 4294901760, %v382_v41  ;;  %v389_v34 = vsub.f32 %v6394_v40, %v7545_v16  ;;  %v244_v47 = vand.u32 4294901760, %v160_v5 }
  0x34   :  { %7650 = vst [vmem:[#allocation22_spill] sm:$0xff] %v6401_v4  ;;  %7651 = vst [vmem:[#allocation23_spill] sm:$0xff] %v6408_v56  ;;  %5329 = vmatpush3.bf16.msra.mxu1 %v6401_v4  ;;  %v6417_v58 = vsub.f32 %v159_v6, %v241_v53  ;;  %v6419_v27 = vpack.c.bf16 %v502_v51, %v495_v31  ;;  %5303 = vmatprep.subr.bf16.mxu0 %v6408_v56  ;;  %v295_v46 = vand.u32 4294901760, %v177_v59 }
  0x35   :  { %v508_v10 = vsub.f32 %v6399_v50, %v7547_v57  ;;  %v7552_v35 = vand.u32 4294901760, %v6411_v43  ;;  %v390_v41 = vand.u32 4294901760, %v389_v34  ;;  %v6426_v26 = vpack.c.bf16 %v244_v47, %v241_v53  ;;  %v179_v34 = vld [vmem:[#allocation2 + $0xf0] sm:$0xff] }
  0x36   :  { %7652 = vst [vmem:[#allocation24_spill] sm:$0xff] %v6419_v27  ;;  %v7555_v16 = vand.u32 4294901760, %v6417_v58  ;;  %v6429_v6 = vsub.f32 %v160_v5, %v244_v47  ;;  %5331 = vmatprep.subr.bf16.mxu1 %v6419_v27  ;;  %v298_v24 = vand.u32 4294901760, %v178_v33  ;;  %v6435_v57 = vsub.f32 %v177_v59, %v295_v46 }
  0x37   :  { %7653 = vst [vmem:[#allocation25_spill] sm:$0xff] %v6426_v26  ;;  %v509_v31 = vand.u32 4294901760, %v508_v10  ;;  %v515_v51 = vsub.f32 %v6411_v43, %v7552_v35  ;;  %v6437_v22 = vpack.c.bf16 %v390_v41, %v383_v42  ;;  %5305 = vmatpush3.bf16.msra.mxu0 %v6426_v26  ;;  %v247_v53 = vand.u32 4294901760, %v161_v8 }
  0x38   :  { %v396_v47 = vsub.f32 %v6417_v58, %v7555_v16  ;;  %v7562_v5 = vand.u32 4294901760, %v6429_v6  ;;  %v6444_v27 = vpack.c.bf16 %v298_v24, %v295_v46  ;;  %v7565_v35 = vand.u32 4294901760, %v6435_v57 }
  0x39   :  { %7654 = vst [vmem:[#allocation26_spill] sm:$0xff] %v6437_v22  ;;  %v516_v10 = vand.u32 4294901760, %v515_v51  ;;  %v6447_v59 = vsub.f32 %v178_v33, %v298_v24  ;;  %5333 = vmatpush3.bf16.msra.mxu1 %v6437_v22  ;;  %v250_v4 = vand.u32 4294901760, %v162_v23  ;;  %v6453_v16 = vsub.f32 %v161_v8, %v247_v53  ;;  %v163_v51 = vld [vmem:[#allocation2 + $0x70] sm:$0xff] }
  0x3a   :  { %7655 = vst [vmem:[#allocation27_spill] sm:$0xff] %v6444_v27  ;;  %v397_v42 = vand.u32 4294901760, %v396_v47  ;;  %v403_v41 = vsub.f32 %v6429_v6, %v7562_v5  ;;  %5307 = vmatprep.subr.bf16.mxu0 %v6444_v27  ;;  %v522_v24 = vsub.f32 %v6435_v57, %v7565_v35  ;;  %v301_v46 = vand.u32 4294901760, %v179_v34 }
  0x3b   :  { %v6455_v28 = vpack.c.bf16 %v516_v10, %v509_v31  ;;  %v7568_v33 = vand.u32 4294901760, %v6447_v59  ;;  %v6462_v22 = vpack.c.bf16 %v250_v4, %v247_v53  ;;  %v7573_v5 = vand.u32 4294901760, %v6453_v16  ;;  %v6476_v53 = vld [vmem:[%s7526_s0] ss:$8 sm:$0x3] }
  0x3c   :  { %v404_v47 = vand.u32 4294901760, %v403_v41  ;;  %v6465_v8 = vsub.f32 %v162_v23, %v250_v4  ;;  %v523_v31 = vand.u32 4294901760, %v522_v24  ;;  %v304_v52 = vand.u32 4294901760, %v180_v44 }
  0x3d   :  { %7656 = vst [vmem:[#allocation28_spill] sm:$0xff] %v6455_v28  ;;  %7657 = vst [vmem:[#allocation29_spill] sm:$0xff] %v6462_v22  ;;  %5335 = vmatprep.subr.bf16.mxu1 %v6455_v28  ;;  %v529_v10 = vsub.f32 %v6447_v59, %v7568_v33  ;;  %v6471_v35 = vsub.f32 %v179_v34, %v301_v46  ;;  %5309 = vmatpush3.bf16.msra.mxu0 %v6462_v22  ;;  %v253_v24 = vand.u32 4294901760, %v163_v51  ;;  %v6488_v34 = vld [vmem:[%s7526_s0 + $0x10] ss:$8 sm:$0x3] }
  0x3e   :  { %v6478_v41 = vpack.c.bf16 %v404_v47, %v397_v42  ;;  %v410_v23 = vsub.f32 %v6453_v16, %v7573_v5  ;;  %v4424_v33 = vld [vmem:[%s7526_s0 + $0x1] ss:$8 sm:$0x3]  ;;  %v6493_v47 = vpack.c.bf16 %v304_v52, %v301_v46  ;;  %v6496_v60 = vsub.f32 %v180_v44, %v304_v52  ;;  %v4425_v5 = vld [vmem:[%s7526_s0 + $0x11] ss:$8 sm:$0x3] }
  0x3f   :  { %v530_v42 = vand.u32 4294901760, %v529_v10  ;;  %v7586_v28 = vand.u32 4294901760, %v6471_v35  ;;  %v7660_v54 = vand.u32 4294901760, %v6465_v8  ;;  %v256_v22 = vand.u32 4294901760, %v164_v32 }
  0x40   :  { %7658 = vst [vmem:[#allocation30_spill] sm:$0xff] %v6478_v41  ;;  %7659 = vst [vmem:[#allocation31_spill] sm:$0xff] %v6493_v47  ;;  %5337 = vmatpush3.bf16.msra.mxu1 %v6478_v41  ;;  %v411_v4 = vand.u32 4294901760, %v410_v23  ;;  %v6505_v27 = vsub.f32 %v163_v51, %v253_v24  ;;  %v4426_v46 = vld [vmem:[%s7526_s0 + $0x2] ss:$8 sm:$0x3]  ;;  %5311 = vmatprep.subr.bf16.mxu0 %v6493_v47  ;;  %v45_v51 = vmax.f32 %v6476_v53, %v4424_v33 }
  0x41   :  { %v417_v49 = vsub.f32 %v6465_v8, %v7660_v54  ;;  %v6510_v52 = vpack.c.bf16 %v530_v42, %v523_v31  ;;  %v536_v44 = vsub.f32 %v6471_v35, %v7586_v28  ;;  %v7591_v10 = vand.u32 4294901760, %v6496_v60  ;;  %v4427_v54 = vld [vmem:[%s7526_s0 + $0x12] ss:$8 sm:$0x3] }
  0x42   :  { %v6521_v41 = vpack.c.bf16 %v256_v22, %v253_v24  ;;  %v6524_v42 = vsub.f32 %v164_v32, %v256_v22  ;;  %v4428_v47 = vld [vmem:[%s7526_s0 + $0x3] ss:$8 sm:$0x3]  ;;  %v46_v24 = vmax.f32 %v6488_v34, %v4425_v5  ;;  %v47_v31 = vmax.f32 %v45_v51, %v4426_v46 }
  0x43   :  { %7661 = vst [vmem:[#allocation32_spill] sm:$0xff] %v6510_v52  ;;  %v418_v23 = vand.u32 4294901760, %v417_v49  ;;  %5339 = vmatprep.subr.bf16.mxu1 %v6510_v52  ;;  %v537_v28 = vand.u32 4294901760, %v536_v44  ;;  %v543_v26 = vsub.f32 %v6496_v60, %v7591_v10  ;;  %v4429_v49 = vld [vmem:[%s7526_s0 + $0x13] ss:$8 sm:$0x3] }
  0x44   :  { %7662 = vst [vmem:[#allocation33_spill] sm:$0xff] %v6521_v41  ;;  %5313 = vmatpush3.bf16.msra.mxu0 %v6521_v41  ;;  %v7664_v32 = vand.u32 4294901760, %v6505_v27  ;;  %v7600_v44 = vand.u32 4294901760, %v6524_v42  ;;  %v4430_v10 = vld [vmem:[%s7526_s0 + $0x4] ss:$8 sm:$0x3]  ;;  %v48_v7 = vmax.f32 %v46_v24, %v4427_v54  ;;  %v49_v45 = vmax.f32 %v47_v31, %v4428_v47 }
  0x45   :  { %v6537_v22 = vpack.c.bf16 %v418_v23, %v411_v4  ;;  %v544_v56 = vand.u32 4294901760, %v543_v26  ;;  %v4431_v23 = vld [vmem:[%s7526_s0 + $0x14] ss:$8 sm:$0x3] }
  0x46   :  { %v424_v52 = vsub.f32 %v6505_v27, %v7664_v32  ;;  %v431_v4 = vsub.f32 %v6524_v42, %v7600_v44  ;;  %v6556_v32 = vpack.c.bf16 %v6240_v14, %v6238_v13  ;;  %v50_v26 = vmax.f32 %v48_v7, %v4429_v49 }
  0x47   :  { %7663 = vst [vmem:[#allocation34_spill] sm:$0xff] %v6537_v22  ;;  %5341 = vmatpush3.bf16.msra.mxu1 %v6537_v22  ;;  %v6558_v41 = vpack.c.bf16 %v544_v56, %v537_v28  ;;  %v51_v24 = vmax.f32 %v49_v45, %v4430_v10  ;;  %v6567_v44 = vpack.c.bf16 %v6256_v25, %v6250_v21 }
  0x48   :  { %v425_v51 = vand.u32 4294901760, %v424_v52  ;;  %7665 = vst [vmem:[#allocation35_spill] sm:$0xff] %v6556_v32  ;;  %v432_v31 = vand.u32 4294901760, %v431_v4  ;;  %5347 = vmatprep.subr.bf16.mxu0 %v6556_v32  ;;  %v6563_v52 = vpack.c.bf16 %v6246_v19, %v6242_v15  ;;  %v52_v22 = vmax.f32 %v50_v26, %v4431_v23 }
  0x49   :  { %7666 = vst [vmem:[#allocation36_spill] sm:$0xff] %v6558_v41  ;;  %7668 = vst [vmem:[#allocation38_spill] sm:$0xff] %v6567_v44  ;;  %5343 = vmatprep.subr.bf16.mxu1 %v6558_v41  ;;  %v53_v1 = vsub.f32 %v6476_v53, %v51_v24  ;;  %v59_v56 = vsub.f32 %v4424_v33, %v51_v24  ;;  %v65_v28 = vsub.f32 %v4426_v46, %v51_v24 }
  0x4a   :  { %7667 = vst [vmem:[#allocation37_spill] sm:$0xff] %v6563_v52  ;;  %v6571_v7 = vpack.c.bf16 %v432_v31, %v425_v51  ;;  %v71_v45 = vsub.f32 %v4428_v47, %v51_v24  ;;  %v54_v4 = vsub.f32 %v6488_v34, %v52_v22  ;;  %v60_v29 = vsub.f32 %v4425_v5, %v52_v22 }
  0x4b   :  { %v55_v32 = vmul.f32 1.442695, %v53_v1  ;;  %v61_v9 = vmul.f32 1.442695, %v59_v56  ;;  %v66_v52 = vsub.f32 %v4427_v54, %v52_v22  ;;  %v67_v61 = vmul.f32 1.442695, %v65_v28 }
  0x4c   :  { %7669 = vst [vmem:[#allocation39_spill] sm:$0xff] %v6571_v7  ;;  %5345 = vmatpush3.bf16.msra.mxu1 %v6571_v7  ;;  %v72_v44 = vsub.f32 %v4429_v49, %v52_v22  ;;  %v77_v36 = vsub.f32 %v4430_v10, %v51_v24  ;;  %v57_v26 = vmul.f32 1.442695, %v54_v4  ;;  %v63_v41 = vmul.f32 1.442695, %v60_v29 }
  0x4d   :  { %6071 = vpow2.f32 %v55_v32  ;;  %v78_v53 = vsub.f32 %v4431_v23, %v52_v22  ;;  %5379 = vmatprep.subr.bf16.mxu1 %v6236_v12  ;;  %v69_v33 = vmul.f32 1.442695, %v66_v52  ;;  %v73_v47 = vmul.f32 1.442695, %v71_v45 }
  0x4e   :  { %6073 = vpow2.f32 %v61_v9  ;;  %v75_v34 = vmul.f32 1.442695, %v72_v44  ;;  %v6578_v1 = vpack.c.bf16 %v6287_v48, %v6280_v37  ;;  %v6582_v5 = vpack.c.bf16 %v6304_v63, %v6302_v62 }
  0x4f   :  { %6075 = vpow2.f32 %v57_v26  ;;  %v6586_v29 = vpack.c.bf16 %v6319_v11, %v6310_v3  ;;  %v79_v46 = vmul.f32 1.442695, %v77_v36  ;;  %v81_v9 = vmul.f32 1.442695, %v78_v53 }
  0x50   :  { %6077 = vpow2.f32 %v63_v41  ;;  %v6590_v10 = vpack.c.bf16 %v6338_v38, %v6329_v30  ;;  %v6594_v41 = vpack.c.bf16 %v6359_v2, %v6352_v55  ;;  %v6598_v54 = vpack.c.bf16 %v6375_v39, %v6363_v17 }
  0x51   :  { %7670 = vst [vmem:[#allocation40_spill] sm:$0xff] %v6586_v29  ;;  %6079 = vpow2.f32 %v67_v61  ;;  %v6602_v49 = vpack.c.bf16 %v6394_v40, %v6383_v0  ;;  %v6606_v36 = vpack.c.bf16 %v6411_v43, %v6399_v50  ;;  %v6610_v61 = vpack.c.bf16 %v6429_v6, %v6417_v58 }
  0x52   :  { %7671 = vst [vmem:[#allocation41_spill] sm:$0xff] %v6590_v10  ;;  %6081 = vpow2.f32 %v69_v33  ;;  %v6614_v22 = vpack.c.bf16 %v6447_v59, %v6435_v57  ;;  %v6618_v44 = vpack.c.bf16 %v6465_v8, %v6453_v16  ;;  %v6622_v51 = vpack.c.bf16 %v6496_v60, %v6471_v35 }
  0x53   :  { %6083 = vpow2.f32 %v73_v47  ;;  %v6626_v23 = vpack.c.bf16 %v6524_v42, %v6505_v27  ;;  %v7673_v32 = vand.u32 4294901760, %v6238_v13  ;;  %v7674_v24 = vand.u32 4294901760, %v6240_v14 }
  0x54   :  { %7672 = vst [vmem:[#allocation42_spill] sm:$0xff] %v6614_v22  ;;  %6085 = vpow2.f32 %v75_v34  ;;  %v7675_v52 = vand.u32 4294901760, %v6242_v15  ;;  %v7676_v56 = vand.u32 4294901760, %v6246_v19  ;;  %v7677_v45 = vand.u32 4294901760, %v6250_v21 }
  0x55   :  { %6087 = vpow2.f32 %v79_v46  ;;  %v6632_v31 = vpack.c.bf16 %v7674_v24, %v7673_v32  ;;  %v7678_v4 = vand.u32 4294901760, %v6256_v25  ;;  %v7679_v53 = vand.u32 4294901760, %v6280_v37 }
  0x56   :  { %v6638_v28 = vpack.c.bf16 %v7676_v56, %v7675_v52  ;;  %6089 = vpow2.f32 %v81_v9  ;;  %v7680_v13 = vand.u32 4294901760, %v6287_v48  ;;  %v7681_v33 = vand.u32 4294901760, %v6302_v62 }
  0x57   :  { %v6644_v26 = vpack.c.bf16 %v7678_v4, %v7677_v45  ;;  %v7682_v15 = vand.u32 4294901760, %v6304_v63  ;;  %v7683_v47 = vand.u32 4294901760, %v6310_v3  ;;  %v7684_v21 = vand.u32 4294901760, %v6319_v11  ;;  %v6072_v34 = vpop.eup %6071 }
  0x58   :  { %v6650_v14 = vpack.c.bf16 %v7680_v13, %v7679_v53  ;;  %v7685_v46 = vand.u32 4294901760, %v6329_v30  ;;  %v7686_v37 = vand.u32 4294901760, %v6338_v38  ;;  %v7687_v9 = vand.u32 4294901760, %v6352_v55  ;;  %v6074_v24 = vpop.eup %6073 }
  0x59   :  { %v6656_v19 = vpack.c.bf16 %v7682_v15, %v7681_v33  ;;  %v6662_v25 = vpack.c.bf16 %v7684_v21, %v7683_v47  ;;  %v7688_v62 = vand.u32 4294901760, %v6359_v2  ;;  %v7689_v32 = vand.u32 4294901760, %v6363_v17  ;;  %v6076_v4 = vpop.eup %6075 }
  0x5a   :  { %v6668_v48 = vpack.c.bf16 %v7686_v37, %v7685_v46  ;;  %v7690_v3 = vand.u32 4294901760, %v6375_v39  ;;  %v7691_v52 = vand.u32 4294901760, %v6383_v0  ;;  %v7692_v30 = vand.u32 4294901760, %v6394_v40  ;;  %v6078_v47 = vpop.eup %6077 }
  0x5b   :  { %v6674_v63 = vpack.c.bf16 %v7688_v62, %v7687_v9  ;;  %v7694_v56 = vand.u32 4294901760, %v6399_v50  ;;  %v7695_v55 = vand.u32 4294901760, %v6411_v43  ;;  %v7697_v45 = vand.u32 4294901760, %v6417_v58 }
  0x5c   :  { %v6680_v11 = vpack.c.bf16 %v7690_v3, %v7689_v32  ;;  %v6686_v38 = vpack.c.bf16 %v7692_v30, %v7691_v52  ;;  %v7698_v17 = vand.u32 4294901760, %v6429_v6  ;;  %v83_v53 = vadd.f32 %v6074_v24, %v6072_v34  ;;  %v6080_v34 = vpop.eup %6079 }
  0x5d   :  { %v6692_v2 = vpack.c.bf16 %v7695_v55, %v7694_v56  ;;  %v7699_v0 = vand.u32 4294901760, %v6435_v57  ;;  %v7700_v40 = vand.u32 4294901760, %v6447_v59  ;;  %v7702_v50 = vand.u32 4294901760, %v6453_v16  ;;  %v6082_v16 = vpop.eup %6081 }
  0x5e   :  { %7693 = vst [vmem:[#allocation43_spill] sm:$0xff] %v6686_v38  ;;  %v6698_v39 = vpack.c.bf16 %v7698_v17, %v7697_v45  ;;  %v7703_v43 = vand.u32 4294901760, %v6465_v8  ;;  %v7704_v58 = vand.u32 4294901760, %v6471_v35  ;;  %v7705_v6 = vand.u32 4294901760, %v6496_v60  ;;  %v6724_v8 = vpop.eup %6083 }
  0x5f   :  { %7696 = vst [vmem:[#allocation44_spill] sm:$0xff] %v6692_v2  ;;  %v6704_v13 = vpack.c.bf16 %v7700_v40, %v7699_v0  ;;  %v7707_v21 = vand.u32 4294901760, %v6505_v27  ;;  %v7708_v57 = vand.u32 4294901760, %v6524_v42  ;;  %v84_v46 = vadd.f32 %v6078_v47, %v6076_v4  ;;  %v6726_v62 = vpop.eup %6085 }
  0x60   :  { %v6710_v33 = vpack.c.bf16 %v7703_v43, %v7702_v50  ;;  %v6716_v15 = vpack.c.bf16 %v7705_v6, %v7704_v58  ;;  %v85_v37 = vadd.f32 %v6080_v34, %v83_v53  ;;  %v6729_v35 = vpop.eup %6087  ;;  %v6190_v52 = vmov 1966171168  }
  0x61   :  { %7701 = vst [vmem:[#allocation45_spill] sm:$0xff] %v6704_v13  ;;  %v6722_v59 = vpack.c.bf16 %v7708_v57, %v7707_v21  ;;  %v86_v9 = vadd.f32 %v6082_v16, %v84_v46  ;;  %7710 = vst [vmem:[#allocation48_spill] sm:$0xff] %v6729_v35  ;;  %v6732_v27 = vpop.eup %6089  ;;  %v119_v30 = vunpack.c.l.s4 %v6190_v52  ;;  %v121_v56 = vlaneseq }
  0x62   :  { %7706 = vst [vmem:[#allocation46_spill] sm:$0xff] %v6716_v15  ;;  %v87_v60 = vadd.f32 %v6724_v8, %v85_v37  ;;  %7711 = vst [vmem:[#allocation49_spill] sm:$0xff] %v6732_v27 }
  0x63   :  { %7709 = vst [vmem:[#allocation47_spill] sm:$0xff] %v6722_v59  ;;  %v88_v32 = vadd.f32 %v6726_v62, %v86_v9  ;;  %v120_v55 = vunpack.c.0.s8 %v119_v30  ;;  %v122_v45 = vshrl.u32 %v121_v56, 7  ;;  %v7712_v30 = vld [vmem:[#allocation8_spill] sm:$0xff] }
  0x64   :  { %v89_v42 = vadd.f32 %v6729_v35, %v87_v60  ;;  %v7713_v56 = vld [vmem:[#allocation12_spill] sm:$0xff] }
  0x65   :  { %v90_v3 = vadd.f32 %v6732_v27, %v88_v32  ;;  %v6744_v40 = vsub.s32 %v120_v55, %v122_v45  ;;  %v7714_v55 = vld [vmem:[#allocation37_spill] sm:$0xff]  ;;  %v7730_v27 = vld [vmem:[#allocation15_spill] sm:$0xff]  ;;  %v7731_v35 = vld [vmem:[#allocation16_spill] sm:$0xff] }
  0x66   :  { %6091 = vrcp.f32 %v89_v42  ;;  %v7715_v45 = vld [vmem:[#allocation13_spill] sm:$0xff] }
  0x67   :  { %6093 = vrcp.f32 %v90_v3 }
  0x70   :  { %v6736_v17 = vpop.eup %6091 }
  0x71   :  { %v6738_v4 = vpop.eup %6093  ;;  %v181_v53 = vmul.f32 %v6736_v17, %v6074_v24  ;;  %v6742_v0 = vmul.f32 %v6736_v17, %v6080_v34 }
  0x72   :  { %v182_v50 = vmul.f32 %v6738_v4, %v6078_v47  ;;  %v6748_v43 = vmul.f32 %v6738_v4, %v6082_v16 }
  0x74   :  { %v185_v58 = vcombine.low %v181_v53, %v182_v50  ;;  %v1217_v6 = vcombine.low %v6742_v0, %v6748_v43  ;;  %v7716_v53 = vld [vmem:[#allocation38_spill] sm:$0xff] }
  0x75   :  { %v7717_v50 = vld [vmem:[#allocation14_spill] sm:$0xff] }
  0x76   :  { %v192_v21 = vrot.slane %v185_v58, %v6744_v40  ;;  %v7718_v58 = vld [vmem:[#allocation17_spill] sm:$0xff] }
  0x78   :  { %v193_v57 = vcombine.high %v192_v21, %v192_v21  ;;  %v200_v46 = vrot.slane %v192_v21, %v6744_v40  ;;  %v7719_v21 = vld [vmem:[#allocation19_spill] sm:$0xff] }
  0x7a   :  { %v207_v24 = vrot.slane %v193_v57, %v6744_v40  ;;  %v6755_v34 = vand.u32 4294901760, %v200_v46  ;;  %v7720_v57 = vld [vmem:[#allocation21_spill] sm:$0xff] }
  0x7c   :  { %v306_v37 = vand.u32 4294901760, %v207_v24  ;;  %v313_v9 = vsub.f32 %v200_v46, %v6755_v34  ;;  %v7721_v46 = vld [vmem:[#allocation23_spill] sm:$0xff] }
  0x7e   :  { %v307_v47 = vsub.f32 %v207_v24, %v306_v37  ;;  %547 = vmatprep.mubr.f32.mxu1 %v306_v37  ;;  %v314_v16 = vand.u32 4294901760, %v313_v9  ;;  %v7722_v24 = vld [vmem:[#allocation25_spill] sm:$0xff] }
  0x7f   :  { %549 = vmatmul.mubr.f32.vlgmr.msra.gmra.mrb[0].mxu1 %v6755_v34 }
  0x80   :  { %v308_v60 = vand.u32 4294901760, %v307_v47  ;;  %v315_v32 = vsub.f32 %v313_v9, %v314_v16  ;;  %5381 = vmatpush3.bf16.msra.mxu1 %v6244_v18 }
  0x81   :  { %5383 = vmatprep.subr.bf16.mxu1 %v6248_v20 }
  0x82   :  { %v309_v42 = vsub.f32 %v307_v47, %v308_v60  ;;  %791 = vmatprep.mubr.f32.mxu1 %v308_v60  ;;  %v316_v3 = vand.u32 4294901760, %v315_v32  ;;  %v7724_v60 = vld [vmem:[#allocation29_spill] sm:$0xff]  ;;  %v7725_v32 = vld [vmem:[#allocation31_spill] sm:$0xff] }
  0x84   :  { %v310_v52 = vand.u32 4294901760, %v309_v42  ;;  %5385 = vmatpush3.bf16.msra.mxu1 %v7712_v30  ;;  %v7726_v42 = vld [vmem:[#allocation33_spill] sm:$0xff] }
  0x85   :  { %5387 = vmatprep.subr.bf16.mxu1 %v7713_v56 }
  0x86   :  { %311 = vmatprep.mubr.f32.mxu0 %v310_v52  ;;  %v7728_v52 = vld [vmem:[#allocation10_spill] sm:$0xff] }
  0x87   :  { %317 = vmatmul.mubr.f32.vlgmr.msra.gmra.mrb[0].mxu0 %v316_v3 }
  0x88   :  { %5349 = vmatpush3.bf16.msra.mxu0 %v7714_v55  ;;  %5389 = vmatpush3.bf16.msra.mxu1 %v7715_v45 }
  0x89   :  { %5351 = vmatprep.subr.bf16.mxu0 %v7716_v53  ;;  %5391 = vmatprep.subr.bf16.mxu1 %v7717_v50 }
  0x8a   :  { %684 = vmatprep.mubr.f32.mxu0 %v307_v47  ;;  %v7723_v47 = vld [vmem:[#allocation27_spill] sm:$0xff] }
  0x8c   :  { %5353 = vmatpush3.bf16.msra.mxu0 %v6578_v1  ;;  %5393 = vmatpush3.bf16.msra.mxu1 %v7718_v58 }
  0x8d   :  { %5355 = vmatprep.subr.bf16.mxu0 %v6582_v5  ;;  %5395 = vmatprep.subr.bf16.mxu1 %v7719_v21 }
  0x90   :  { %5357 = vmatpush3.bf16.msra.mxu0 %v6586_v29  ;;  %5397 = vmatpush3.bf16.msra.mxu1 %v7720_v57 }
  0x91   :  { %5359 = vmatprep.subr.bf16.mxu0 %v6590_v10  ;;  %5399 = vmatprep.subr.bf16.mxu1 %v7721_v46 }
  0x94   :  { %5361 = vmatpush3.bf16.msra.mxu0 %v6594_v41  ;;  %5401 = vmatpush3.bf16.msra.mxu1 %v7722_v24 }
  0x95   :  { %5363 = vmatprep.subr.bf16.mxu0 %v6598_v54  ;;  %5403 = vmatprep.subr.bf16.mxu1 %v7723_v47 }
  0x98   :  { %5365 = vmatpush3.bf16.msra.mxu0 %v6602_v49  ;;  %5405 = vmatpush3.bf16.msra.mxu1 %v7724_v60 }
  0x99   :  { %5367 = vmatprep.subr.bf16.mxu0 %v6606_v36  ;;  %5407 = vmatprep.subr.bf16.mxu1 %v7725_v32 }
  0x9c   :  { %5369 = vmatpush3.bf16.msra.mxu0 %v6610_v61  ;;  %5409 = vmatpush3.bf16.msra.mxu1 %v7726_v42 }
  0x9d   :  { %5371 = vmatprep.subr.bf16.mxu0 %v6614_v22  ;;  %5443 = vmatprep.subr.bf16.mxu1 %v6236_v12 }
  0x9f   :  { %795 = vmatmul.mubr.f32.vlgmr.msra.gmra.mrb[2].mxu1 %v314_v16  ;;  %v1224_v16 = vrot.slane %v1217_v6, %v6744_v40 }
  0xa0   :  { %5373 = vmatpush3.bf16.msra.mxu0 %v6618_v44  ;;  %5445 = vmatpush3.bf16.msra.mxu1 %v6244_v18 }
  0xa1   :  { %5375 = vmatprep.subr.bf16.mxu0 %v6622_v51  ;;  %5447 = vmatprep.subr.bf16.mxu1 %v6248_v20 }
  0xa2   :  { %1065 = vmatprep.mubr.f32.mxu1 %v306_v37 }
  0xa4   :  { %5377 = vmatpush3.bf16.msra.mxu0 %v6626_v23  ;;  %5449 = vmatpush3.bf16.msra.mxu1 %v7712_v30 }
  0xa5   :  { %5411 = vmatprep.subr.bf16.mxu0 %v6632_v31  ;;  %5451 = vmatprep.subr.bf16.mxu1 %v7713_v56 }
  0xa7   :  { %687 = vmatmul.mubr.f32.vlgmr.msra.gmra.mrb[2].mxu0 %v313_v9  ;;  %v1225_v9 = vcombine.high %v1224_v16, %v1224_v16 }
  0xa8   :  { %5413 = vmatpush3.bf16.msra.mxu0 %v6638_v28  ;;  %5453 = vmatpush3.bf16.msra.mxu1 %v7715_v45 }
  0xa9   :  { %5415 = vmatprep.subr.bf16.mxu0 %v6644_v26  ;;  %5455 = vmatprep.subr.bf16.mxu1 %v7717_v50  ;;  %v1239_v0 = vrot.slane %v1225_v9, %v6744_v40  ;;  %v7729_v9 = vld [vmem:[#allocation11_spill] sm:$0xff] }
  0xaa   :  { %961 = vmatprep.mubr.f32.mxu0 %v306_v37  ;;  %v7727_v37 = vld [vmem:[#allocation9_spill] sm:$0xff] }
  0xab   :  { %v6816_v43 = vand.u32 4294901760, %v1239_v0 }
  0xac   :  { %5417 = vmatpush3.bf16.msra.mxu0 %v6650_v14  ;;  %5457 = vmatpush3.bf16.msra.mxu1 %v7718_v58 }
  0xad   :  { %5419 = vmatprep.subr.bf16.mxu0 %v6656_v19  ;;  %5459 = vmatprep.subr.bf16.mxu1 %v7719_v21  ;;  %v6823_v6 = vsub.f32 %v1239_v0, %v6816_v43 }
  0xaf   :  { %v1340_v3 = vand.u32 4294901760, %v6823_v6 }
  0xb0   :  { %5421 = vmatpush3.bf16.msra.mxu0 %v6662_v25  ;;  %5461 = vmatpush3.bf16.msra.mxu1 %v7720_v57 }
  0xb1   :  { %5423 = vmatprep.subr.bf16.mxu0 %v6668_v48  ;;  %5463 = vmatprep.subr.bf16.mxu1 %v7721_v46  ;;  %v1341_v0 = vsub.f32 %v6823_v6, %v1340_v3 }
  0xb4   :  { %5425 = vmatpush3.bf16.msra.mxu0 %v6674_v63  ;;  %5465 = vmatpush3.bf16.msra.mxu1 %v7722_v24 }
  0xb5   :  { %5427 = vmatprep.subr.bf16.mxu0 %v6680_v11  ;;  %5467 = vmatprep.subr.bf16.mxu1 %v7723_v47 }
  0xb8   :  { %5429 = vmatpush3.bf16.msra.mxu0 %v6686_v38  ;;  %5469 = vmatpush3.bf16.msra.mxu1 %v7724_v60 }
  0xb9   :  { %5431 = vmatprep.subr.bf16.mxu0 %v6692_v2  ;;  %5471 = vmatprep.subr.bf16.mxu1 %v7725_v32 }
  0xbc   :  { %5433 = vmatpush3.bf16.msra.mxu0 %v6698_v39  ;;  %5473 = vmatpush3.bf16.msra.mxu1 %v7726_v42 }
  0xbd   :  { %5435 = vmatprep.subr.bf16.mxu0 %v6704_v13  ;;  %5507 = vmatprep.subr.bf16.mxu1 %v7727_v37  ;;  %v1342_v37 = vand.u32 4294901760, %v1341_v0  ;;  %v1232_v0 = vrot.slane %v1224_v16, %v6744_v40 }
  0xbf   :  { %1067 = vmatmul.mubr.f32.vlgmr.msra.gmra.mrb[4].mxu1 %v6755_v34 }
  0xc0   :  { %5437 = vmatpush3.bf16.msra.mxu0 %v6710_v33  ;;  %5509 = vmatpush3.bf16.msra.mxu1 %v7728_v52 }
  0xc1   :  { %5439 = vmatprep.subr.bf16.mxu0 %v6716_v15  ;;  %5511 = vmatprep.subr.bf16.mxu1 %v7729_v9  ;;  %v7732_v15 = vld [vmem:[#allocation18_spill] sm:$0xff]  ;;  %v7733_v9 = vld [vmem:[#allocation20_spill] sm:$0xff] }
  0xc2   :  { %1579 = vmatprep.mubr.f32.mxu1 %v6816_v43 }
  0xc4   :  { %5441 = vmatpush3.bf16.msra.mxu0 %v6722_v59  ;;  %5513 = vmatpush3.bf16.msra.mxu1 %v7730_v27  ;;  %v7734_v59 = vld [vmem:[#allocation22_spill] sm:$0xff]  ;;  %v7735_v27 = vld [vmem:[#allocation24_spill] sm:$0xff] }
  0xc5   :  { %5475 = vmatprep.subr.bf16.mxu0 %v6236_v12  ;;  %5515 = vmatprep.subr.bf16.mxu1 %v7731_v35 }
  0xc7   :  { %963 = vmatmul.mubr.f32.vlgmr.msra.gmra.mrb[4].mxu0 %v6755_v34  ;;  %v7736_v34 = vld [vmem:[#allocation26_spill] sm:$0xff] }
  0xc8   :  { %5477 = vmatpush3.bf16.msra.mxu0 %v6244_v18  ;;  %5517 = vmatpush3.bf16.msra.mxu1 %v7732_v15  ;;  %v7737_v15 = vld [vmem:[#allocation28_spill] sm:$0xff] }
  0xc9   :  { %5479 = vmatprep.subr.bf16.mxu0 %v6248_v20  ;;  %5519 = vmatprep.subr.bf16.mxu1 %v7733_v9  ;;  %v6855_v9 = vand.u32 4294901760, %v1232_v0 }
  0xca   :  { %1343 = vmatprep.mubr.f32.mxu0 %v1342_v37  ;;  %v7738_v37 = vld [vmem:[#allocation30_spill] sm:$0xff] }
  0xcb   :  { %v1345_v16 = vsub.f32 %v1232_v0, %v6855_v9 }
  0xcc   :  { %5481 = vmatpush3.bf16.msra.mxu0 %v7712_v30  ;;  %5521 = vmatpush3.bf16.msra.mxu1 %v7734_v59  ;;  %v7739_v59 = vld [vmem:[#allocation32_spill] sm:$0xff] }
  0xcd   :  { %5483 = vmatprep.subr.bf16.mxu0 %v7713_v56  ;;  %5523 = vmatprep.subr.bf16.mxu1 %v7735_v27  ;;  %v7740_v27 = vld [vmem:[#allocation34_spill] sm:$0xff] }
  0xd0   :  { %5485 = vmatpush3.bf16.msra.mxu0 %v7715_v45  ;;  %5525 = vmatpush3.bf16.msra.mxu1 %v7736_v34  ;;  %v7741_v34 = vld [vmem:[#allocation36_spill] sm:$0xff] }
  0xd1   :  { %5487 = vmatprep.subr.bf16.mxu0 %v7717_v50  ;;  %5527 = vmatprep.subr.bf16.mxu1 %v7737_v15  ;;  %v1346_v15 = vand.u32 4294901760, %v1345_v16 }
  0xd4   :  { %5489 = vmatpush3.bf16.msra.mxu0 %v7718_v58  ;;  %5529 = vmatpush3.bf16.msra.mxu1 %v7738_v37 }
  0xd5   :  { %5491 = vmatprep.subr.bf16.mxu0 %v7719_v21  ;;  %5531 = vmatprep.subr.bf16.mxu1 %v7739_v59  ;;  %v1347_v59 = vsub.f32 %v1345_v16, %v1346_v15 }
  0xd7   :  { %v1348_v0 = vand.u32 4294901760, %v1347_v59  ;;  %v2243_v59 = vmul.f32 %v6736_v17, %v6724_v8 }
  0xd8   :  { %5493 = vmatpush3.bf16.msra.mxu0 %v7720_v57  ;;  %5533 = vmatpush3.bf16.msra.mxu1 %v7740_v27 }
  0xd9   :  { %5495 = vmatprep.subr.bf16.mxu0 %v7721_v46  ;;  %5535 = vmatprep.subr.bf16.mxu1 %v7741_v34 }
  0xdc   :  { %5497 = vmatpush3.bf16.msra.mxu0 %v7722_v24  ;;  %5537 = vmatpush3.bf16.msra.mxu1 %v6571_v7  ;;  %v7742_v7 = vld [vmem:[#allocation35_spill] sm:$0xff] }
  0xdd   :  { %5499 = vmatprep.subr.bf16.mxu0 %v7723_v47  ;;  %5571 = vmatprep.subr.bf16.mxu1 %v6236_v12 }
  0xdf   :  { %1581 = vmatmul.mubr.f32.vlgmr.msra.gmra.mrb[6].mxu1 %v6855_v9 }
  0xe0   :  { %5501 = vmatpush3.bf16.msra.mxu0 %v7724_v60  ;;  %5573 = vmatpush3.bf16.msra.mxu1 %v6244_v18 }
  0xe1   :  { %5503 = vmatprep.subr.bf16.mxu0 %v7725_v32  ;;  %5575 = vmatprep.subr.bf16.mxu1 %v6248_v20 }
  0xe2   :  { %1823 = vmatprep.mubr.f32.mxu1 %v1340_v3 }
  0xe4   :  { %5505 = vmatpush3.bf16.msra.mxu0 %v7726_v42  ;;  %5577 = vmatpush3.bf16.msra.mxu1 %v7712_v30 }
  0xe5   :  { %5539 = vmatprep.subr.bf16.mxu0 %v7742_v7  ;;  %5579 = vmatprep.subr.bf16.mxu1 %v7713_v56 }
  0xe7   :  { %1349 = vmatmul.mubr.f32.vlgmr.msra.gmra.mrb[6].mxu0 %v1348_v0  ;;  %v7743_v0 = vld [vmem:[#allocation9_spill] sm:$0xff] }
  0xe8   :  { %5541 = vmatpush3.bf16.msra.mxu0 %v7714_v55  ;;  %5581 = vmatpush3.bf16.msra.mxu1 %v7715_v45 }
  0xe9   :  { %5543 = vmatprep.subr.bf16.mxu0 %v7716_v53  ;;  %5583 = vmatprep.subr.bf16.mxu1 %v7717_v50 }
  0xea   :  { %1716 = vmatprep.mubr.f32.mxu0 %v6823_v6  ;;  %v2244_v6 = vmul.f32 %v6738_v4, %v6726_v62 }
  0xec   :  { %5545 = vmatpush3.bf16.msra.mxu0 %v6578_v1  ;;  %5585 = vmatpush3.bf16.msra.mxu1 %v7718_v58 }
  0xed   :  { %5547 = vmatprep.subr.bf16.mxu0 %v6582_v5  ;;  %5587 = vmatprep.subr.bf16.mxu1 %v7719_v21 }
  0xf0   :  { %5549 = vmatpush3.bf16.msra.mxu0 %v6586_v29  ;;  %5589 = vmatpush3.bf16.msra.mxu1 %v7720_v57 }
  0xf1   :  { %5551 = vmatprep.subr.bf16.mxu0 %v6590_v10  ;;  %5591 = vmatprep.subr.bf16.mxu1 %v7721_v46 }
  0xf4   :  { %5553 = vmatpush3.bf16.msra.mxu0 %v6594_v41  ;;  %5593 = vmatpush3.bf16.msra.mxu1 %v7722_v24 }
  0xf5   :  { %5555 = vmatprep.subr.bf16.mxu0 %v6598_v54  ;;  %5595 = vmatprep.subr.bf16.mxu1 %v7723_v47 }
  0xf8   :  { %5557 = vmatpush3.bf16.msra.mxu0 %v6602_v49  ;;  %5597 = vmatpush3.bf16.msra.mxu1 %v7724_v60 }
  0xf9   :  { %5559 = vmatprep.subr.bf16.mxu0 %v6606_v36  ;;  %5599 = vmatprep.subr.bf16.mxu1 %v7725_v32 }
  0xfc   :  { %5561 = vmatpush3.bf16.msra.mxu0 %v6610_v61  ;;  %5601 = vmatpush3.bf16.msra.mxu1 %v7726_v42 }
  0xfd   :  { %5563 = vmatprep.subr.bf16.mxu0 %v6614_v22  ;;  %5635 = vmatprep.subr.bf16.mxu1 %v6236_v12 }
  0xff   :  { %1827 = vmatmul.mubr.f32.vlgmr.msra.gmra.mrb[8].mxu1 %v1346_v15  ;;  %v2247_v15 = vcombine.low %v2243_v59, %v2244_v6  ;;  %v7744_v6 = vld [vmem:[#allocation46_spill] sm:$0xff] }
 0x100   :  { %5565 = vmatpush3.bf16.msra.mxu0 %v6618_v44  ;;  %5637 = vmatpush3.bf16.msra.mxu1 %v6244_v18 }
 0x101   :  { %5567 = vmatprep.subr.bf16.mxu0 %v6622_v51  ;;  %5639 = vmatprep.subr.bf16.mxu1 %v6248_v20  ;;  %v2254_v8 = vrot.slane %v2247_v15, %v6744_v40  ;;  %v7745_v15 = vld [vmem:[#allocation11_spill] sm:$0xff] }
 0x102   :  { %2097 = vmatprep.mubr.f32.mxu1 %v6816_v43 }
 0x103   :  { %v2255_v62 = vcombine.high %v2254_v8, %v2254_v8 }
 0x104   :  { %5569 = vmatpush3.bf16.msra.mxu0 %v6626_v23  ;;  %5641 = vmatpush3.bf16.msra.mxu1 %v7712_v30 }
 0x105   :  { %5603 = vmatprep.subr.bf16.mxu0 %v6632_v31  ;;  %5643 = vmatprep.subr.bf16.mxu1 %v7713_v56 }
 0x107   :  { %1719 = vmatmul.mubr.f32.vlgmr.msra.gmra.mrb[8].mxu0 %v1345_v16 }
 0x108   :  { %5605 = vmatpush3.bf16.msra.mxu0 %v6638_v28  ;;  %5645 = vmatpush3.bf16.msra.mxu1 %v7715_v45 }
 0x109   :  { %5607 = vmatprep.subr.bf16.mxu0 %v6644_v26  ;;  %5647 = vmatprep.subr.bf16.mxu1 %v7717_v50 }
 0x10a   :  { %1993 = vmatprep.mubr.f32.mxu0 %v6816_v43  ;;  %v2269_v43 = vrot.slane %v2255_v62, %v6744_v40 }
 0x10c   :  { %5609 = vmatpush3.bf16.msra.mxu0 %v6650_v14  ;;  %5649 = vmatpush3.bf16.msra.mxu1 %v7718_v58  ;;  %v6936_v3 = vand.u32 4294901760, %v2269_v43 }
 0x10d   :  { %5611 = vmatprep.subr.bf16.mxu0 %v6656_v19  ;;  %5651 = vmatprep.subr.bf16.mxu1 %v7719_v21 }
 0x10e   :  { %v6943_v16 = vsub.f32 %v2269_v43, %v6936_v3  ;;  %v7746_v43 = vld [vmem:[#allocation47_spill] sm:$0xff] }
 0x110   :  { %5613 = vmatpush3.bf16.msra.mxu0 %v6662_v25  ;;  %5653 = vmatpush3.bf16.msra.mxu1 %v7720_v57  ;;  %v2370_v59 = vand.u32 4294901760, %v6943_v16 }
 0x111   :  { %5615 = vmatprep.subr.bf16.mxu0 %v6668_v48  ;;  %5655 = vmatprep.subr.bf16.mxu1 %v7721_v46 }
 0x112   :  { %v2371_v62 = vsub.f32 %v6943_v16, %v2370_v59 }
 0x114   :  { %5617 = vmatpush3.bf16.msra.mxu0 %v6674_v63  ;;  %5657 = vmatpush3.bf16.msra.mxu1 %v7722_v24 }
 0x115   :  { %5619 = vmatprep.subr.bf16.mxu0 %v6680_v11  ;;  %5659 = vmatprep.subr.bf16.mxu1 %v7723_v47 }
 0x118   :  { %5621 = vmatpush3.bf16.msra.mxu0 %v6686_v38  ;;  %5661 = vmatpush3.bf16.msra.mxu1 %v7724_v60 }
 0x119   :  { %5623 = vmatprep.subr.bf16.mxu0 %v6692_v2  ;;  %5663 = vmatprep.subr.bf16.mxu1 %v7725_v32 }
 0x11c   :  { %5625 = vmatpush3.bf16.msra.mxu0 %v6698_v39  ;;  %5665 = vmatpush3.bf16.msra.mxu1 %v7726_v42 }
 0x11d   :  { %5627 = vmatprep.subr.bf16.mxu0 %v6704_v13  ;;  %5699 = vmatprep.subr.bf16.mxu1 %v7743_v0  ;;  %v7747_v13 = vld [vmem:[#allocation15_spill] sm:$0xff]  ;;  %v2372_v0 = vand.u32 4294901760, %v2371_v62  ;;  %v2262_v62 = vrot.slane %v2254_v8, %v6744_v40 }
 0x11f   :  { %2099 = vmatmul.mubr.f32.vlgmr.msra.gmra.mrb[10].mxu1 %v6855_v9 }
 0x120   :  { %5629 = vmatpush3.bf16.msra.mxu0 %v6710_v33  ;;  %5701 = vmatpush3.bf16.msra.mxu1 %v7728_v52 }
 0x121   :  { %5631 = vmatprep.subr.bf16.mxu0 %v7744_v6  ;;  %5703 = vmatprep.subr.bf16.mxu1 %v7745_v15  ;;  %v7748_v6 = vld [vmem:[#allocation18_spill] sm:$0xff]  ;;  %v7749_v15 = vld [vmem:[#allocation20_spill] sm:$0xff] }
 0x122   :  { %2609 = vmatprep.mubr.f32.mxu1 %v6936_v3 }
 0x124   :  { %5633 = vmatpush3.bf16.msra.mxu0 %v7746_v43  ;;  %5705 = vmatpush3.bf16.msra.mxu1 %v7747_v13  ;;  %v7750_v43 = vld [vmem:[#allocation22_spill] sm:$0xff]  ;;  %v7751_v13 = vld [vmem:[#allocation24_spill] sm:$0xff] }
 0x125   :  { %5667 = vmatprep.subr.bf16.mxu0 %v6236_v12  ;;  %5707 = vmatprep.subr.bf16.mxu1 %v7731_v35 }
 0x127   :  { %1995 = vmatmul.mubr.f32.vlgmr.msra.gmra.mrb[10].mxu0 %v6855_v9  ;;  %v7752_v9 = vld [vmem:[#allocation26_spill] sm:$0xff] }
 0x128   :  { %5669 = vmatpush3.bf16.msra.mxu0 %v6244_v18  ;;  %5709 = vmatpush3.bf16.msra.mxu1 %v7748_v6  ;;  %v7753_v6 = vld [vmem:[#allocation28_spill] sm:$0xff] }
 0x129   :  { %5671 = vmatprep.subr.bf16.mxu0 %v6248_v20  ;;  %5711 = vmatprep.subr.bf16.mxu1 %v7749_v15  ;;  %v6975_v15 = vand.u32 4294901760, %v2262_v62 }
 0x12a   :  { %2373 = vmatprep.mubr.f32.mxu0 %v2372_v0  ;;  %v7754_v0 = vld [vmem:[#allocation32_spill] sm:$0xff] }
 0x12b   :  { %v6982_v8 = vsub.f32 %v2262_v62, %v6975_v15 }
 0x12c   :  { %5673 = vmatpush3.bf16.msra.mxu0 %v7712_v30  ;;  %5713 = vmatpush3.bf16.msra.mxu1 %v7750_v43 }
 0x12d   :  { %5675 = vmatprep.subr.bf16.mxu0 %v7713_v56  ;;  %5715 = vmatprep.subr.bf16.mxu1 %v7751_v13 }
 0x130   :  { %5677 = vmatpush3.bf16.msra.mxu0 %v7715_v45  ;;  %5717 = vmatpush3.bf16.msra.mxu1 %v7752_v9 }
 0x131   :  { %5679 = vmatprep.subr.bf16.mxu0 %v7717_v50  ;;  %5719 = vmatprep.subr.bf16.mxu1 %v7753_v6  ;;  %v2376_v6 = vand.u32 4294901760, %v6982_v8 }
 0x133   :  { %v2377_v62 = vsub.f32 %v6982_v8, %v2376_v6 }
 0x134   :  { %5681 = vmatpush3.bf16.msra.mxu0 %v7718_v58  ;;  %5721 = vmatpush3.bf16.msra.mxu1 %v7738_v37  ;;  %v7755_v37 = vld [vmem:[#allocation39_spill] sm:$0xff] }
 0x135   :  { %5683 = vmatprep.subr.bf16.mxu0 %v7719_v21  ;;  %5723 = vmatprep.subr.bf16.mxu1 %v7754_v0 }
 0x138   :  { %5685 = vmatpush3.bf16.msra.mxu0 %v7720_v57  ;;  %5725 = vmatpush3.bf16.msra.mxu1 %v7740_v27 }
 0x139   :  { %5687 = vmatprep.subr.bf16.mxu0 %v7721_v46  ;;  %5727 = vmatprep.subr.bf16.mxu1 %v7741_v34  ;;  %v2378_v34 = vand.u32 4294901760, %v2377_v62 }
 0x13c   :  { %5689 = vmatpush3.bf16.msra.mxu0 %v7722_v24  ;;  %5729 = vmatpush3.bf16.msra.mxu1 %v7755_v37 }
 0x13d   :  { %5691 = vmatprep.subr.bf16.mxu0 %v7723_v47  ;;  %5763 = vmatprep.subr.bf16.mxu1 %v6236_v12 }
 0x13f   :  { %2611 = vmatmul.mubr.f32.vlgmr.msra.gmra.mrb[12].mxu1 %v6975_v15 }
 0x140   :  { %5693 = vmatpush3.bf16.msra.mxu0 %v7724_v60  ;;  %5765 = vmatpush3.bf16.msra.mxu1 %v6244_v18 }
 0x141   :  { %5695 = vmatprep.subr.bf16.mxu0 %v7725_v32  ;;  %5767 = vmatprep.subr.bf16.mxu1 %v6248_v20 }
 0x142   :  { %2853 = vmatprep.mubr.f32.mxu1 %v2370_v59 }
 0x144   :  { %5697 = vmatpush3.bf16.msra.mxu0 %v7726_v42  ;;  %5769 = vmatpush3.bf16.msra.mxu1 %v7712_v30 }
 0x145   :  { %5731 = vmatprep.subr.bf16.mxu0 %v7742_v7  ;;  %5771 = vmatprep.subr.bf16.mxu1 %v7713_v56 }
 0x147   :  { %2379 = vmatmul.mubr.f32.vlgmr.msra.gmra.mrb[12].mxu0 %v2378_v34 }
 0x148   :  { %5733 = vmatpush3.bf16.msra.mxu0 %v7714_v55  ;;  %5773 = vmatpush3.bf16.msra.mxu1 %v7715_v45 }
 0x149   :  { %5735 = vmatprep.subr.bf16.mxu0 %v7716_v53  ;;  %5775 = vmatprep.subr.bf16.mxu1 %v7717_v50 }
 0x14a   :  { %2746 = vmatprep.mubr.f32.mxu0 %v6943_v16 }
 0x14c   :  { %5737 = vmatpush3.bf16.msra.mxu0 %v6578_v1  ;;  %5777 = vmatpush3.bf16.msra.mxu1 %v7718_v58 }
 0x14d   :  { %5739 = vmatprep.subr.bf16.mxu0 %v6582_v5  ;;  %5779 = vmatprep.subr.bf16.mxu1 %v7719_v21 }
 0x150   :  { %5741 = vmatpush3.bf16.msra.mxu0 %v6586_v29  ;;  %5781 = vmatpush3.bf16.msra.mxu1 %v7720_v57 }
 0x151   :  { %5743 = vmatprep.subr.bf16.mxu0 %v6590_v10  ;;  %5783 = vmatprep.subr.bf16.mxu1 %v7721_v46 }
 0x152   :  { %v4509_v34 = vpop.f32.mrb[0].mxu1 }
 0x153   :  { %v4510_v59 = vpop.f32.mrb[1].mxu1 }
 0x154   :  { %5745 = vmatpush3.bf16.msra.mxu0 %v6594_v41  ;;  %v4511_v16 = vadd.f32 %v4510_v59, %v4509_v34  ;;  %5785 = vmatpush3.bf16.msra.mxu1 %v7722_v24 }
 0x155   :  { %5747 = vmatprep.subr.bf16.mxu0 %v6598_v54  ;;  %5787 = vmatprep.subr.bf16.mxu1 %v7723_v47 }
 0x158   :  { %5749 = vmatpush3.bf16.msra.mxu0 %v6602_v49  ;;  %5789 = vmatpush3.bf16.msra.mxu1 %v7724_v60 }
 0x159   :  { %5751 = vmatprep.subr.bf16.mxu0 %v6606_v36  ;;  %5791 = vmatprep.subr.bf16.mxu1 %v7725_v32 }
 0x15a   :  { %v4474_v62 = vpop.f32.mrb[0].mxu0 }
 0x15b   :  { %v4475_v10 = vpop.f32.mrb[1].mxu0 }
 0x15c   :  { %v4476_v29 = vadd.f32 %v4475_v10, %v4474_v62  ;;  %5753 = vmatpush3.bf16.msra.mxu0 %v6610_v61  ;;  %5793 = vmatpush3.bf16.msra.mxu1 %v7726_v42  ;;  %v7756_v10 = vld [vmem:[#allocation48_spill] sm:$0xff]  ;;  %v7757_v62 = vld [vmem:[#allocation49_spill] sm:$0xff] }
 0x15d   :  { %5755 = vmatprep.subr.bf16.mxu0 %v6614_v22  ;;  %5827 = vmatprep.subr.bf16.mxu1 %v6236_v12  ;;  %v3273_v59 = vmul.f32 %v6736_v17, %v7756_v10  ;;  %v3274_v22 = vmul.f32 %v6738_v4, %v7757_v62 }
 0x15e   :  { %v551_v34 = vadd.f32 %v4511_v16, %v4476_v29 }
 0x15f   :  { %2857 = vmatmul.mubr.f32.vlgmr.msra.gmra.mrb[14].mxu1 %v2376_v6  ;;  %v3277_v29 = vcombine.low %v3273_v59, %v3274_v22 }
 0x160   :  { %5757 = vmatpush3.bf16.msra.mxu0 %v6618_v44  ;;  %5829 = vmatpush3.bf16.msra.mxu1 %v6244_v18 }
 0x161   :  { %5759 = vmatprep.subr.bf16.mxu0 %v6622_v51  ;;  %5831 = vmatprep.subr.bf16.mxu1 %v6248_v20  ;;  %v3284_v17 = vrot.slane %v3277_v29, %v6744_v40 }
 0x162   :  { %3127 = vmatprep.mubr.f32.mxu1 %v6936_v3 }
 0x163   :  { %v3285_v22 = vcombine.high %v3284_v17, %v3284_v17 }
 0x164   :  { %5761 = vmatpush3.bf16.msra.mxu0 %v6626_v23  ;;  %5833 = vmatpush3.bf16.msra.mxu1 %v7712_v30 }
 0x165   :  { %5795 = vmatprep.subr.bf16.mxu0 %v6632_v31  ;;  %5835 = vmatprep.subr.bf16.mxu1 %v7713_v56 }
 0x167   :  { %2749 = vmatmul.mubr.f32.vlgmr.msra.gmra.mrb[14].mxu0 %v6982_v8 }
 0x168   :  { %5797 = vmatpush3.bf16.msra.mxu0 %v6638_v28  ;;  %5837 = vmatpush3.bf16.msra.mxu1 %v7715_v45 }
 0x169   :  { %5799 = vmatprep.subr.bf16.mxu0 %v6644_v26  ;;  %5839 = vmatprep.subr.bf16.mxu1 %v7717_v50 }
 0x16a   :  { %3023 = vmatprep.mubr.f32.mxu0 %v6936_v3  ;;  %v3299_v3 = vrot.slane %v3285_v22, %v6744_v40  ;;  %v7758_v22 = vld [vmem:[#allocation45_spill] sm:$0xff] }
 0x16c   :  { %5801 = vmatpush3.bf16.msra.mxu0 %v6650_v14  ;;  %5841 = vmatpush3.bf16.msra.mxu1 %v7718_v58  ;;  %v7061_v16 = vand.u32 4294901760, %v3299_v3 }
 0x16d   :  { %5803 = vmatprep.subr.bf16.mxu0 %v6656_v19  ;;  %5843 = vmatprep.subr.bf16.mxu1 %v7719_v21 }
 0x16e   :  { %v7068_v59 = vsub.f32 %v3299_v3, %v7061_v16  ;;  %v7760_v3 = vld [vmem:[#allocation46_spill] sm:$0xff] }
 0x170   :  { %5805 = vmatpush3.bf16.msra.mxu0 %v6662_v25  ;;  %5845 = vmatpush3.bf16.msra.mxu1 %v7720_v57 }
 0x171   :  { %5807 = vmatprep.subr.bf16.mxu0 %v6668_v48  ;;  %5847 = vmatprep.subr.bf16.mxu1 %v7721_v46 }
 0x172   :  { %v4579_v4 = vpop.f32.mrb[2].mxu1 }
 0x173   :  { %v4580_v6 = vpop.f32.mrb[3].mxu1 }
 0x174   :  { %5809 = vmatpush3.bf16.msra.mxu0 %v6674_v63  ;;  %5849 = vmatpush3.bf16.msra.mxu1 %v7722_v24  ;;  %v4581_v8 = vadd.f32 %v4580_v6, %v4579_v4  ;;  %v7759_v4 = vld [vmem:[#allocation9_spill] sm:$0xff] }
 0x175   :  { %5811 = vmatprep.subr.bf16.mxu0 %v6680_v11  ;;  %5851 = vmatprep.subr.bf16.mxu1 %v7723_v47 }
 0x178   :  { %5813 = vmatpush3.bf16.msra.mxu0 %v6686_v38  ;;  %5853 = vmatpush3.bf16.msra.mxu1 %v7724_v60  ;;  %v3400_v38 = vand.u32 4294901760, %v7068_v59 }
 0x179   :  { %5815 = vmatprep.subr.bf16.mxu0 %v6692_v2  ;;  %5855 = vmatprep.subr.bf16.mxu1 %v7725_v32 }
 0x17a   :  { %v4544_v10 = vpop.f32.mrb[2].mxu0 }
 0x17b   :  { %v4545_v62 = vpop.f32.mrb[3].mxu0 }
 0x17c   :  { %v4546_v29 = vadd.f32 %v4545_v62, %v4544_v10  ;;  %5817 = vmatpush3.bf16.msra.mxu0 %v6698_v39  ;;  %5857 = vmatpush3.bf16.msra.mxu1 %v7726_v42  ;;  %v7761_v10 = vld [vmem:[#allocation11_spill] sm:$0xff]  ;;  %v3401_v62 = vsub.f32 %v7068_v59, %v3400_v38 }
 0x17d   :  { %5819 = vmatprep.subr.bf16.mxu0 %v7758_v22  ;;  %5891 = vmatprep.subr.bf16.mxu1 %v7759_v4  ;;  %v7762_v22 = vld [vmem:[#allocation47_spill] sm:$0xff] }
 0x17e   :  { %v689_v6 = vadd.f32 %v4546_v29, %v551_v34  ;;  %v7763_v34 = vld [vmem:[#allocation15_spill] sm:$0xff]  ;;  %v7765_v29 = vld [vmem:[#allocation20_spill] sm:$0xff] }
 0x17f   :  { %3129 = vmatmul.mubr.f32.vlgmr.msra.gmra.mrb[16].mxu1 %v6975_v15 }
 0x180   :  { %v797_v2 = vadd.f32 %v4581_v8, %v689_v6  ;;  %5821 = vmatpush3.bf16.msra.mxu0 %v6710_v33  ;;  %5893 = vmatpush3.bf16.msra.mxu1 %v7728_v52  ;;  %v3402_v8 = vand.u32 4294901760, %v3401_v62  ;;  %v7764_v52 = vld [vmem:[#allocation18_spill] sm:$0xff] }
 0x181   :  { %5823 = vmatprep.subr.bf16.mxu0 %v7760_v3  ;;  %5895 = vmatprep.subr.bf16.mxu1 %v7761_v10 }
 0x182   :  { %3639 = vmatprep.mubr.f32.mxu1 %v7061_v16 }
 0x184   :  { %5825 = vmatpush3.bf16.msra.mxu0 %v7762_v22  ;;  %5897 = vmatpush3.bf16.msra.mxu1 %v7763_v34 }
 0x185   :  { %5859 = vmatprep.subr.bf16.mxu0 %v6236_v12  ;;  %5899 = vmatprep.subr.bf16.mxu1 %v7731_v35  ;;  %v3292_v35 = vrot.slane %v3284_v17, %v6744_v40 }
 0x187   :  { %3025 = vmatmul.mubr.f32.vlgmr.msra.gmra.mrb[16].mxu0 %v6975_v15  ;;  %v7766_v15 = vld [vmem:[#allocation28_spill] sm:$0xff]  ;;  %v7100_v10 = vand.u32 4294901760, %v3292_v35 }
 0x188   :  { %5861 = vmatpush3.bf16.msra.mxu0 %v6244_v18  ;;  %5901 = vmatpush3.bf16.msra.mxu1 %v7764_v52 }
 0x189   :  { %5863 = vmatprep.subr.bf16.mxu0 %v6248_v20  ;;  %5903 = vmatprep.subr.bf16.mxu1 %v7765_v29 }
 0x18a   :  { %3403 = vmatprep.mubr.f32.mxu0 %v3402_v8 }
 0x18c   :  { %5865 = vmatpush3.bf16.msra.mxu0 %v7712_v30  ;;  %5905 = vmatpush3.bf16.msra.mxu1 %v7750_v43  ;;  %v7767_v43 = vld [vmem:[#allocation30_spill] sm:$0xff] }
 0x18d   :  { %5867 = vmatprep.subr.bf16.mxu0 %v7713_v56  ;;  %5907 = vmatprep.subr.bf16.mxu1 %v7751_v13  ;;  %v7107_v13 = vsub.f32 %v3292_v35, %v7100_v10 }
 0x18f   :  { %v3406_v8 = vand.u32 4294901760, %v7107_v13 }
 0x190   :  { %5869 = vmatpush3.bf16.msra.mxu0 %v7715_v45  ;;  %5909 = vmatpush3.bf16.msra.mxu1 %v7752_v9  ;;  %v7768_v9 = vld [vmem:[#allocation36_spill] sm:$0xff] }
 0x191   :  { %5871 = vmatprep.subr.bf16.mxu0 %v7717_v50  ;;  %5911 = vmatprep.subr.bf16.mxu1 %v7766_v15 }
 0x192   :  { %v4649_v4 = vpop.f32.mrb[4].mxu1 }
 0x193   :  { %v4650_v6 = vpop.f32.mrb[5].mxu1 }
 0x194   :  { %5873 = vmatpush3.bf16.msra.mxu0 %v7718_v58  ;;  %5913 = vmatpush3.bf16.msra.mxu1 %v7767_v43  ;;  %v4651_v62 = vadd.f32 %v4650_v6, %v4649_v4  ;;  %v7223_v6 = vld [vmem:[%s7526_s0 + $0x1] ss:$8 sm:$0x3] }
 0x195   :  { %5875 = vmatprep.subr.bf16.mxu0 %v7719_v21  ;;  %5915 = vmatprep.subr.bf16.mxu1 %v7754_v0 }
 0x198   :  { %5877 = vmatpush3.bf16.msra.mxu0 %v7720_v57  ;;  %5917 = vmatpush3.bf16.msra.mxu1 %v7740_v27  ;;  %v3407_v27 = vsub.f32 %v7107_v13, %v3406_v8 }
 0x199   :  { %5879 = vmatprep.subr.bf16.mxu0 %v7721_v46  ;;  %5919 = vmatprep.subr.bf16.mxu1 %v7768_v9 }
 0x19a   :  { %v4614_v17 = vpop.f32.mrb[4].mxu0 }
 0x19b   :  { %v4615_v34 = vpop.f32.mrb[5].mxu0 }
 0x19c   :  { %v4616_v52 = vadd.f32 %v4615_v34, %v4614_v17  ;;  %5881 = vmatpush3.bf16.msra.mxu0 %v7722_v24  ;;  %5921 = vmatpush3.bf16.msra.mxu1 %v7755_v37  ;;  %v7247_v34 = vld [vmem:[%s7526_s0 + $0x3] ss:$8 sm:$0x3] }
 0x19d   :  { %5883 = vmatprep.subr.bf16.mxu0 %v7723_v47  ;;  %5955 = vmatprep.subr.bf16.mxu1 %v6236_v12 }
 0x19e   :  { %v965_v0 = vadd.f32 %v4616_v52, %v797_v2  ;;  %v3408_v2 = vand.u32 4294901760, %v3407_v27 }
 0x19f   :  { %3641 = vmatmul.mubr.f32.vlgmr.msra.gmra.mrb[18].mxu1 %v7100_v10 }
 0x1a0   :  { %v7120_v29 = vadd.f32 %v4651_v62, %v965_v0  ;;  %5885 = vmatpush3.bf16.msra.mxu0 %v7724_v60  ;;  %5957 = vmatpush3.bf16.msra.mxu1 %v6244_v18  ;;  %v7235_v62 = vld [vmem:[%s7526_s0 + $0x11] ss:$8 sm:$0x3]  ;;  %v7253_v0 = vld [vmem:[%s7526_s0 + $0x13] ss:$8 sm:$0x3] }
 0x1a1   :  { %5887 = vmatprep.subr.bf16.mxu0 %v7725_v32  ;;  %5959 = vmatprep.subr.bf16.mxu1 %v6248_v20 }
 0x1a2   :  { %v1072_v37 = vadd.f32 1e-06, %v7120_v29  ;;  %1126 = vrot.lane.b32.xlu0 %v7120_v29, %s6191_s14  ;;  %3883 = vmatprep.mubr.f32.mxu1 %v3400_v38  ;;  %v7769_v38 = vld [vmem:[#allocation40_spill] sm:$0xff] }
 0x1a4   :  { %6095 = vrcp.f32 %v1072_v37  ;;  %5889 = vmatpush3.bf16.msra.mxu0 %v7726_v42  ;;  %5961 = vmatpush3.bf16.msra.mxu1 %v7712_v30 }
 0x1a5   :  { %5923 = vmatprep.subr.bf16.mxu0 %v7742_v7  ;;  %5963 = vmatprep.subr.bf16.mxu1 %v7713_v56 }
 0x1a7   :  { %3409 = vmatmul.mubr.f32.vlgmr.msra.gmra.mrb[18].mxu0 %v3408_v2 }
 0x1a8   :  { %5925 = vmatpush3.bf16.msra.mxu0 %v7714_v55  ;;  %5965 = vmatpush3.bf16.msra.mxu1 %v7715_v45  ;;  %v7770_v55 = vld [vmem:[#allocation41_spill] sm:$0xff] }
 0x1a9   :  { %5927 = vmatprep.subr.bf16.mxu0 %v7716_v53  ;;  %5967 = vmatprep.subr.bf16.mxu1 %v7717_v50 }
 0x1aa   :  { %3776 = vmatprep.mubr.f32.mxu0 %v7068_v59 }
 0x1ac   :  { %5929 = vmatpush3.bf16.msra.mxu0 %v6578_v1  ;;  %5969 = vmatpush3.bf16.msra.mxu1 %v7718_v58 }
 0x1ad   :  { %5931 = vmatprep.subr.bf16.mxu0 %v6582_v5  ;;  %5971 = vmatprep.subr.bf16.mxu1 %v7719_v21 }
 0x1ae   :  { %v7142_v7 = vpop.eup %6095 }
 0x1af   :  { %1081 = vrot.lane.b32.xlu0 %v7142_v7, %s6191_s14 }
 0x1b0   :  { %5933 = vmatpush3.bf16.msra.mxu0 %v7769_v38  ;;  %5973 = vmatpush3.bf16.msra.mxu1 %v7720_v57  ;;  %v7259_v38 = vld [vmem:[%s7526_s0 + $0x4] ss:$8 sm:$0x3] }
 0x1b1   :  { %5935 = vmatprep.subr.bf16.mxu0 %v7770_v55  ;;  %5975 = vmatprep.subr.bf16.mxu1 %v7721_v46 }
 0x1b2   :  { %v4719_v1 = vpop.f32.mrb[6].mxu1 }
 0x1b3   :  { %v4720_v53 = vpop.f32.mrb[7].mxu1 }
 0x1b4   :  { %5937 = vmatpush3.bf16.msra.mxu0 %v6594_v41  ;;  %v4721_v5 = vadd.f32 %v4720_v53, %v4719_v1  ;;  %5977 = vmatpush3.bf16.msra.mxu1 %v7722_v24  ;;  %v7771_v41 = vld [vmem:[#allocation42_spill] sm:$0xff] }
 0x1b5   :  { %5939 = vmatprep.subr.bf16.mxu0 %v6598_v54  ;;  %5979 = vmatprep.subr.bf16.mxu1 %v7723_v47  ;;  %v7265_v1 = vld [vmem:[%s7526_s0 + $0x14] ss:$8 sm:$0x3] }
 0x1b8   :  { %5941 = vmatpush3.bf16.msra.mxu0 %v6602_v49  ;;  %5981 = vmatpush3.bf16.msra.mxu1 %v7724_v60  ;;  %v7772_v49 = vld [vmem:[#allocation43_spill] sm:$0xff] }
 0x1b9   :  { %5943 = vmatprep.subr.bf16.mxu0 %v6606_v36  ;;  %5983 = vmatprep.subr.bf16.mxu1 %v7725_v32  ;;  %v7773_v36 = vld [vmem:[#allocation44_spill] sm:$0xff] }
 0x1ba   :  { %v4684_v59 = vpop.f32.mrb[6].mxu0 }
 0x1bb   :  { %v4685_v35 = vpop.f32.mrb[7].mxu0 }
 0x1bc   :  { %v4686_v15 = vadd.f32 %v4685_v35, %v4684_v59  ;;  %5945 = vmatpush3.bf16.msra.mxu0 %v6610_v61  ;;  %5985 = vmatpush3.bf16.msra.mxu1 %v7726_v42  ;;  %v6137_v59 = vld [vmem:[%s7526_s0] ss:$8 sm:$0x3] }
 0x1bd   :  { %5947 = vmatprep.subr.bf16.mxu0 %v7771_v41  ;;  %6019 = vmatprep.subr.bf16.mxu1 %v6236_v12 }
 0x1be   :  { %v1583_v54 = vadd.f32 %v4721_v5, %v4686_v15  ;;  %v6138_v15 = vld [vmem:[%s7526_s0 + $0x10] ss:$8 sm:$0x3] }
 0x1bf   :  { %3887 = vmatmul.mubr.f32.vlgmr.msra.gmra.mrb[20].mxu1 %v3406_v8 }
 0x1c0   :  { %5949 = vmatpush3.bf16.msra.mxu0 %v6618_v44  ;;  %6021 = vmatpush3.bf16.msra.mxu1 %v6244_v18 }
 0x1c1   :  { %5951 = vmatprep.subr.bf16.mxu0 %v6622_v51  ;;  %6023 = vmatprep.subr.bf16.mxu1 %v6248_v20 }
 0x1c2   :  { %4157 = vmatprep.mubr.f32.mxu1 %v7061_v16 }
 0x1c4   :  { %5953 = vmatpush3.bf16.msra.mxu0 %v6626_v23  ;;  %6025 = vmatpush3.bf16.msra.mxu1 %v7712_v30  ;;  %v7774_v23 = vld [vmem:[#allocation45_spill] sm:$0xff] }
 0x1c5   :  { %5987 = vmatprep.subr.bf16.mxu0 %v6632_v31  ;;  %6027 = vmatprep.subr.bf16.mxu1 %v7713_v56 }
 0x1c7   :  { %3779 = vmatmul.mubr.f32.vlgmr.msra.gmra.mrb[20].mxu0 %v7107_v13  ;;  %v7240_v13 = vld [vmem:[%s7526_s0 + $0x12] ss:$8 sm:$0x3] }
 0x1c8   :  { %5989 = vmatpush3.bf16.msra.mxu0 %v6638_v28  ;;  %6029 = vmatpush3.bf16.msra.mxu1 %v7715_v45  ;;  %v96_v9 = vadd.f32 %v7240_v13, %v7235_v62 }
 0x1c9   :  { %5991 = vmatprep.subr.bf16.mxu0 %v6644_v26  ;;  %6031 = vmatprep.subr.bf16.mxu1 %v7717_v50 }
 0x1ca   :  { %4053 = vmatprep.mubr.f32.mxu0 %v7061_v16  ;;  %v98_v27 = vadd.f32 %v7253_v0, %v96_v9 }
 0x1cc   :  { %5993 = vmatpush3.bf16.msra.mxu0 %v6650_v14  ;;  %6033 = vmatpush3.bf16.msra.mxu1 %v7718_v58  ;;  %v100_v53 = vadd.f32 %v7265_v1, %v98_v27 }
 0x1cd   :  { %5995 = vmatprep.subr.bf16.mxu0 %v6656_v19  ;;  %6035 = vmatprep.subr.bf16.mxu1 %v7719_v21 }
 0x1ce   :  { %v102_v41 = vsub.f32 %v100_v53, %v6138_v15 }
 0x1d0   :  { %5997 = vmatpush3.bf16.msra.mxu0 %v6662_v25  ;;  %6037 = vmatpush3.bf16.msra.mxu1 %v7720_v57 }
 0x1d1   :  { %5999 = vmatprep.subr.bf16.mxu0 %v6668_v48  ;;  %6039 = vmatprep.subr.bf16.mxu1 %v7721_v46 }
 0x1d2   :  { %v4789_v12 = vpop.f32.mrb[8].mxu1 }
 0x1d3   :  { %v4790_v18 = vpop.f32.mrb[9].mxu1 }
 0x1d4   :  { %6001 = vmatpush3.bf16.msra.mxu0 %v6674_v63  ;;  %v4791_v20 = vadd.f32 %v4790_v18, %v4789_v12  ;;  %6041 = vmatpush3.bf16.msra.mxu1 %v7722_v24  ;;  %v4433_v12 = vmul.f32 -1.442695, %v102_v41 }
 0x1d5   :  { %6003 = vmatprep.subr.bf16.mxu0 %v6680_v11  ;;  %6043 = vmatprep.subr.bf16.mxu1 %v7723_v47  ;;  %v7211_v47 = vadd.f32 0.00012, %v7120_v29 }
 0x1d8   :  { %6005 = vmatpush3.bf16.msra.mxu0 %v7772_v49  ;;  %6045 = vmatpush3.bf16.msra.mxu1 %v7724_v60 }
 0x1d9   :  { %6007 = vmatprep.subr.bf16.mxu0 %v7773_v36  ;;  %6047 = vmatprep.subr.bf16.mxu1 %v7725_v32 }
 0x1da   :  { %v4754_v61 = vpop.f32.mrb[8].mxu0 }
 0x1db   :  { %v4755_v44 = vpop.f32.mrb[9].mxu0 }
 0x1dc   :  { %v4756_v51 = vadd.f32 %v4755_v44, %v4754_v61  ;;  %6009 = vmatpush3.bf16.msra.mxu0 %v6698_v39  ;;  %6049 = vmatpush3.bf16.msra.mxu1 %v7726_v42 }
 0x1dd   :  { %6011 = vmatprep.subr.bf16.mxu0 %v7774_v23 }
 0x1de   :  { %v1721_v31 = vadd.f32 %v4756_v51, %v1583_v54 }
 0x1df   :  { %4159 = vmatmul.mubr.f32.vlgmr.msra.gmra.mrb[22].mxu1 %v7100_v10 }
 0x1e0   :  { %v1829_v28 = vadd.f32 %v4791_v20, %v1721_v31  ;;  %6013 = vmatpush3.bf16.msra.mxu0 %v6710_v33 }
 0x1e1   :  { %6015 = vmatprep.subr.bf16.mxu0 %v7760_v3 }
 0x1e4   :  { %6017 = vmatpush3.bf16.msra.mxu0 %v7762_v22 }
 0x1e7   :  { %4055 = vmatmul.mubr.f32.vlgmr.msra.gmra.mrb[22].mxu0 %v7100_v10  ;;  %v7228_v10 = vld [vmem:[%s7526_s0 + $0x2] ss:$8 sm:$0x3]  ;;  %s6192_s0 = smov 1  }
 0x1e8   :  { %v95_v43 = vadd.f32 %v7228_v10, %v7223_v6 }
 0x1ea   :  { %v97_v8 = vadd.f32 %v7247_v34, %v95_v43 }
 0x1ec   :  { %v99_v55 = vadd.f32 %v7259_v38, %v97_v8 }
 0x1ee   :  { %v101_v35 = vsub.f32 %v99_v55, %v6137_v59 }
 0x1f0   :  { %v4432_v54 = vmul.f32 -1.442695, %v101_v35 }
 0x1f2   :  { %v4859_v26 = vpop.f32.mrb[10].mxu1 }
 0x1f3   :  { %v4860_v14 = vpop.f32.mrb[11].mxu1 }
 0x1f4   :  { %v4861_v19 = vadd.f32 %v4860_v14, %v4859_v26 }
 0x1fa   :  { %v4824_v25 = vpop.f32.mrb[10].mxu0 }
 0x1fb   :  { %v4825_v48 = vpop.f32.mrb[11].mxu0 }
 0x1fc   :  { %v4826_v63 = vadd.f32 %v4825_v48, %v4824_v25 }
 0x1fe   :  { %v1997_v11 = vadd.f32 %v4826_v63, %v1829_v28 }
 0x200   :  { %v7201_v39 = vadd.f32 %v4861_v19, %v1997_v11 }
 0x202   :  { %v2104_v30 = vadd.f32 1e-06, %v7201_v39  ;;  %2158 = vrot.lane.b32.xlu1 %v7201_v39, %s6191_s14 }
 0x204   :  { %6097 = vrcp.f32 %v2104_v30 }
 0x205   :  { %6099 = vpow2.f32 %v4432_v54 }
 0x206   :  { %6101 = vpow2.f32 %v4433_v12 }
 0x20e   :  { %v7206_v33 = vpop.eup %6097 }
 0x20f   :  { %2113 = vrot.lane.b32.xlu0 %v7206_v33, %s6191_s14  ;;  %v6100_v36 = vpop.eup %6099 }
 0x210   :  { %v6102_v61 = vpop.eup %6101  ;;  %v109_v44 = vadd.f32 1.0, %v6100_v36 }
 0x211   :  { %v110_v51 = vadd.f32 1.0, %v6102_v61 }
 0x212   :  { %v4929_v56 = vpop.f32.mrb[12].mxu1  ;;  %6103 = vrcp.f32 %v109_v44 }
 0x213   :  { %v4930_v45 = vpop.f32.mrb[13].mxu1  ;;  %6105 = vrcp.f32 %v110_v51 }
 0x214   :  { %v4931_v50 = vadd.f32 %v4930_v45, %v4929_v56  ;;  %v1127_v46 = vpop.permute.xlu0 %1126 }
 0x21a   :  { %v4894_v58 = vpop.f32.mrb[12].mxu0 }
 0x21b   :  { %v4895_v21 = vpop.f32.mrb[13].mxu0 }
 0x21c   :  { %v4896_v57 = vadd.f32 %v4895_v21, %v4894_v58  ;;  %v7279_v25 = vpop.eup %6103 }
 0x21d   :  { %v7281_v48 = vpop.eup %6105 }
 0x21e   :  { %v2613_v24 = vadd.f32 %v4931_v50, %v4896_v57  ;;  %v117_v63 = vcombine.low %v7279_v25, %v7281_v48 }
 0x220   :  { %v124_v30 = vrot.slane %v117_v63, %v6744_v40 }
 0x221   :  { %v1082_v60 = vpop.permute.xlu0 %1081 }
 0x222   :  { %v7214_v32 = vmul.f32 %v1082_v60, %v7211_v47  ;;  %v125_v45 = vcombine.high %v124_v30, %v124_v30  ;;  %v132_v21 = vrot.slane %v124_v30, %v6744_v40 }
 0x224   :  { %v1125_v42 = vmul.f32 %v7214_v32, %v7214_v32  ;;  %v139_v57 = vrot.slane %v125_v45, %v6744_v40  ;;  %v1118_v43 = vmul.f32 2.0, %v7214_v32 }
 0x226   :  { %v7218_v16 = vmul.f32 %v1127_v46, %v1125_v42  ;;  %v144_v60 = vsel %vm142_vm0, %v139_v57, 0.0  ;;  %v1135_v9 = vmul.f32 120.0, %v1118_v43 }
 0x228   :  { %v1136_v8 = vsub.f32 1240.0, %v1135_v9 }
 0x232   :  { %v4999_v22 = vpop.f32.mrb[14].mxu1 }
 0x233   :  { %v5000_v3 = vpop.f32.mrb[15].mxu1 }
 0x234   :  { %v5001_v4 = vadd.f32 %v5000_v3, %v4999_v22 }
 0x23a   :  { %v4964_v17 = vpop.f32.mrb[14].mxu0 }
 0x23b   :  { %v4965_v52 = vpop.f32.mrb[15].mxu0 }
 0x23c   :  { %v4966_v37 = vadd.f32 %v4965_v52, %v4964_v17  ;;  %v1137_v17 = vmul.f32 16.0, %v7214_v32 }
 0x23e   :  { %v2751_v2 = vadd.f32 %v4966_v37, %v2613_v24  ;;  %v143_v24 = vsel %vm142_vm0, %v132_v21, 0.0  ;;  %v1138_v27 = vmul.f32 %v1137_v17, %v7214_v32 }
 0x23f   :  { %v145_v3 = vadd.f32 %v144_v60, %v143_v24 }
 0x240   :  { %v2859_v5 = vadd.f32 %v5001_v4, %v2751_v2  ;;  %v1139_v55 = vadd.f32 %v1138_v27, %v1136_v8 }
 0x242   :  { %v1140_v53 = vmul.f32 1e-06, %v1139_v55 }
 0x252   :  { %v5069_v18 = vpop.f32.mrb[16].mxu1 }
 0x253   :  { %v5070_v20 = vpop.f32.mrb[17].mxu1 }
 0x254   :  { %v5071_v49 = vadd.f32 %v5070_v20, %v5069_v18 }
 0x25a   :  { %v5034_v23 = vpop.f32.mrb[16].mxu0 }
 0x25b   :  { %v5035_v31 = vpop.f32.mrb[17].mxu0 }
 0x25c   :  { %v5036_v28 = vadd.f32 %v5035_v31, %v5034_v23 }
 0x25e   :  { %v3027_v26 = vadd.f32 %v5036_v28, %v2859_v5  ;;  %v2107_v28 = vadd.f32 0.00012, %v7201_v39 }
 0x260   :  { %v7274_v14 = vadd.f32 %v5071_v49, %v3027_v26 }
 0x262   :  { %v3134_v19 = vadd.f32 1e-06, %v7274_v14  ;;  %3188 = vrot.lane.b32.xlu0 %v7274_v14, %s6191_s14  ;;  %v3137_v24 = vadd.f32 0.00012, %v7274_v14 }
 0x264   :  { %6107 = vrcp.f32 %v3134_v19  ;;  %v1119_v19 = vmul.f32 %v1118_v43, %v7120_v29 }
 0x26e   :  { %v7285_v11 = vpop.eup %6107 }
 0x26f   :  { %3143 = vrot.lane.b32.xlu1 %v7285_v11, %s6191_s14 }
 0x272   :  { %v5139_v56 = vpop.f32.mrb[18].mxu1 }
 0x273   :  { %v5140_v50 = vpop.f32.mrb[19].mxu1 }
 0x274   :  { %v5141_v58 = vadd.f32 %v5140_v50, %v5139_v56  ;;  %v2159_v50 = vpop.permute.xlu1 %2158 }
 0x27a   :  { %v5104_v46 = vpop.f32.mrb[18].mxu0 }
 0x27b   :  { %v5105_v42 = vpop.f32.mrb[19].mxu0 }
 0x27c   :  { %v5106_v22 = vadd.f32 %v5105_v42, %v5104_v46 }
 0x27e   :  { %v3643_v4 = vadd.f32 %v5141_v58, %v5106_v22 }
 0x281   :  { %146 = vadd.xlane.f32.xlu0 %v145_v3  ;;  %v2114_v31 = vpop.permute.xlu0 %2113 }
 0x282   :  { %v7322_v26 = vmul.f32 %v2114_v31, %v2107_v28 }
 0x284   :  { %v2150_v63 = vmul.f32 2.0, %v7322_v26  ;;  %v2157_v56 = vmul.f32 %v7322_v26, %v7322_v26  ;;  %v2169_v58 = vmul.f32 16.0, %v7322_v26 }
 0x286   :  { %v2151_v30 = vmul.f32 %v2150_v63, %v7201_v39  ;;  %v2167_v45 = vmul.f32 120.0, %v2150_v63  ;;  %v2161_v21 = vmul.f32 %v2159_v50, %v2157_v56  ;;  %v2170_v60 = vmul.f32 %v2169_v58, %v7322_v26 }
 0x288   :  { %v2168_v57 = vsub.f32 1240.0, %v2167_v45 }
 0x28a   :  { %v2171_v22 = vadd.f32 %v2170_v60, %v2168_v57 }
 0x28c   :  { %v2172_v3 = vmul.f32 1e-06, %v2171_v22 }
 0x292   :  { %v5209_v52 = vpop.f32.mrb[20].mxu1 }
 0x293   :  { %v5210_v37 = vpop.f32.mrb[21].mxu1 }
 0x294   :  { %v5211_v2 = vadd.f32 %v5210_v37, %v5209_v52 }
 0x297   :  { %3156 = vrot.lane.b32.xlu0 %v7274_v14, %s6192_s0 }
 0x29a   :  { %v5174_v5 = vpop.f32.mrb[20].mxu0 }
 0x29b   :  { %v5175_v59 = vpop.f32.mrb[21].mxu0  ;;  %1142 = vrot.lane.b32.xlu0 %v1140_v53, %s6192_s0 }
 0x29c   :  { %v5176_v35 = vadd.f32 %v5175_v59, %v5174_v5 }
 0x29e   :  { %v3781_v15 = vadd.f32 %v5176_v35, %v3643_v4 }
 0x29f   :  { %1146 = vrot.lane.b32.xlu0 %v7142_v7, %s6193_s7 }
 0x2a0   :  { %v3889_v41 = vadd.f32 %v5211_v2, %v3781_v15 }
 0x2b2   :  { %v5279_v54 = vpop.f32.mrb[22].mxu1 }
 0x2b3   :  { %v5280_v12 = vpop.f32.mrb[23].mxu1 }
 0x2b4   :  { %v5281_v18 = vadd.f32 %v5280_v12, %v5279_v54 }
 0x2ba   :  { %v5244_v20 = vpop.f32.mrb[22].mxu0 }
 0x2bb   :  { %v5245_v49 = vpop.f32.mrb[23].mxu0 }
 0x2bc   :  { %v5246_v36 = vadd.f32 %v5245_v49, %v5244_v20 }
 0x2be   :  { %v4057_v61 = vadd.f32 %v5246_v36, %v3889_v41 }
 0x2c0   :  { %v7302_v44 = vadd.f32 %v5281_v18, %v4057_v61 }
 0x2c2   :  { %v4164_v51 = vadd.f32 1e-06, %v7302_v44  ;;  %4218 = vrot.lane.b32.xlu1 %v7302_v44, %s6191_s14  ;;  %v7356_v5 = vadd.f32 0.00012, %v7302_v44 }
 0x2c4   :  { %6109 = vrcp.f32 %v4164_v51 }
 0x2ce   :  { %v7307_v23 = vpop.eup %6109 }
 0x2cf   :  { %4173 = vrot.lane.b32.xlu1 %v7307_v23, %s6191_s14  ;;  %4238 = vrot.lane.b32.xlu0 %v7307_v23, %s6193_s7 }
 0x2d3   :  { %1077 = vrot.lane.b32.xlu1 %v7142_v7, %s6192_s0 }
 0x2d4   :  { %v3189_v27 = vpop.permute.xlu0 %3188 }
 0x2d7   :  { %2109 = vrot.lane.b32.xlu1 %v7206_v33, %s6192_s0 }
 0x2db   :  { %3139 = vrot.lane.b32.xlu1 %v7285_v11, %s6192_s0 }
 0x2df   :  { %1094 = vrot.lane.b32.xlu1 %v7120_v29, %s6192_s0 }
 0x2e1   :  { %v3144_v46 = vpop.permute.xlu1 %3143 }
 0x2e2   :  { %v7339_v42 = vmul.f32 %v3144_v46, %v3137_v24 }
 0x2e3   :  { %1121 = vrot.lane.b32.xlu1 %v1119_v19, %s6192_s0 }
 0x2e4   :  { %v3199_v43 = vmul.f32 16.0, %v7339_v42  ;;  %v3187_v17 = vmul.f32 %v7339_v42, %v7339_v42 }
 0x2e6   :  { %v3200_v52 = vmul.f32 %v3199_v43, %v7339_v42  ;;  %v3191_v37 = vmul.f32 %v3189_v27, %v3187_v17 }
 0x2e7   :  { %2126 = vrot.lane.b32.xlu1 %v7201_v39, %s6192_s0 }
 0x2eb   :  { %2153 = vrot.lane.b32.xlu1 %v2151_v30, %s6192_s0 }
 0x2ef   :  { %1131 = vrot.lane.b32.xlu1 %v7218_v16, %s6192_s0  ;;  %v3180_v16 = vmul.f32 2.0, %v7339_v42 }
 0x2f1   :  { %v3197_v4 = vmul.f32 120.0, %v3180_v16  ;;  %v3181_v9 = vmul.f32 %v3180_v16, %v7274_v14 }
 0x2f3   :  { %2163 = vrot.lane.b32.xlu1 %v2161_v21, %s6192_s0  ;;  %v3198_v8 = vsub.f32 1240.0, %v3197_v4 }
 0x2f5   :  { %v3201_v2 = vadd.f32 %v3200_v52, %v3198_v8 }
 0x2f7   :  { %4186 = vrot.lane.b32.xlu1 %v7302_v44, %s6192_s0  ;;  %v3202_v55 = vmul.f32 1e-06, %v3201_v2 }
 0x2fb   :  { %2174 = vrot.lane.b32.xlu1 %v2172_v3, %s6192_s0 }
 0x2ff   :  { %4169 = vrot.lane.b32.xlu1 %v7307_v23, %s6192_s0 }
 0x303   :  { %3183 = vrot.lane.b32.xlu1 %v3181_v9, %s6192_s0 }
 0x307   :  { %3193 = vrot.lane.b32.xlu1 %v3191_v37, %s6192_s0 }
 0x30b   :  { %3204 = vrot.lane.b32.xlu1 %v3202_v55, %s6192_s0 }
 0x30e   :  { %v7379_v19 = vpop.xlane.xlu0 %146 }
 0x312   :  { %v3157_v21 = vpop.permute.xlu0 %3156 }
 0x334   :  { %v4219_v53 = vpop.permute.xlu1 %4218 }
 0x341   :  { %v4174_v59 = vpop.permute.xlu1 %4173 }
 0x342   :  { %v7359_v35 = vmul.f32 %v4174_v59, %v7356_v5 }
 0x344   :  { %v7362_v15 = vmul.f32 2.0, %v7359_v35  ;;  %v4217_v46 = vmul.f32 %v7359_v35, %v7359_v35 }
 0x345   :  { %v1078_v41 = vpop.permute.xlu1 %1077 }
 0x346   :  { %v4211_v54 = vmul.f32 %v7362_v15, %v7302_v44  ;;  %v7368_v18 = vmul.f32 %v1078_v41, %v7211_v47  ;;  %v4221_v8 = vmul.f32 %v4219_v53, %v4217_v46  ;;  %v1143_v41 = vpop.permute.xlu0 %1142 }
 0x348   :  { %4213 = vrot.lane.b32.xlu1 %v4211_v54, %s6192_s0  ;;  %v1085_v31 = vmul.f32 2.0, %v7368_v18  ;;  %v1092_v50 = vmul.f32 %v7368_v18, %v7368_v18  ;;  %v1105_v58 = vmul.f32 16.0, %v7368_v18 }
 0x349   :  { %v2110_v12 = vpop.permute.xlu1 %2109 }
 0x34a   :  { %v7370_v20 = vmul.f32 %v2110_v12, %v2107_v28  ;;  %v1086_v30 = vmul.f32 %v1085_v31, %v7120_v29  ;;  %v1103_v45 = vmul.f32 120.0, %v1085_v31  ;;  %v1106_v4 = vmul.f32 %v1105_v58, %v7368_v18  ;;  %v1147_v31 = vpop.permute.xlu0 %1146 }
 0x34c   :  { %2178 = vrot.lane.b32.xlu1 %v7206_v33, %s6193_s7  ;;  %v2117_v49 = vmul.f32 2.0, %v7370_v20  ;;  %v1104_v22 = vsub.f32 1240.0, %v1103_v45  ;;  %v2124_v16 = vmul.f32 %v7370_v20, %v7370_v20  ;;  %v2137_v43 = vmul.f32 16.0, %v7370_v20 }
 0x34d   :  { %v3140_v36 = vpop.permute.xlu1 %3139 }
 0x34e   :  { %v7375_v61 = vmul.f32 %v3140_v36, %v3137_v24  ;;  %v2118_v51 = vmul.f32 %v2117_v49, %v7201_v39  ;;  %v2135_v3 = vmul.f32 120.0, %v2117_v49  ;;  %v1107_v52 = vadd.f32 %v1106_v4, %v1104_v22 }
 0x34f   :  { %v2138_v37 = vmul.f32 %v2137_v43, %v7370_v20 }
 0x350   :  { %2120 = vrot.lane.b32.xlu0 %v2118_v51, %s6192_s0  ;;  %3208 = vrot.lane.b32.xlu1 %v7285_v11, %s6193_s7  ;;  %v7385_v47 = vmul.f32 2.0, %v7375_v61  ;;  %v3154_v56 = vmul.f32 %v7375_v61, %v7375_v61  ;;  %v2136_v27 = vsub.f32 1240.0, %v2135_v3  ;;  %v1108_v55 = vmul.f32 1e-06, %v1107_v52 }
 0x351   :  { %v1095_v28 = vpop.permute.xlu1 %1094 }
 0x352   :  { %v3148_v63 = vmul.f32 %v7385_v47, %v7274_v14  ;;  %v1097_v24 = vmul.f32 %v1095_v28, %v1092_v50  ;;  %v3159_v60 = vmul.f32 %v3157_v21, %v3154_v56  ;;  %v2139_v59 = vadd.f32 %v2138_v37, %v2136_v27 }
 0x354   :  { %3150 = vrot.lane.b32.xlu0 %v3148_v63, %s6192_s0  ;;  %1088 = vrot.lane.b32.xlu1 %v1086_v30, %s6192_s0  ;;  %v2140_v36 = vmul.f32 1e-06, %v2139_v59 }
 0x355   :  { %v1122_v57 = vpop.permute.xlu1 %1121 }
 0x356   :  { %v1124_v54 = vsub.f32 %v7120_v29, %v1122_v57  ;;  %v4227_v57 = vmul.f32 120.0, %v7362_v15 }
 0x358   :  { %1099 = vrot.lane.b32.xlu1 %v1097_v24, %s6192_s0  ;;  %3161 = vrot.lane.b32.xlu0 %v3159_v60, %s6192_s0  ;;  %v4229_v24 = vmul.f32 16.0, %v7359_v35 }
 0x359   :  { %v2127_v9 = vpop.permute.xlu1 %2126 }
 0x35a   :  { %v2129_v17 = vmul.f32 %v2127_v9, %v2124_v16  ;;  %v3165_v16 = vmul.f32 120.0, %v7385_v47  ;;  %v4230_v9 = vmul.f32 %v4229_v24, %v7359_v35 }
 0x35c   :  { %2131 = vrot.lane.b32.xlu1 %v2129_v17, %s6192_s0  ;;  %4223 = vrot.lane.b32.xlu0 %v4221_v8, %s6192_s0  ;;  %v3167_v8 = vmul.f32 16.0, %v7375_v61 }
 0x35d   :  { %v2154_v2 = vpop.permute.xlu1 %2153 }
 0x35e   :  { %v2156_v53 = vsub.f32 %v7201_v39, %v2154_v2 }
 0x360   :  { %1110 = vrot.lane.b32.xlu1 %v1108_v55, %s6192_s0  ;;  %v3166_v55 = vsub.f32 1240.0, %v3165_v16 }
 0x361   :  { %v1132_v12 = vpop.permute.xlu1 %1131 }
 0x362   :  { %v1134_v49 = vadd.f32 %v1132_v12, %v1124_v54  ;;  %v3168_v54 = vmul.f32 %v3167_v8, %v7375_v61 }
 0x364   :  { %v1145_v51 = vadd.f32 %v1143_v41, %v1134_v49  ;;  %2142 = vrot.lane.b32.xlu1 %v2140_v36, %s6192_s0  ;;  %v3169_v49 = vadd.f32 %v3168_v54, %v3166_v55  ;;  %v2208_v55 = vmul.f32 %v7228_v10, %v7279_v25 }
 0x365   :  { %v2164_v28 = vpop.permute.xlu1 %2163 }
 0x366   :  { %v1149_v63 = vmul.f32 %v1147_v31, %v1145_v51  ;;  %v2166_v30 = vadd.f32 %v2164_v28, %v2156_v53  ;;  %v3170_v36 = vmul.f32 1e-06, %v3169_v49  ;;  %v3238_v49 = vmul.f32 %v7247_v34, %v7279_v25 }
 0x368   :  { %v1158_v56 = vmax.f32 %v1149_v63, 0.0  ;;  %1114 = vrot.lane.b32.xlu1 %v7142_v7, %s6194_s8 }
 0x369   :  { %v4187_v45 = vpop.permute.xlu1 %4186 }
 0x36a   :  { %6111 = vrsqrt.f32 %v1158_v56  ;;  %vm1161_vm1 = vcmp.eq.f32.partialorder %v1158_v56, inf  ;;  %v1164_v4 = vand.u32 2147483648, %v1158_v56  ;;  %vm1163_vm2 = vcmp.eq.f32.partialorder %v1158_v56, 0.0 }
 0x36c   :  { %2146 = vrot.lane.b32.xlu1 %v7206_v33, %s6194_s8  ;;  %v4228_v33 = vsub.f32 1240.0, %v4227_v57 }
 0x36d   :  { %v2175_v50 = vpop.permute.xlu1 %2174 }
 0x36e   :  { %v2177_v58 = vadd.f32 %v2175_v50, %v2166_v30  ;;  %v4231_v2 = vadd.f32 %v4230_v9, %v4228_v33 }
 0x370   :  { %3176 = vrot.lane.b32.xlu1 %v7285_v11, %s6194_s8  ;;  %v4232_v12 = vmul.f32 1e-06, %v4231_v2 }
 0x371   :  { %v4170_v21 = vpop.permute.xlu1 %4169 }
 0x372   :  { %v7420_v46 = vmul.f32 %v4170_v21, %v7356_v5 }
 0x374   :  { %v6112_v60 = vpop.eup %6111  ;;  %v4177_v7 = vmul.f32 2.0, %v7420_v46  ;;  %v4197_v22 = vmul.f32 16.0, %v7420_v46  ;;  %v4184_v15 = vmul.f32 %v7420_v46, %v7420_v46 }
 0x375   :  { %v1160_v3 = vmul.f32 %v6112_v60, %v1158_v56  ;;  %v3184_v53 = vpop.permute.xlu1 %3183 }
 0x376   :  { %v4178_v11 = vmul.f32 %v4177_v7, %v7302_v44  ;;  %v4195_v5 = vmul.f32 120.0, %v4177_v7  ;;  %v4198_v27 = vmul.f32 %v4197_v22, %v7420_v46  ;;  %v4189_v37 = vmul.f32 %v4187_v45, %v4184_v15 }
 0x377   :  { %v1162_v43 = vsel %vm1161_vm1, %v1158_v56, %v1160_v3  ;;  %v3186_v63 = vsub.f32 %v7274_v14, %v3184_v53  ;;  %v4239_v3 = vpop.permute.xlu0 %4238  ;;  %v1177_v53 = vmul.f32 %v7223_v6, %v7279_v25  ;;  %vm4351_vm1 = vcmask 7168  }
 0x378   :  { %4180 = vrot.lane.b32.xlu0 %v4178_v11, %s6192_s0  ;;  %v1165_v17 = vsel %vm1163_vm2, %v1164_v4, %v1162_v43  ;;  %v4196_v52 = vsub.f32 1240.0, %v4195_v5  ;;  %vm4353_vm2 = vcmask 15360  }
 0x379   :  { %v1175_v47 = vmul.f32 0.0625, %v1165_v17  ;;  %v3194_v51 = vpop.permute.xlu1 %3193 }
 0x37a   :  { %v4199_v59 = vadd.f32 %v4198_v27, %v4196_v52  ;;  %v3196_v56 = vadd.f32 %v3194_v51, %v3186_v63  ;;  %v1178_v51 = vmul.f32 %v7235_v62, %v7281_v48 }
 0x37b   :  { %v1176_v41 = vmul.f32 2.0, %v1175_v47 }
 0x37c   :  { %4191 = vrot.lane.b32.xlu0 %v4189_v37, %s6192_s0  ;;  %v4200_v27 = vmul.f32 1e-06, %v4199_v59  ;;  %v3239_v59 = vmul.f32 %v7253_v0, %v7281_v48  ;;  %v1181_v63 = vcombine.low %v1177_v53, %v1178_v51 }
 0x37d   :  { %4382 = vrot.lane.b32.xlu1 %v1176_v41, %s6195_s9  ;;  %v3205_v31 = vpop.permute.xlu1 %3204  ;;  %v2209_v41 = vmul.f32 %v7240_v13, %v7281_v48 }
 0x37e   :  { %v3207_v50 = vadd.f32 %v3205_v31, %v3196_v56  ;;  %v3242_v13 = vcombine.low %v3238_v49, %v3239_v59  ;;  %v1188_v0 = vrot.slane %v1181_v63, %v6744_v40 }
 0x380   :  { %4234 = vrot.lane.b32.xlu0 %v4232_v12, %s6192_s0  ;;  %v2212_v12 = vcombine.low %v2208_v55, %v2209_v41  ;;  %v3249_v34 = vrot.slane %v3242_v13, %v6744_v40 }
 0x382   :  { %v2219_v31 = vrot.slane %v2212_v12, %v6744_v40  ;;  %v3250_v62 = vcombine.high %v3249_v34, %v3249_v34 }
 0x384   :  { %3172 = vrot.lane.b32.xlu0 %v3170_v36, %s6192_s0  ;;  %v2227_v6 = vrot.slane %v2219_v31, %v6744_v40 }
 0x388   :  { %4206 = vrot.lane.b32.xlu0 %v7307_v23, %s6194_s8 }
 0x3ba   :  { %v7439_v28 = vpop.permute.xlu1 %4213 }
 0x3be   :  { %v2179_v30 = vpop.permute.xlu1 %2178 }
 0x3bf   :  { %v2181_v45 = vmul.f32 %v2179_v30, %v2177_v58 }
 0x3c1   :  { %v2190_v21 = vmax.f32 %v2181_v45, 0.0  ;;  %v2220_v45 = vcombine.high %v2219_v31, %v2219_v31 }
 0x3c2   :  { %v3209_v57 = vpop.permute.xlu1 %3208  ;;  %v7442_v5 = vpop.permute.xlu0 %2120 }
 0x3c3   :  { %6113 = vrsqrt.f32 %v2190_v21  ;;  %v3211_v24 = vmul.f32 %v3209_v57, %v3207_v50  ;;  %vm2193_vm3 = vcmp.eq.f32.partialorder %v2190_v21, inf  ;;  %v2196_v23 = vand.u32 2147483648, %v2190_v21 }
 0x3c4   :  { %vm2195_vm4 = vcmp.eq.f32.partialorder %v2190_v21, 0.0  ;;  %v2234_v57 = vrot.slane %v2220_v45, %v6744_v40 }
 0x3c5   :  { %v3220_v60 = vmax.f32 %v3211_v24, 0.0  ;;  %v4216_v24 = vsub.f32 %v7302_v44, %v7439_v28 }
 0x3c6   :  { %v1089_v52 = vpop.permute.xlu1 %1088  ;;  %v3151_v37 = vpop.permute.xlu0 %3150 }
 0x3c7   :  { %6115 = vrsqrt.f32 %v3220_v60  ;;  %vm3223_vm5 = vcmp.eq.f32.partialorder %v3220_v60, inf  ;;  %v3226_v58 = vand.u32 2147483648, %v3220_v60  ;;  %vm3225_vm6 = vcmp.eq.f32.partialorder %v3220_v60, 0.0 }
 0x3c8   :  { %v1091_v12 = vsub.f32 %v7120_v29, %v1089_v52  ;;  %v3153_v59 = vsub.f32 %v7274_v14, %v3151_v37 }
 0x3ca   :  { %v1100_v2 = vpop.permute.xlu1 %1099  ;;  %v3162_v54 = vpop.permute.xlu0 %3161 }
 0x3cb   :  { %v1102_v53 = vadd.f32 %v1100_v2, %v1091_v12  ;;  %v3164_v31 = vadd.f32 %v3162_v54, %v3153_v59  ;;  %v3228_v54 = vmul.f32 0.0625, %v7375_v61 }
 0x3cd   :  { %v6114_v7 = vpop.eup %6113 }
 0x3ce   :  { %v2192_v22 = vmul.f32 %v6114_v7, %v2190_v21  ;;  %v7453_v36 = vpop.permute.xlu1 %2131  ;;  %v4224_v10 = vpop.permute.xlu0 %4223 }
 0x3d0   :  { %v2194_v33 = vsel %vm2193_vm3, %v2190_v21, %v2192_v22  ;;  %v1189_v22 = vcombine.high %v1188_v0, %v1188_v0  ;;  %vm4355_vm3 = vcmask 23552  }
 0x3d1   :  { %v6116_v16 = vpop.eup %6115  ;;  %v2197_v11 = vsel %vm2195_vm4, %v2196_v23, %v2194_v33  ;;  %v4226_v23 = vadd.f32 %v4224_v10, %v4216_v24  ;;  %v4258_v24 = vmul.f32 0.0625, %v7420_v46  ;;  %vm4357_vm4 = vcmask 31744  }
 0x3d2   :  { %v2206_v15 = vmul.f32 0.0625, %v2197_v11  ;;  %v3222_v4 = vmul.f32 %v6116_v16, %v3220_v60  ;;  %v1111_v30 = vpop.permute.xlu1 %1110  ;;  %v2237_v16 = vsel %vm142_vm0, %v2227_v6, 0.0  ;;  %v2238_v11 = vsel %vm142_vm0, %v2234_v57, 0.0 }
 0x3d3   :  { %v1113_v13 = vadd.f32 %v1111_v30, %v1102_v53  ;;  %v3229_v57 = vmul.f32 2.0, %v3228_v54 }
 0x3d4   :  { %v2207_v43 = vmul.f32 2.0, %v2206_v15  ;;  %v3224_v9 = vsel %vm3223_vm5, %v3220_v60, %v3222_v4  ;;  %v3257_v15 = vrot.slane %v3249_v34, %v6744_v40  ;;  %v3264_v4 = vrot.slane %v3250_v62, %v6744_v40 }
 0x3d5   :  { %v3227_v17 = vsel %vm3225_vm6, %v3226_v58, %v3224_v9  ;;  %vm4359_vm5 = vcmask 39936   ;;  %vm4361_vm6 = vcmask 48128  }
 0x3d6   :  { %4386 = vrot.lane.b32.xlu0 %v2207_v43, %s6196_s10  ;;  %v3236_v8 = vmul.f32 0.0625, %v3227_v17  ;;  %v7467_v60 = vpop.permute.xlu1 %2142  ;;  %v1196_v43 = vrot.slane %v1188_v0, %v6744_v40  ;;  %v2239_v17 = vadd.f32 %v2238_v11, %v2237_v16  ;;  %v1170_v16 = vmul.f32 0.0625, %v7214_v32 }
 0x3d7   :  { %v4269_v32 = vmul.f32 %v7265_v1, %v7281_v48 }
 0x3d8   :  { %v3237_v47 = vmul.f32 2.0, %v3236_v8  ;;  %v3267_v8 = vsel %vm142_vm0, %v3257_v15, 0.0  ;;  %v1206_v55 = vsel %vm142_vm0, %v1196_v43, 0.0 }
 0x3da   :  { %4202 = vrot.lane.b32.xlu0 %v4200_v27, %s6192_s0  ;;  %4390 = vrot.lane.b32.xlu1 %v3237_v47, %s6197_s11  ;;  %v1115_v28 = vpop.permute.xlu1 %1114  ;;  %v3268_v27 = vsel %vm142_vm0, %v3264_v4, 0.0  ;;  %v1171_v4 = vmul.f32 2.0, %v1170_v16 }
 0x3db   :  { %v3269_v49 = vadd.f32 %v3268_v27, %v3267_v8  ;;  %v1117_v63 = vmul.f32 %v1115_v28, %v1113_v13 }
 0x3dd   :  { %v1150_v34 = vmax.f32 %v1117_v63, 0.0 }
 0x3df   :  { %vm1153_vm9 = vcmp.eq.f32.partialorder %v1150_v34, inf  ;;  %v1156_v28 = vand.u32 2147483648, %v1150_v34  ;;  %vm1155_vm10 = vcmp.eq.f32.partialorder %v1150_v34, 0.0 }
 0x3ea   :  { %v4181_v56 = vpop.permute.xlu0 %4180 }
 0x3eb   :  { %v4183_v50 = vsub.f32 %v7302_v44, %v4181_v56  ;;  %v1203_v44 = vrot.slane %v1189_v22, %v6744_v40 }
 0x3ed   :  { %v1207_v41 = vsel %vm142_vm0, %v1203_v44, 0.0  ;;  %v4268_v44 = vmul.f32 %v7259_v38, %v7279_v25 }
 0x3ee   :  { %v4192_v21 = vpop.permute.xlu0 %4191  ;;  %v1208_v51 = vadd.f32 %v1207_v41, %v1206_v55 }
 0x3ef   :  { %v7469_v7 = vadd.f32 %v4192_v21, %v4183_v50  ;;  %v1167_v50 = vmul.f32 0.0625, %v7368_v18  ;;  %v4438_v18 = vadd.f32 -1.0, %v3229_v57  ;;  %v4272_v27 = vcombine.low %v4268_v44, %v4269_v32 }
 0x3f1   :  { %v1168_v21 = vmul.f32 2.0, %v1167_v50  ;;  %v4279_v38 = vrot.slane %v4272_v27, %v6744_v40 }
 0x3f2   :  { %v4235_v33 = vpop.permute.xlu0 %4234 }
 0x3f3   :  { %v4237_v58 = vadd.f32 %v4235_v33, %v4226_v23  ;;  %v4434_v6 = vadd.f32 -1.0, %v1168_v21  ;;  %v4259_v33 = vmul.f32 2.0, %v4258_v24  ;;  %v4280_v48 = vcombine.high %v4279_v38, %v4279_v38 }
 0x3f4   :  { %v4287_v59 = vrot.slane %v4279_v38, %v6744_v40 }
 0x3f5   :  { %v4241_v9 = vmul.f32 %v4239_v3, %v4237_v58  ;;  %v7483_v3 = vpop.permute.xlu1 %2146  ;;  %v4440_v15 = vadd.f32 -1.0, %v4259_v33  ;;  %v3231_v58 = vmul.f32 0.0625, %v7339_v42  ;;  %v4294_v53 = vrot.slane %v4280_v48, %v6744_v40 }
 0x3f6   :  { %v3173_v10 = vpop.permute.xlu0 %3172 }
 0x3f7   :  { %v4250_v47 = vmax.f32 %v4241_v9, 0.0  ;;  %v3175_v56 = vadd.f32 %v3173_v10, %v3164_v31  ;;  %v4435_v9 = vadd.f32 -1.0, %v1171_v4  ;;  %v4297_v31 = vsel %vm142_vm0, %v4287_v59, 0.0 }
 0x3f8   :  { %v4298_v13 = vsel %vm142_vm0, %v4294_v53, 0.0 }
 0x3f9   :  { %6117 = vrsqrt.f32 %v4250_v47  ;;  %2240 = vadd.xlane.f32.xlu0 %v2239_v17  ;;  %v3177_v45 = vpop.permute.xlu1 %3176  ;;  %vm4253_vm7 = vcmp.eq.f32.partialorder %v4250_v47, inf  ;;  %v4256_v2 = vand.u32 2147483648, %v4250_v47  ;;  %vm4255_vm8 = vcmp.eq.f32.partialorder %v4250_v47, 0.0 }
 0x3fa   :  { %v3179_v0 = vmul.f32 %v3177_v45, %v3175_v56  ;;  %6119 = vrsqrt.f32 %v1150_v34  ;;  %v3232_v17 = vmul.f32 2.0, %v3231_v58  ;;  %v4299_v56 = vadd.f32 %v4298_v13, %v4297_v31 }
 0x3fc   :  { %v3212_v14 = vmax.f32 %v3179_v0, 0.0  ;;  %v4439_v55 = vadd.f32 -1.0, %v3232_v17  ;;  %v2198_v0 = vmul.f32 0.0625, %v7370_v20 }
 0x3fd   :  { %3270 = vadd.xlane.f32.xlu0 %v3269_v49 }
 0x3fe   :  { %1209 = vadd.xlane.f32.xlu1 %v1208_v51  ;;  %6121 = vrsqrt.f32 %v3212_v14  ;;  %vm3215_vm11 = vcmp.eq.f32.partialorder %v3212_v14, inf  ;;  %vm3217_vm12 = vcmp.eq.f32.partialorder %v3212_v14, 0.0  ;;  %v2123_v51 = vsub.f32 %v7201_v39, %v7442_v5  ;;  %v4207_v5 = vpop.permute.xlu0 %4206 }
 0x3ff   :  { %v2201_v39 = vmul.f32 0.0625, %v7322_v26 }
 0x400   :  { %v2134_v10 = vadd.f32 %v7453_v36, %v2123_v51 }
 0x401   :  { %v2202_v50 = vmul.f32 2.0, %v2201_v39 }
 0x402   :  { %v2145_v63 = vadd.f32 %v7467_v60, %v2134_v10 }
 0x403   :  { %v6118_v29 = vpop.eup %6117 }
 0x404   :  { %v4252_v52 = vmul.f32 %v6118_v29, %v4250_v47  ;;  %v6120_v22 = vpop.eup %6119  ;;  %v2149_v45 = vmul.f32 %v7483_v3, %v2145_v63  ;;  %v2199_v29 = vmul.f32 2.0, %v2198_v0 }
 0x405   :  { %v1152_v61 = vmul.f32 %v6120_v22, %v1150_v34 }
 0x406   :  { %v4254_v37 = vsel %vm4253_vm7, %v4250_v47, %v4252_v52  ;;  %v3218_v47 = vand.u32 2147483648, %v3212_v14  ;;  %v4436_v52 = vadd.f32 -1.0, %v2199_v29  ;;  %vm4363_vm7 = vcmask 56320  }
 0x407   :  { %v4257_v30 = vsel %vm4255_vm8, %v4256_v2, %v4254_v37  ;;  %v1154_v46 = vsel %vm1153_vm9, %v1150_v34, %v1152_v61  ;;  %v2182_v34 = vmax.f32 %v2149_v45, 0.0  ;;  %v4437_v2 = vadd.f32 -1.0, %v2202_v50 }
 0x408   :  { %v4266_v62 = vmul.f32 0.0625, %v4257_v30  ;;  %v6122_v11 = vpop.eup %6121  ;;  %v1157_v8 = vsel %vm1155_vm10, %v1156_v28, %v1154_v46  ;;  %vm4365_vm8 = vcmask 64512   ;;  %vm4367_vm9 = vcmask 72704  }
 0x409   :  { %v3214_v43 = vmul.f32 %v6122_v11, %v3212_v14  ;;  %v1173_v41 = vmul.f32 0.0625, %v1157_v8  ;;  %6123 = vrsqrt.f32 %v2182_v34  ;;  %vm2185_vm13 = vcmp.eq.f32.partialorder %v2182_v34, inf  ;;  %v4383_v11 = vpop.permute.xlu1 %4382 }
 0x40a   :  { %v4267_v23 = vmul.f32 2.0, %v4266_v62  ;;  %v2188_v37 = vand.u32 2147483648, %v2182_v34  ;;  %vm2187_vm14 = vcmp.eq.f32.partialorder %v2182_v34, 0.0  ;;  %vm4369_vm10 = vcmask 80896  }
 0x40b   :  { %v3216_v42 = vsel %vm3215_vm11, %v3212_v14, %v3214_v43  ;;  %v1174_v25 = vmul.f32 2.0, %v1173_v41  ;;  %v4261_v14 = vmul.f32 0.0625, %v7359_v35  ;;  %vm4371_vm11 = vcmask 89088  }
 0x40c   :  { %v3219_v12 = vsel %vm3217_vm12, %v3218_v47, %v3216_v42  ;;  %vm4373_vm12 = vcmask 97280  }
 0x40d   :  { %v3234_v1 = vmul.f32 0.0625, %v3219_v12  ;;  %v4262_v21 = vmul.f32 2.0, %v4261_v14 }
 0x40f   :  { %4304 = vrot.lane.b32.xlu1 %v4434_v6, %s6191_s14  ;;  %s6201_s14 = smov 7   ;;  %v3235_v49 = vmul.f32 2.0, %v3234_v1  ;;  %v4441_v30 = vadd.f32 -1.0, %v4262_v21 }
 0x413   :  { %4312 = vrot.lane.b32.xlu1 %v4438_v18, %s6198_s12  ;;  %4394 = vrot.lane.b32.xlu0 %v4267_v23, %s6199_s13  ;;  %v6124_v40 = vpop.eup %6123 }
 0x414   :  { %v2184_v36 = vmul.f32 %v6124_v40, %v2182_v34 }
 0x416   :  { %v2186_v3 = vsel %vm2185_vm13, %v2182_v34, %v2184_v36  ;;  %vm4375_vm13 = vcmask 105472  }
 0x417   :  { %4316 = vrot.lane.b32.xlu1 %v4440_v15, %s6200_s15  ;;  %v2189_v20 = vsel %vm2187_vm14, %v2188_v37, %v2186_v3  ;;  %vm4377_vm14 = vcmask 113664  }
 0x418   :  { %v2204_v6 = vmul.f32 0.0625, %v2189_v20 }
 0x41a   :  { %v2205_v62 = vmul.f32 2.0, %v2204_v6 }
 0x41b   :  { %4320 = vrot.lane.b32.xlu1 %v4435_v9, %s6198_s12 }
 0x41f   :  { %4328 = vrot.lane.b32.xlu1 %v4439_v55, %s6201_s14 }
 0x423   :  { %4336 = vrot.lane.b32.xlu1 %v1174_v25, %s6202_s16 }
 0x427   :  { %4344 = vrot.lane.b32.xlu1 %v3235_v49, %s6203_s17 }
 0x432   :  { %4300 = vadd.xlane.f32.xlu0 %v4299_v56 }
 0x448   :  { %4308 = vrot.lane.b32.xlu0 %v4436_v52, %s6193_s7  ;;  %v4387_v60 = vpop.permute.xlu0 %4386 }
 0x449   :  { %v4397_v9 = vsel %vm4351_vm1, %v4383_v11, %v4387_v60 }
 0x44c   :  { %4324 = vrot.lane.b32.xlu0 %v4437_v2, %s6200_s15  ;;  %v4203_v54 = vpop.permute.xlu0 %4202  ;;  %v4391_v58 = vpop.permute.xlu1 %4390 }
 0x44d   :  { %v4205_v26 = vadd.f32 %v4203_v54, %v7469_v7  ;;  %v148_v7 = vmax.f32 %v7379_v19, 1e-06  ;;  %v4398_v17 = vsel %vm4353_vm2, %v4397_v9, %v4391_v58 }
 0x44f   :  { %v4209_v57 = vmul.f32 %v4207_v5, %v4205_v26 }
 0x450   :  { %4332 = vrot.lane.b32.xlu0 %v4441_v30, %s6189_s20  ;;  %s6206_s20 = smov 16  }
 0x451   :  { %v4242_v35 = vmax.f32 %v4209_v57, 0.0 }
 0x453   :  { %6125 = vrsqrt.f32 %v4242_v35  ;;  %vm4245_vm15 = vcmp.eq.f32.partialorder %v4242_v35, inf  ;;  %v4248_v18 = vand.u32 2147483648, %v4242_v35  ;;  %vm4247_vm0 = vcmp.eq.f32.partialorder %v4242_v35, 0.0 }
 0x454   :  { %4340 = vrot.lane.b32.xlu0 %v2205_v62, %s6204_s18  ;;  %6127 = vrcp.f32 %v148_v7 }
 0x45d   :  { %v6126_v24 = vpop.eup %6125 }
 0x45e   :  { %v4244_v22 = vmul.f32 %v6126_v24, %v4242_v35  ;;  %v6128_v15 = vpop.eup %6127 }
 0x460   :  { %v4246_v23 = vsel %vm4245_vm15, %v4242_v35, %v4244_v22  ;;  %vm4379_vm15 = vcmask 121856  }
 0x461   :  { %v4249_v33 = vsel %vm4247_vm0, %v4248_v18, %v4246_v23  ;;  %vm4404_vm0 = vcmask 130048  }
 0x462   :  { %v4264_v16 = vmul.f32 0.0625, %v4249_v33 }
 0x464   :  { %v4265_v61 = vmul.f32 2.0, %v4264_v16 }
 0x466   :  { %4348 = vrot.lane.b32.xlu0 %v4265_v61, %s6205_s19 }
 0x486   :  { %v2241_v4 = vpop.xlane.xlu0 %2240 }
 0x487   :  { %v2242_v46 = vmul.f32 %v6128_v15, %v2241_v4 }
 0x48a   :  { %v3271_v43 = vpop.xlane.xlu0 %3270 }
 0x48b   :  { %v3272_v44 = vmul.f32 %v6128_v15, %v3271_v43  ;;  %v1210_v32 = vpop.xlane.xlu1 %1209 }
 0x48c   :  { %v1212_v28 = vmul.f32 %v6128_v15, %v1210_v32 }
 0x48e   :  { %v4352_v8 = vsel %vm4351_vm1, %v1212_v28, %v2242_v46  ;;  %v4395_v42 = vpop.permute.xlu0 %4394  ;;  %vm4406_vm1 = vcmask 156672  }
 0x48f   :  { %v4399_v27 = vsel %vm4355_vm3, %v4398_v17, %v4395_v42  ;;  %v4354_v47 = vsel %vm4353_vm2, %v4352_v8, %v3272_v44  ;;  %v4305_v12 = vpop.permute.xlu1 %4304 }
 0x490   :  { %4401 = vrot.lane.b32.xlu1 %v4399_v27, %s6206_s20 }
 0x493   :  { %v4313_v38 = vpop.permute.xlu1 %4312 }
 0x497   :  { %v4317_v25 = vpop.permute.xlu1 %4316 }
 0x49b   :  { %v4321_v59 = vpop.permute.xlu1 %4320 }
 0x49f   :  { %v4329_v31 = vpop.permute.xlu1 %4328 }
 0x4a3   :  { %v4337_v45 = vpop.permute.xlu1 %4336 }
 0x4a7   :  { %v4345_v39 = vpop.permute.xlu1 %4344 }
 0x4bf   :  { %v4301_v19 = vpop.xlane.xlu0 %4300 }
 0x4c0   :  { %v4302_v55 = vmul.f32 %v6128_v15, %v4301_v19 }
 0x4c2   :  { %v4356_v41 = vsel %vm4355_vm3, %v4354_v47, %v4302_v55 }
 0x4c3   :  { %v4358_v1 = vsel %vm4357_vm4, %v4356_v41, %v4305_v12  ;;  %v4309_v48 = vpop.permute.xlu0 %4308 }
 0x4c4   :  { %v4360_v49 = vsel %vm4359_vm5, %v4358_v1, %v4309_v48 }
 0x4c5   :  { %v4362_v53 = vsel %vm4361_vm6, %v4360_v49, %v4313_v38 }
 0x4c6   :  { %v4364_v10 = vsel %vm4363_vm7, %v4362_v53, %v4317_v25 }
 0x4c7   :  { %v4325_v51 = vpop.permute.xlu0 %4324  ;;  %v4366_v13 = vsel %vm4365_vm8, %v4364_v10, %v4321_v59 }
 0x4c8   :  { %v4368_v56 = vsel %vm4367_vm9, %v4366_v13, %v4325_v51 }
 0x4c9   :  { %v4370_v34 = vsel %vm4369_vm10, %v4368_v56, %v4329_v31 }
 0x4cb   :  { %v4333_v63 = vpop.permute.xlu0 %4332 }
 0x4cc   :  { %v4372_v0 = vsel %vm4371_vm11, %v4370_v34, %v4333_v63 }
 0x4cd   :  { %v4374_v29 = vsel %vm4373_vm12, %v4372_v0, %v4337_v45 }
 0x4cf   :  { %v4341_v40 = vpop.permute.xlu0 %4340 }
 0x4d0   :  { %v4376_v5 = vsel %vm4375_vm13, %v4374_v29, %v4341_v40 }
 0x4d1   :  { %v4378_v52 = vsel %vm4377_vm14, %v4376_v5, %v4345_v39 }
 0x4d8   :  { %v4349_v36 = vpop.permute.xlu0 %4348 }
 0x4d9   :  { %v4380_v50 = vsel %vm4379_vm15, %v4378_v52, %v4349_v36 }
 0x502   :  { %v4402_v14 = vpop.permute.xlu1 %4401 }
 0x503   :  { %v4405_v60 = vsel %vm4404_vm0, %v4380_v50, %v4402_v14 }
 0x504   :  { %4407 = vst.msk [vmem:[#allocation5] sm:$0x3] %vm4406_vm1, %v4405_v60 }
 0x505   :  { %6172 = shalt.err (!%p6169_p12)
}
 0x506   :  { %s6173_s25 = scalar_lea.hbm %s7528_s2, 32 }
 0x507   :  { %p6174_p13 = scmp.ne.s32.totalorder %s7528_s2, %s6173_s25  ;;  %p6177_p0 = scmp.lt.u32.totalorder %s6173_s25, %s7528_s2 }
 0x509   :  { %p6179_p1 = pnand %p6177_p0, %p6174_p13 }
 0x50b   :  { %6182 = shalt.err (!%p6179_p1)
}
 0x50c   :  { %4417 = dma.vmem_to_hbm [thread:$0]  %s4415_s22, 32, %s7528_s2, [#allocation4]  }
 0x50d   :  { %6185 = dma.done.wait [#allocation4], 32  }
 0x50e   :  { %6186 = vsyncadd [#allocation4], 4294967264 }
 0x50f   :  { %4421 = vsyncpa [#allocation3], 1 }
 0x510   :  { %4422 = vsyncpa [#allocation4], 1 }

</bundles_post_ra>
